<compile_context>
chip_gen: v6e
topology: v6e:2x2x1
jax: 0.10.0
libtpu: 0.0.40
codegen_flags: <defaults>
</compile_context>

<pallas_src>
import functools

import jax
import jax.numpy as jnp
from jax.experimental import pallas as pl
from jax.experimental.pallas import tpu as pltpu

_BT = 4  # samples processed per grid step


# ----------------------------------------------------------------------------
# Shape helpers (Conv2d(k=3, stride=1, valid) and MaxPool2d(3) floor mode)
# ----------------------------------------------------------------------------
def _pool_out(n):
    return (n - 3) // 3 + 1


def conv_feat_shape(input_shape):
    """Mirrors mnist_featext._get_conv_output."""
    _, h, w = input_shape
    h, w = h - 2, w - 2
    h, w = _pool_out(h), _pool_out(w)
    h, w = h - 2, w - 2
    h, w = _pool_out(h), _pool_out(w)
    return 64 * h * w


# ----------------------------------------------------------------------------
# Fused forward kernel (BT samples per grid step)
# ----------------------------------------------------------------------------
def _fused_kernel(xg_ref, w1_ref, b1_ref, w2_ref, b2_ref,
                  f1w_ref, f1b_ref, f2w_ref, f2b_ref,
                  out_ref, p1_scr, *, bt, p1h, p1w, p2h, p2w, wc):
    f32 = jnp.float32
    s1 = p1w * 32          # pooled conv1 lanes per phase block (256)
    s2 = p2w * 64          # pooled conv2 lanes per phase block (128)
    n2 = 3 * s2
    m = bt * p1h           # MXU M for both conv matmuls

    # ---- Conv2d(cin,32,3) + ReLU as one banded MXU matmul per row-phase r,
    #      fused with the row direction of MaxPool2d(3) (max over r). ----
    w1b = w1_ref[...]                                   # (3*wc, 3*s1)
    b1t = b1_ref[...]                                   # (1, 3*s1)
    rowmax = None
    for r in range(3):
        parts = [xg_ref[:, r + dy, :, :].reshape(m, wc) for dy in range(3)]
        lhs = jnp.concatenate(parts, axis=1)            # (m, 3*wc)
        y = jnp.dot(lhs, w1b, preferred_element_type=f32) + b1t
        y = jnp.maximum(y, 0.0)                         # (m, 3*s1)
        rowmax = y if r == 0 else jnp.maximum(rowmax, y)

    # ---- Column direction of pool1: lanes are ordered (x%3, x//3, ch), so the
    #      stride-3 window max is a max of three aligned 256-lane blocks. ----
    p1 = jnp.maximum(jnp.maximum(rowmax[:, 0:s1], rowmax[:, s1:2 * s1]),
                     rowmax[:, 2 * s1:3 * s1])          # (m, s1)

    # ---- Stage pooled features (+8 zero rows so conv2's shifted windows stay
    #      in bounds; overflow rows only feed discarded conv2 outputs). ----
    p1_scr[m:m + 8, :] = jnp.zeros((8, s1), f32)
    p1_scr[0:m, :] = p1

    # ---- Conv2d(32,64,3) + ReLU as one banded MXU matmul over all p1h rows
    #      (rows >= 3*p2h are garbage and discarded by pool2). ----
    lhs2 = jnp.concatenate([p1_scr[dy:dy + m, :] for dy in range(3)], axis=1)
    z2 = jnp.dot(lhs2, w2_ref[...], preferred_element_type=f32) + b2_ref[...]
    z2 = jnp.maximum(z2, 0.0).reshape(bt, p1h, n2)

    # ---- MaxPool2d(3) on conv2: rows via a 3-row reduce, cols via the three
    #      phase blocks; flatten in (i, j, c) order (fc1 weights pre-permuted).
    feats = []
    for i2 in range(p2h):
        mrow = jnp.max(z2[:, 3 * i2:3 * i2 + 3, :], axis=1)         # (bt, n2)
        feats.append(jnp.maximum(jnp.maximum(mrow[:, 0:s2], mrow[:, s2:2 * s2]),
                                 mrow[:, 2 * s2:3 * s2]))           # (bt, s2)
    feat = jnp.concatenate(feats, axis=1)                            # (bt, flt)

    # ---- Linear(flt,256) + Linear(256,10) ----
    hidden = jnp.dot(feat, f1w_ref[...], preferred_element_type=f32) + f1b_ref[...]
    logits = jnp.dot(hidden, f2w_ref[...], preferred_element_type=f32) + f2b_ref[...]
    out_ref[0] = logits                                              # (bt, 10)


# ----------------------------------------------------------------------------
# Parameters (PyTorch layout) and one-time kernel-layout preparation
# ----------------------------------------------------------------------------
def init_params(key, input_shape):
    """Random params in PyTorch layouts: Conv (Cout,Cin,kh,kw), Linear (out,in)."""
    cin = input_shape[0]
    flt = conv_feat_shape(input_shape)
    ks = jax.random.split(key, 8)

    def nrm(k, shape, scale):
        return jax.random.normal(k, shape, jnp.float32) * scale

    return dict(
        w1=nrm(ks[0], (32, cin, 3, 3), 0.20), b1=nrm(ks[1], (32,), 0.10),
        w2=nrm(ks[2], (64, 32, 3, 3), 0.05), b2=nrm(ks[3], (64,), 0.10),
        fc1_w=nrm(ks[4], (256, flt), 0.05), fc1_b=nrm(ks[5], (256,), 0.10),
        fc2_w=nrm(ks[6], (10, 256), 0.05), fc2_b=nrm(ks[7], (10,), 0.10),
    )


def prepare_params(p, input_shape):
    """Hoisted (one-time) weight reformatting into kernel-friendly layouts.

    Conv weights become 'banded' matrices: each 3x3 valid conv turns into one
    matmul whose K packs (tap-row, x', cin) and whose N lanes are ordered
    (x%3, x//3, cout) so the following stride-3 max-pool is block-aligned.
    """
    cin, H, W = input_shape
    p1h, p1w = (H - 2) // 3, (W - 2) // 3
    p2h, p2w = (p1h - 2) // 3, (p1w - 2) // 3
    f32 = jnp.float32
    wc = W * cin
    s1, s2 = p1w * 32, p2w * 64
    k1, n1 = 3 * wc, 3 * s1
    k2, n2 = 3 * s1, 3 * s2
    flt = 64 * p2h * p2w

    w1 = p["w1"].astype(f32)                       # (32, cin, 3, 3)
    w1band = jnp.zeros((k1, n1), f32)
    for dy in range(3):
        for dx in range(3):
            blk = jnp.transpose(w1[:, :, dy, dx])  # (cin, 32)
            for xo in range(3 * p1w):
                k0 = dy * wc + (xo + dx) * cin
                n0 = (xo % 3) * s1 + (xo // 3) * 32
                w1band = w1band.at[k0:k0 + cin, n0:n0 + 32].set(blk)
    b1t = jnp.tile(p["b1"].astype(f32), 3 * p1w).reshape(1, n1)

    w2 = p["w2"].astype(f32)                       # (64, 32, 3, 3)
    w2band = jnp.zeros((k2, n2), f32)
    for dy in range(3):
        for dx in range(3):
            blk = jnp.transpose(w2[:, :, dy, dx])  # (32, 64)
            for xo in range(3 * p2w):
                k0 = dy * s1 + (xo + dx) * 32
                n0 = (xo % 3) * s2 + (xo // 3) * 64
                w2band = w2band.at[k0:k0 + 32, n0:n0 + 64].set(blk)
    b2t = jnp.tile(p["b2"].astype(f32), 3 * p2w).reshape(1, n2)

    # fc1: PyTorch flattens NCHW as (c, i, j); kernel emits features as (i, j, c).
    fc1 = jnp.transpose(p["fc1_w"].reshape(256, 64, p2h, p2w),
                        (2, 3, 1, 0)).reshape(flt, 256).astype(f32)
    fc2 = jnp.transpose(p["fc2_w"]).astype(f32)    # (256, 10)

    return dict(w1band=w1band, b1t=b1t, w2band=w2band, b2t=b2t,
                fc1_w=fc1, fc1_b=p["fc1_b"].reshape(1, 256).astype(f32),
                fc2_w=fc2, fc2_b=p["fc2_b"].reshape(1, 10).astype(f32))


# ----------------------------------------------------------------------------
# Forward
# ----------------------------------------------------------------------------
@jax.jit
def mnist_featext_forward(x_nchw, kp):
    """x_nchw: (B, Cin, H, W) float32 -> (B, 10) float32."""
    B, cin, H, W = x_nchw.shape
    p1h, p1w = (H - 2) // 3, (W - 2) // 3
    p2h, p2w = (p1h - 2) // 3, (p1w - 2) // 3
    assert p1h >= 3 and p1w >= 3 and p2h >= 1 and p2w >= 1, "spatial size too small"
    wc = W * cin
    s1 = p1w * 32
    n1, n2 = 3 * s1, 3 * p2w * 64
    flt = 64 * p2h * p2w
    bt = _BT
    g = -(-B // bt)
    bp = g * bt

    # Dense row-phase layout: xg[b, p, i, :] = x[b, 3*i + p, :], p in 0..4.
    x2 = jnp.transpose(x_nchw.astype(jnp.float32), (0, 2, 3, 1)).reshape(B, H, wc)
    xg = jnp.stack([x2[:, p:p + 3 * p1h:3, :] for p in range(5)], axis=1)
    if bp != B:
        xg = jnp.pad(xg, ((0, bp - B), (0, 0), (0, 0), (0, 0)))

    kernel = functools.partial(_fused_kernel, bt=bt, p1h=p1h, p1w=p1w,
                               p2h=p2h, p2w=p2w, wc=wc)

    rep2 = lambda gi: (0, 0)
    flops = bp * (2 * 3 * p1h * (3 * wc) * n1 + 2 * p1h * (3 * s1) * n2
                  + 2 * flt * 256 + 2 * 256 * 10)
    bytes_accessed = 4 * (xg.size + kp["w1band"].size + kp["w2band"].size
                          + kp["fc1_w"].size + kp["fc2_w"].size
                          + n1 + n2 + 256 + 10 + bp * 10)

    out3 = pl.pallas_call(
        kernel,
        grid=(g,),
        in_specs=[
            pl.BlockSpec((bt, 5, p1h, wc), lambda gi: (gi, 0, 0, 0)),
            pl.BlockSpec(kp["w1band"].shape, rep2),
            pl.BlockSpec(kp["b1t"].shape, rep2),
            pl.BlockSpec(kp["w2band"].shape, rep2),
            pl.BlockSpec(kp["b2t"].shape, rep2),
            pl.BlockSpec(kp["fc1_w"].shape, rep2),
            pl.BlockSpec(kp["fc1_b"].shape, rep2),
            pl.BlockSpec(kp["fc2_w"].shape, rep2),
            pl.BlockSpec(kp["fc2_b"].shape, rep2),
        ],
        out_specs=pl.BlockSpec((1, bt, 10), lambda gi: (gi, 0, 0)),
        out_shape=jax.ShapeDtypeStruct((g, bt, 10), jnp.float32),
        scratch_shapes=[pltpu.VMEM((bt * p1h + 8, s1), jnp.float32)],
        compiler_params=pltpu.CompilerParams(
            dimension_semantics=("parallel",),
            vmem_limit_bytes=32 * 1024 * 1024),
        cost_estimate=pl.CostEstimate(flops=flops, transcendentals=0,
                                      bytes_accessed=bytes_accessed),
    )(xg, kp["w1band"], kp["b1t"], kp["w2band"], kp["b2t"],
      kp["fc1_w"], kp["fc1_b"], kp["fc2_w"], kp["fc2_b"])
    return out3.reshape(bp, 10)[:B]


# ----------------------------------------------------------------------------
# Pure-XLA reference (PyTorch-layout params) for a correctness cross-check
# ----------------------------------------------------------------------------
def _reference_forward(x_nchw, p):
    f32 = jnp.float32
    x = x_nchw.astype(f32)

    def conv(v, w, b):
        y = jax.lax.conv_general_dilated(
            v, w.astype(f32), window_strides=(1, 1), padding="VALID",
            dimension_numbers=("NCHW", "OIHW", "NCHW"))
        return jax.nn.relu(y + b.reshape(1, -1, 1, 1))

    def pool3(v):
        return jax.lax.reduce_window(
            v, -jnp.inf, jax.lax.max,
            window_dimensions=(1, 1, 3, 3), window_strides=(1, 1, 3, 3),
            padding="VALID")

    y = pool3(conv(x, p["w1"], p["b1"]))
    y = pool3(conv(y, p["w2"], p["b2"]))
    flat = y.reshape(y.shape[0], -1)
    h = flat @ p["fc1_w"].T + p["fc1_b"]
    return h @ p["fc2_w"].T + p["fc2_b"]


# ----------------------------------------------------------------------------
if __name__ == "__main__":
    input_shape = (1, 28, 28)     # MNIST-style (Cin, H, W)
    batch = 8                     # -> 2 "parallel" grid steps of 4 samples

    key = jax.random.PRNGKey(0)
    kx, kp_key = jax.random.split(key)
    x = jax.random.normal(kx, (batch,) + input_shape, jnp.float32)

    torch_params = init_params(kp_key, input_shape)        # PyTorch layouts
    kparams = prepare_params(torch_params, input_shape)    # kernel layouts (one-time)

    out = mnist_featext_forward(x, kparams)
    out = jax.block_until_ready(out)

    assert out.shape == (batch, 10), out.shape
    assert bool(jnp.all(jnp.isfinite(out)))

    ref = _reference_forward(x, torch_params)
    max_err = float(jnp.max(jnp.abs(out - ref)))
    assert jnp.allclose(out, ref, atol=1e-3, rtol=1e-3), max_err

    print("KERNEL_OK")
</pallas_src>

<mosaic_0001>
module attributes {stable_mosaic.version = 11 : i64} {
  func.func @_fused_kernel(%arg0: i32, %arg1: memref<4x5x8x28xf32, #tpu.memory_space<vmem>>, %arg2: memref<84x768xf32, #tpu.memory_space<vmem>>, %arg3: memref<1x768xf32, #tpu.memory_space<vmem>>, %arg4: memref<768x384xf32, #tpu.memory_space<vmem>>, %arg5: memref<1x384xf32, #tpu.memory_space<vmem>>, %arg6: memref<256x256xf32, #tpu.memory_space<vmem>>, %arg7: memref<1x256xf32, #tpu.memory_space<vmem>>, %arg8: memref<256x10xf32, #tpu.memory_space<vmem>>, %arg9: memref<1x10xf32, #tpu.memory_space<vmem>>, %arg10: memref<1x4x10xf32, #tpu.memory_space<vmem>>, %arg11: memref<40x256xf32, #tpu.memory_space<vmem>>) attributes {dimension_semantics = [#tpu.dimension_semantics<parallel>], iteration_bounds = array<i64: 2>, scalar_prefetch = 0 : i64, scratch_operands = 1 : i64, tpu.core_type = #tpu.core_type<tc>, window_params = [{transform_indices = @transform_0, window_bounds = array<i64: 4, 5, 8, 28>}, {pipeline_mode = #tpu.pipeline_mode<synchronous>, transform_indices = @transform_1, window_bounds = array<i64: 84, 768>}, {pipeline_mode = #tpu.pipeline_mode<synchronous>, transform_indices = @transform_2, window_bounds = array<i64: 1, 768>}, {pipeline_mode = #tpu.pipeline_mode<synchronous>, transform_indices = @transform_3, window_bounds = array<i64: 768, 384>}, {pipeline_mode = #tpu.pipeline_mode<synchronous>, transform_indices = @transform_4, window_bounds = array<i64: 1, 384>}, {pipeline_mode = #tpu.pipeline_mode<synchronous>, transform_indices = @transform_5, window_bounds = array<i64: 256, 256>}, {pipeline_mode = #tpu.pipeline_mode<synchronous>, transform_indices = @transform_6, window_bounds = array<i64: 1, 256>}, {pipeline_mode = #tpu.pipeline_mode<synchronous>, transform_indices = @transform_7, window_bounds = array<i64: 256, 10>}, {pipeline_mode = #tpu.pipeline_mode<synchronous>, transform_indices = @transform_8, window_bounds = array<i64: 1, 10>}, {transform_indices = @transform_9, window_bounds = array<i64: 1, 4, 10>}]} {
    %c0 = arith.constant 0 : index
    %c0_0 = arith.constant 0 : index
    %0 = vector.load %arg2[%c0, %c0_0] : memref<84x768xf32, #tpu.memory_space<vmem>>, vector<84x768xf32>
    %c0_1 = arith.constant 0 : index
    %c0_2 = arith.constant 0 : index
    %1 = vector.load %arg3[%c0_1, %c0_2] : memref<1x768xf32, #tpu.memory_space<vmem>>, vector<1x768xf32>
    %c0_3 = arith.constant 0 : index
    %c0_4 = arith.constant 0 : index
    %c0_5 = arith.constant 0 : index
    %c0_6 = arith.constant 0 : index
    %2 = vector.load %arg1[%c0_3, %c0_4, %c0_5, %c0_6] : memref<4x5x8x28xf32, #tpu.memory_space<vmem>>, vector<4x1x8x28xf32>
    %3 = vector.shape_cast %2 : vector<4x1x8x28xf32> to vector<4x8x28xf32>
    %4 = vector.shape_cast %3 : vector<4x8x28xf32> to vector<32x28xf32>
    %c0_7 = arith.constant 0 : index
    %c1 = arith.constant 1 : index
    %c0_8 = arith.constant 0 : index
    %c0_9 = arith.constant 0 : index
    %5 = vector.load %arg1[%c0_7, %c1, %c0_8, %c0_9] : memref<4x5x8x28xf32, #tpu.memory_space<vmem>>, vector<4x1x8x28xf32>
    %6 = vector.shape_cast %5 : vector<4x1x8x28xf32> to vector<4x8x28xf32>
    %7 = vector.shape_cast %6 : vector<4x8x28xf32> to vector<32x28xf32>
    %c0_10 = arith.constant 0 : index
    %c2 = arith.constant 2 : index
    %c0_11 = arith.constant 0 : index
    %c0_12 = arith.constant 0 : index
    %8 = vector.load %arg1[%c0_10, %c2, %c0_11, %c0_12] : memref<4x5x8x28xf32, #tpu.memory_space<vmem>>, vector<4x1x8x28xf32>
    %9 = vector.shape_cast %8 : vector<4x1x8x28xf32> to vector<4x8x28xf32>
    %10 = vector.shape_cast %9 : vector<4x8x28xf32> to vector<32x28xf32>
    %11 = tpu.concatenate %4, %7, %10 in 1 : vector<32x28xf32>, vector<32x28xf32>, vector<32x28xf32> -> vector<32x84xf32>
    %cst = arith.constant dense<0.000000e+00> : vector<32x768xf32>
    %12 = tpu.matmul %11, %0, %cst {dimension_numbers = #tpu.dot_dimension_numbers<[1], [0], [0], [1], [0, 0, 1, 1], [], []>} : vector<32x84xf32>, vector<84x768xf32>, vector<32x768xf32> -> vector<32x768xf32>
    %13 = vector.broadcast %1 : vector<1x768xf32> to vector<32x768xf32>
    %14 = arith.addf %12, %13 : vector<32x768xf32>
    %cst_13 = arith.constant 0.000000e+00 : f32
    %15 = vector.broadcast %cst_13 : f32 to vector<32x768xf32>
    %16 = arith.maximumf %14, %15 : vector<32x768xf32>
    %c0_14 = arith.constant 0 : index
    %c1_15 = arith.constant 1 : index
    %c0_16 = arith.constant 0 : index
    %c0_17 = arith.constant 0 : index
    %17 = vector.load %arg1[%c0_14, %c1_15, %c0_16, %c0_17] : memref<4x5x8x28xf32, #tpu.memory_space<vmem>>, vector<4x1x8x28xf32>
    %18 = vector.shape_cast %17 : vector<4x1x8x28xf32> to vector<4x8x28xf32>
    %19 = vector.shape_cast %18 : vector<4x8x28xf32> to vector<32x28xf32>
    %c0_18 = arith.constant 0 : index
    %c2_19 = arith.constant 2 : index
    %c0_20 = arith.constant 0 : index
    %c0_21 = arith.constant 0 : index
    %20 = vector.load %arg1[%c0_18, %c2_19, %c0_20, %c0_21] : memref<4x5x8x28xf32, #tpu.memory_space<vmem>>, vector<4x1x8x28xf32>
    %21 = vector.shape_cast %20 : vector<4x1x8x28xf32> to vector<4x8x28xf32>
    %22 = vector.shape_cast %21 : vector<4x8x28xf32> to vector<32x28xf32>
    %c0_22 = arith.constant 0 : index
    %c3 = arith.constant 3 : index
    %c0_23 = arith.constant 0 : index
    %c0_24 = arith.constant 0 : index
    %23 = vector.load %arg1[%c0_22, %c3, %c0_23, %c0_24] : memref<4x5x8x28xf32, #tpu.memory_space<vmem>>, vector<4x1x8x28xf32>
    %24 = vector.shape_cast %23 : vector<4x1x8x28xf32> to vector<4x8x28xf32>
    %25 = vector.shape_cast %24 : vector<4x8x28xf32> to vector<32x28xf32>
    %26 = tpu.concatenate %19, %22, %25 in 1 : vector<32x28xf32>, vector<32x28xf32>, vector<32x28xf32> -> vector<32x84xf32>
    %cst_25 = arith.constant dense<0.000000e+00> : vector<32x768xf32>
    %27 = tpu.matmul %26, %0, %cst_25 {dimension_numbers = #tpu.dot_dimension_numbers<[1], [0], [0], [1], [0, 0, 1, 1], [], []>} : vector<32x84xf32>, vector<84x768xf32>, vector<32x768xf32> -> vector<32x768xf32>
    %28 = vector.broadcast %1 : vector<1x768xf32> to vector<32x768xf32>
    %29 = arith.addf %27, %28 : vector<32x768xf32>
    %cst_26 = arith.constant 0.000000e+00 : f32
    %30 = vector.broadcast %cst_26 : f32 to vector<32x768xf32>
    %31 = arith.maximumf %29, %30 : vector<32x768xf32>
    %32 = arith.maximumf %16, %31 : vector<32x768xf32>
    %c0_27 = arith.constant 0 : index
    %c2_28 = arith.constant 2 : index
    %c0_29 = arith.constant 0 : index
    %c0_30 = arith.constant 0 : index
    %33 = vector.load %arg1[%c0_27, %c2_28, %c0_29, %c0_30] : memref<4x5x8x28xf32, #tpu.memory_space<vmem>>, vector<4x1x8x28xf32>
    %34 = vector.shape_cast %33 : vector<4x1x8x28xf32> to vector<4x8x28xf32>
    %35 = vector.shape_cast %34 : vector<4x8x28xf32> to vector<32x28xf32>
    %c0_31 = arith.constant 0 : index
    %c3_32 = arith.constant 3 : index
    %c0_33 = arith.constant 0 : index
    %c0_34 = arith.constant 0 : index
    %36 = vector.load %arg1[%c0_31, %c3_32, %c0_33, %c0_34] : memref<4x5x8x28xf32, #tpu.memory_space<vmem>>, vector<4x1x8x28xf32>
    %37 = vector.shape_cast %36 : vector<4x1x8x28xf32> to vector<4x8x28xf32>
    %38 = vector.shape_cast %37 : vector<4x8x28xf32> to vector<32x28xf32>
    %c0_35 = arith.constant 0 : index
    %c4 = arith.constant 4 : index
    %c0_36 = arith.constant 0 : index
    %c0_37 = arith.constant 0 : index
    %39 = vector.load %arg1[%c0_35, %c4, %c0_36, %c0_37] : memref<4x5x8x28xf32, #tpu.memory_space<vmem>>, vector<4x1x8x28xf32>
    %40 = vector.shape_cast %39 : vector<4x1x8x28xf32> to vector<4x8x28xf32>
    %41 = vector.shape_cast %40 : vector<4x8x28xf32> to vector<32x28xf32>
    %42 = tpu.concatenate %35, %38, %41 in 1 : vector<32x28xf32>, vector<32x28xf32>, vector<32x28xf32> -> vector<32x84xf32>
    %cst_38 = arith.constant dense<0.000000e+00> : vector<32x768xf32>
    %43 = tpu.matmul %42, %0, %cst_38 {dimension_numbers = #tpu.dot_dimension_numbers<[1], [0], [0], [1], [0, 0, 1, 1], [], []>} : vector<32x84xf32>, vector<84x768xf32>, vector<32x768xf32> -> vector<32x768xf32>
    %44 = vector.broadcast %1 : vector<1x768xf32> to vector<32x768xf32>
    %45 = arith.addf %43, %44 : vector<32x768xf32>
    %cst_39 = arith.constant 0.000000e+00 : f32
    %46 = vector.broadcast %cst_39 : f32 to vector<32x768xf32>
    %47 = arith.maximumf %45, %46 : vector<32x768xf32>
    %48 = arith.maximumf %32, %47 : vector<32x768xf32>
    %49 = vector.extract_strided_slice %48 {offsets = [0, 0], sizes = [32, 256], strides = [1, 1]} : vector<32x768xf32> to vector<32x256xf32>
    %50 = vector.extract_strided_slice %48 {offsets = [0, 256], sizes = [32, 256], strides = [1, 1]} : vector<32x768xf32> to vector<32x256xf32>
    %51 = arith.maximumf %49, %50 : vector<32x256xf32>
    %52 = vector.extract_strided_slice %48 {offsets = [0, 512], sizes = [32, 256], strides = [1, 1]} : vector<32x768xf32> to vector<32x256xf32>
    %53 = arith.maximumf %51, %52 : vector<32x256xf32>
    %cst_40 = arith.constant 0.000000e+00 : f32
    %54 = vector.broadcast %cst_40 : f32 to vector<8x256xf32>
    %c32 = arith.constant 32 : index
    %c0_41 = arith.constant 0 : index
    %55 = vector.load %arg11[%c32, %c0_41] : memref<40x256xf32, #tpu.memory_space<vmem>>, vector<8x256xf32>
    tpu.vector_store %arg11[%c32, %c0_41], %54 {strides = array<i32>} : memref<40x256xf32, #tpu.memory_space<vmem>>, vector<8x256xf32>,
    %c0_42 = arith.constant 0 : index
    %c0_43 = arith.constant 0 : index
    %56 = vector.load %arg11[%c0_42, %c0_43] : memref<40x256xf32, #tpu.memory_space<vmem>>, vector<32x256xf32>
    tpu.vector_store %arg11[%c0_42, %c0_43], %53 {strides = array<i32>} : memref<40x256xf32, #tpu.memory_space<vmem>>, vector<32x256xf32>,
    %c0_44 = arith.constant 0 : index
    %c0_45 = arith.constant 0 : index
    %57 = vector.load %arg11[%c0_44, %c0_45] : memref<40x256xf32, #tpu.memory_space<vmem>>, vector<32x256xf32>
    %c1_46 = arith.constant 1 : index
    %c0_47 = arith.constant 0 : index
    %58 = vector.load %arg11[%c1_46, %c0_47] : memref<40x256xf32, #tpu.memory_space<vmem>>, vector<32x256xf32>
    %c2_48 = arith.constant 2 : index
    %c0_49 = arith.constant 0 : index
    %59 = vector.load %arg11[%c2_48, %c0_49] : memref<40x256xf32, #tpu.memory_space<vmem>>, vector<32x256xf32>
    %60 = tpu.concatenate %57, %58, %59 in 1 : vector<32x256xf32>, vector<32x256xf32>, vector<32x256xf32> -> vector<32x768xf32>
    %c0_50 = arith.constant 0 : index
    %c0_51 = arith.constant 0 : index
    %61 = vector.load %arg4[%c0_50, %c0_51] : memref<768x384xf32, #tpu.memory_space<vmem>>, vector<768x384xf32>
    %cst_52 = arith.constant dense<0.000000e+00> : vector<32x384xf32>
    %62 = tpu.matmul %60, %61, %cst_52 {dimension_numbers = #tpu.dot_dimension_numbers<[1], [0], [0], [1], [0, 0, 1, 1], [], []>} : vector<32x768xf32>, vector<768x384xf32>, vector<32x384xf32> -> vector<32x384xf32>
    %c0_53 = arith.constant 0 : index
    %c0_54 = arith.constant 0 : index
    %63 = vector.load %arg5[%c0_53, %c0_54] : memref<1x384xf32, #tpu.memory_space<vmem>>, vector<1x384xf32>
    %64 = vector.broadcast %63 : vector<1x384xf32> to vector<32x384xf32>
    %65 = arith.addf %62, %64 : vector<32x384xf32>
    %cst_55 = arith.constant 0.000000e+00 : f32
    %66 = vector.broadcast %cst_55 : f32 to vector<32x384xf32>
    %67 = arith.maximumf %65, %66 : vector<32x384xf32>
    %68 = vector.shape_cast %67 : vector<32x384xf32> to vector<4x8x384xf32>
    %69 = vector.extract_strided_slice %68 {offsets = [0, 0, 0], sizes = [4, 3, 384], strides = [1, 1, 1]} : vector<4x8x384xf32> to vector<4x3x384xf32>
    %cst_56 = arith.constant dense<0xFF800000> : vector<4x384xf32>
    %70 = vector.multi_reduction <maximumf>, %69, %cst_56 [1] : vector<4x3x384xf32> to vector<4x384xf32>
    %71 = vector.extract_strided_slice %70 {offsets = [0, 0], sizes = [4, 128], strides = [1, 1]} : vector<4x384xf32> to vector<4x128xf32>
    %72 = vector.extract_strided_slice %70 {offsets = [0, 128], sizes = [4, 128], strides = [1, 1]} : vector<4x384xf32> to vector<4x128xf32>
    %73 = arith.maximumf %71, %72 : vector<4x128xf32>
    %74 = vector.extract_strided_slice %70 {offsets = [0, 256], sizes = [4, 128], strides = [1, 1]} : vector<4x384xf32> to vector<4x128xf32>
    %75 = arith.maximumf %73, %74 : vector<4x128xf32>
    %76 = vector.extract_strided_slice %68 {offsets = [0, 3, 0], sizes = [4, 3, 384], strides = [1, 1, 1]} : vector<4x8x384xf32> to vector<4x3x384xf32>
    %cst_57 = arith.constant dense<0xFF800000> : vector<4x384xf32>
    %77 = vector.multi_reduction <maximumf>, %76, %cst_57 [1] : vector<4x3x384xf32> to vector<4x384xf32>
    %78 = vector.extract_strided_slice %77 {offsets = [0, 0], sizes = [4, 128], strides = [1, 1]} : vector<4x384xf32> to vector<4x128xf32>
    %79 = vector.extract_strided_slice %77 {offsets = [0, 128], sizes = [4, 128], strides = [1, 1]} : vector<4x384xf32> to vector<4x128xf32>
    %80 = arith.maximumf %78, %79 : vector<4x128xf32>
    %81 = vector.extract_strided_slice %77 {offsets = [0, 256], sizes = [4, 128], strides = [1, 1]} : vector<4x384xf32> to vector<4x128xf32>
    %82 = arith.maximumf %80, %81 : vector<4x128xf32>
    %83 = tpu.concatenate %75, %82 in 1 : vector<4x128xf32>, vector<4x128xf32> -> vector<4x256xf32>
    %c0_58 = arith.constant 0 : index
    %c0_59 = arith.constant 0 : index
    %84 = vector.load %arg6[%c0_58, %c0_59] : memref<256x256xf32, #tpu.memory_space<vmem>>, vector<256x256xf32>
    %cst_60 = arith.constant dense<0.000000e+00> : vector<4x256xf32>
    %85 = tpu.matmul %83, %84, %cst_60 {dimension_numbers = #tpu.dot_dimension_numbers<[1], [0], [0], [1], [0, 0, 1, 1], [], []>} : vector<4x256xf32>, vector<256x256xf32>, vector<4x256xf32> -> vector<4x256xf32>
    %c0_61 = arith.constant 0 : index
    %c0_62 = arith.constant 0 : index
    %86 = vector.load %arg7[%c0_61, %c0_62] : memref<1x256xf32, #tpu.memory_space<vmem>>, vector<1x256xf32>
    %87 = vector.broadcast %86 : vector<1x256xf32> to vector<4x256xf32>
    %88 = arith.addf %85, %87 : vector<4x256xf32>
    %c0_63 = arith.constant 0 : index
    %c0_64 = arith.constant 0 : index
    %89 = vector.load %arg8[%c0_63, %c0_64] : memref<256x10xf32, #tpu.memory_space<vmem>>, vector<256x10xf32>
    %cst_65 = arith.constant dense<0.000000e+00> : vector<4x10xf32>
    %90 = tpu.matmul %88, %89, %cst_65 {dimension_numbers = #tpu.dot_dimension_numbers<[1], [0], [0], [1], [0, 0, 1, 1], [], []>} : vector<4x256xf32>, vector<256x10xf32>, vector<4x10xf32> -> vector<4x10xf32>
    %c0_66 = arith.constant 0 : index
    %c0_67 = arith.constant 0 : index
    %91 = vector.load %arg9[%c0_66, %c0_67] : memref<1x10xf32, #tpu.memory_space<vmem>>, vector<1x10xf32>
    %92 = vector.broadcast %91 : vector<1x10xf32> to vector<4x10xf32>
    %93 = arith.addf %90, %92 : vector<4x10xf32>
    %c0_68 = arith.constant 0 : index
    %c0_69 = arith.constant 0 : index
    %c0_70 = arith.constant 0 : index
    %94 = vector.load %arg10[%c0_68, %c0_69, %c0_70] : memref<1x4x10xf32, #tpu.memory_space<vmem>>, vector<1x4x10xf32>
    %95 = vector.shape_cast %94 : vector<1x4x10xf32> to vector<4x10xf32>
    %96 = vector.shape_cast %93 : vector<4x10xf32> to vector<1x4x10xf32>
    tpu.vector_store %arg10[%c0_68, %c0_69, %c0_70], %96 {strides = array<i32>} : memref<1x4x10xf32, #tpu.memory_space<vmem>>, vector<1x4x10xf32>,
    return
  }
  func.func @transform_0(%arg0: i32) -> (i32, i32, i32, i32) {
    %c0_i32 = arith.constant 0 : i32
    %c0_i32_0 = arith.constant 0 : i32
    %c0_i32_1 = arith.constant 0 : i32
    %c0_i32_2 = arith.constant 0 : i32
    return %arg0, %c0_i32, %c0_i32_0, %c0_i32_1 : i32, i32, i32, i32
  }
  func.func @transform_1(%arg0: i32) -> (i32, i32) {
    %c0_i32 = arith.constant 0 : i32
    %c0_i32_0 = arith.constant 0 : i32
    %c0_i32_1 = arith.constant 0 : i32
    return %c0_i32, %c0_i32_0 : i32, i32
  }
  func.func @transform_2(%arg0: i32) -> (i32, i32) {
    %c0_i32 = arith.constant 0 : i32
    %c0_i32_0 = arith.constant 0 : i32
    %c0_i32_1 = arith.constant 0 : i32
    return %c0_i32, %c0_i32_0 : i32, i32
  }
  func.func @transform_3(%arg0: i32) -> (i32, i32) {
    %c0_i32 = arith.constant 0 : i32
    %c0_i32_0 = arith.constant 0 : i32
    %c0_i32_1 = arith.constant 0 : i32
    return %c0_i32, %c0_i32_0 : i32, i32
  }
  func.func @transform_4(%arg0: i32) -> (i32, i32) {
    %c0_i32 = arith.constant 0 : i32
    %c0_i32_0 = arith.constant 0 : i32
    %c0_i32_1 = arith.constant 0 : i32
    return %c0_i32, %c0_i32_0 : i32, i32
  }
  func.func @transform_5(%arg0: i32) -> (i32, i32) {
    %c0_i32 = arith.constant 0 : i32
    %c0_i32_0 = arith.constant 0 : i32
    %c0_i32_1 = arith.constant 0 : i32
    return %c0_i32, %c0_i32_0 : i32, i32
  }
  func.func @transform_6(%arg0: i32) -> (i32, i32) {
    %c0_i32 = arith.constant 0 : i32
    %c0_i32_0 = arith.constant 0 : i32
    %c0_i32_1 = arith.constant 0 : i32
    return %c0_i32, %c0_i32_0 : i32, i32
  }
  func.func @transform_7(%arg0: i32) -> (i32, i32) {
    %c0_i32 = arith.constant 0 : i32
    %c0_i32_0 = arith.constant 0 : i32
    %c0_i32_1 = arith.constant 0 : i32
    return %c0_i32, %c0_i32_0 : i32, i32
  }
  func.func @transform_8(%arg0: i32) -> (i32, i32) {
    %c0_i32 = arith.constant 0 : i32
    %c0_i32_0 = arith.constant 0 : i32
    %c0_i32_1 = arith.constant 0 : i32
    return %c0_i32, %c0_i32_0 : i32, i32
  }
  func.func @transform_9(%arg0: i32) -> (i32, i32, i32) {
    %c0_i32 = arith.constant 0 : i32
    %c0_i32_0 = arith.constant 0 : i32
    %c0_i32_1 = arith.constant 0 : i32
    return %arg0, %c0_i32, %c0_i32_0 : i32, i32, i32
  }
}

</mosaic_0001>

<bundles_post_ra>
// kernel: mnist_featext_forward.1
= control target key start
LH: loop header
LB: loop body
LE: loop exit
PB: predicated region body
PF: predicated region fallthrough
CT: control target
= control target key end

     0   :  { %14 = vsyncpa [#allocation4], 0  ;;  %s5669_s0 = inlined_call_operand.vmem [shape: f32[8,5,8,28], index: 0, kind: input, shape index: {}]   ;;  %s5670_s1 = inlined_call_operand.vmem [shape: f32[84,768], index: 1, kind: input, shape index: {}]   ;;  %s5671_s2 = inlined_call_operand.hbm [shape: f32[1,768], index: 2, kind: input, shape index: {}]   ;;  %s5672_s3 = inlined_call_operand.hbm [shape: f32[768,384], index: 3, kind: input, shape index: {}]   ;;  %s5673_s4 = inlined_call_operand.hbm [shape: f32[1,384], index: 4, kind: input, shape index: {}]   ;;  %s5674_s5 = inlined_call_operand.vmem [shape: f32[256,256], index: 5, kind: input, shape index: {}]   ;;  %s5675_s6 = inlined_call_operand.hbm [shape: f32[1,256], index: 6, kind: input, shape index: {}]   ;;  %s5676_s7 = inlined_call_operand.vmem [shape: f32[256,10], index: 7, kind: input, shape index: {}]   ;;  %s5677_s8 = inlined_call_operand.hbm [shape: f32[1,10], index: 8, kind: input, shape index: {}]   ;;  %s5678_s9 = inlined_call_operand.hbm [shape: f32[2,4,10], index: 9, kind: output, shape index: {}]  }
   0x1   :  { %15 = vsyncpa [#allocation7], 0 }
   0x2   :  { %16 = vsyncpa [#allocation10], 0 }
   0x3   :  { %17 = vsyncpa [#allocation5], 0 }
   0x4   :  { %19 = vsyncpa [#allocation5 + $0x1], 0  ;;  %s3775_s30 = smov 0   ;;  %s3777_s10 = smov 0  }
   0x5   :  { %s3779_s11 = smov 0   ;;  %s3781_s12 = smov 0  }
   0x6 LB: > { %s3796_s13 = sadd.s32 4294967295, %s3712_s12   ;;  %s3155_s14 = sadd.s32 4294967294, %s3712_s12   ;;  %s3712_s12 = sphi %s3781_s12, %s5827_s12   ;;  %s3708_s11 = sphi %s3779_s11, %s5826_s11   ;;  %s3704_s10 = sphi %s3777_s10, %s5825_s10   ;;  %s3700_s30 = sphi %s3775_s30, %s5824_s30  }
   0x7   : > { %s3800_s15 = sadd.s32 1, %s3712_s12   ;;  %s226_s16 = sadd.s32 1, %s3708_s11 }
   0x8   : > { %s223_s17 = ssub.s32 %s3712_s12, %s3800_s15  ;;  %p236_p0 = scmp.ne.s32.totalorder %s3708_s11, %s3704_s10 }
   0x9   : > { %p224_p1 = scmp.eq.s32.totalorder %s223_s17, 0  ;;  %p237_p2 = scmp.eq.s32.totalorder %s3796_s13, 1 }
   0xa   : > { %p242_p3 = scmp.ne.s32.totalorder %s3704_s10, %s3700_s30  ;;  %p243_p4 = scmp.eq.s32.totalorder %s3155_s14, 1 }
   0xb   : > { %s3811_s18 = scalar_select %p224_p1, %s3708_s11, %s226_s16  }
   0xc   : > { %p3813_p5 = por %p237_p2, %p236_p0  ;;  %p3817_p6 = por %p243_p4, %p242_p3 }
   0xd   : > { %5726 = sst [smem:[#allocation17_spill]] %s3811_s18  ;;  %p3156_p7 = scmp.ge.s32.totalorder %s3712_s12, 1 }
   0xe   : > { %s5727_s19 = scalar_select %p3813_p5, 1, 0 }
   0xf   : > { %s5728_s20 = scalar_select %p3817_p6, 1, 0 }
  0x10   : > { %p250_p8 = scmp.lt.s32.totalorder %s3712_s12, 3  ;;  %p5679_p9 = scmp.eq.s32.totalorder %s3796_s13, 0 }
  0x11   : > { %s3714_s22 = smov [#allocation6]   ;;  %s3715_s25 = smov [#allocation9]  }
  0x12   : > { %p3824_p10 = pnand %p3156_p7, %p250_p8  ;;  %s276_s23 = sshll.u32 %s3714_s22, 4  ;;  %s277_s23 = int_to_ptr.vmem [resolvable:$true] %s276_s23 }
  0x13   : > { %s304_s26 = sshll.u32 %s3715_s25, 4  ;;  %s3716_s27 = smov [#allocation3]   ;;  %s305_s26 = int_to_ptr.vmem [resolvable:$true] %s304_s26 }
  0x14   : > { %s5729_s21 = scalar_select %p3824_p10, 1, 0 }
  0x15   : > { %p3437_p11 = pneg %p3824_p10  ;;  %s266_s28 = sshll.u32 %s3716_s27, 4  ;;  %s267_s28 = int_to_ptr.vmem [resolvable:$true] %s266_s28 }
  0x16   : > { %s3521_s14 = scalar_lea.vmem %s277_s23, 36864  ;;  %p3529_p3 = scmp.lt.s32.totalorder %s277_s23, %s277_s23 }
  0x17   : > { %p3832_p12 = pnand %p5679_p9, %p3437_p11  ;;  %p3522_p0 = scmp.ne.s32.totalorder %s277_s23, %s3521_s14 }
  0x18   : > { %p3530_p4 = scmp.lt.s32.totalorder %s3521_s14, %s3521_s14 }
  0x19   : > { %p3838_p13 = pneg %p3832_p12 }
  0x1a   : > { %p3531_p7 = por %p3530_p4, %p3529_p3 }
  0x1b   : > { %p3524_p1 = pnand %p3522_p0, %p3838_p13 }
  0x1d   : > { %p3525_p2 = pneg %p3524_p1 }
  0x1f   : > { %p3532_p8 = pnand %p3531_p7, %p3525_p2 }
  0x21   : > { %3535 = shalt.err (!%p3532_p8)
}
  0x22   : > { %s3717_s16 = smov 384   ;;  %s3718_s17 = smov 24  }
  0x23   : > { %3443 = dma.hbm_to_vmem [thread:$0]  (!%p3832_p12), %s5672_s3, 36864, %s277_s23, [#allocation7], %s3717_s16, %s3717_s16, %s3718_s17  }
  0x24   : > { %s3547_s27 = scalar_lea.vmem %s305_s26, 32  ;;  %p3555_p1 = scmp.lt.s32.totalorder %s305_s26, %s305_s26 }
  0x25   : > { %p3548_p11 = scmp.ne.s32.totalorder %s305_s26, %s3547_s27  ;;  %p3556_p6 = scmp.lt.s32.totalorder %s3547_s27, %s3547_s27 }
  0x27   : > { %p3550_p9 = pnand %p3548_p11, %p3838_p13  ;;  %p3557_p5 = por %p3556_p6, %p3555_p1 }
  0x29   : > { %p3551_p0 = pneg %p3550_p9 }
  0x2b   : > { %p3558_p3 = pnand %p3557_p5, %p3551_p0 }
  0x2d   : > { %3561 = shalt.err (!%p3558_p3)
}
  0x2e   : > { %3449 = dma.hbm_to_vmem [thread:$0]  (!%p3832_p12), %s5675_s6, 32, %s305_s26, [#allocation10]  }
  0x2f   : > { %s3573_s22 = scalar_lea.vmem %s267_s28, 96  ;;  %p3581_p8 = scmp.lt.s32.totalorder %s267_s28, %s267_s28 }
  0x30   : > { %p3574_p2 = scmp.ne.s32.totalorder %s267_s28, %s3573_s22  ;;  %p3582_p9 = scmp.lt.s32.totalorder %s3573_s22, %s3573_s22 }
  0x32   : > { %p3576_p4 = pnand %p3574_p2, %p3838_p13  ;;  %p3583_p11 = por %p3582_p9, %p3581_p8 }
  0x34   : > { %p3577_p7 = pneg %p3576_p4 }
  0x36   : > { %p3584_p10 = pnand %p3583_p11, %p3577_p7 }
  0x38   : > { %3587 = shalt.err (!%p3584_p10)
}
  0x39   : > { %3440 = dma.hbm_to_vmem [thread:$0]  (!%p3832_p12), %s5671_s2, 96, %s267_s28, [#allocation4]  }
  0x3a   : > { %s3719_s18 = smov [#allocation8]   ;;  %s3720_s17 = smov [#allocation11]  }
  0x3b   : > { %s290_s26 = sshll.u32 %s3719_s18, 4  ;;  %s318_s25 = sshll.u32 %s3720_s17, 4  ;;  %s291_s26 = int_to_ptr.vmem [resolvable:$true] %s290_s26  ;;  %s319_s25 = int_to_ptr.vmem [resolvable:$true] %s318_s25 }
  0x3c   : > { %s3599_s27 = scalar_lea.vmem %s291_s26, 48  ;;  %s3606_s14 = scalar_lea.vmem %s291_s26, 64 }
  0x3d   : > { %p3600_p5 = scmp.ne.s32.totalorder %s291_s26, %s3599_s27  ;;  %p3607_p1 = scmp.lt.s32.totalorder %s291_s26, %s291_s26 }
  0x3e   : > { %p3608_p10 = scmp.lt.s32.totalorder %s3606_s14, %s3599_s27 }
  0x3f   : > { %p3602_p6 = pnand %p3600_p5, %p3838_p13 }
  0x40   : > { %p3609_p3 = por %p3608_p10, %p3607_p1 }
  0x41   : > { %p3603_p0 = pneg %p3602_p6 }
  0x43   : > { %p3610_p2 = pnand %p3609_p3, %p3603_p0 }
  0x45   : > { %3613 = shalt.err (!%p3610_p2)
}
  0x46   : > { %3446 = dma.hbm_to_vmem [thread:$0]  (!%p3832_p12), %s5673_s4, 48, %s291_s26, [#allocation7]  }
  0x47   : > { %s3625_s23 = scalar_lea.vmem %s319_s25, 16  ;;  %s3632_s16 = scalar_lea.vmem %s319_s25, 32 }
  0x48   : > { %p3626_p4 = scmp.ne.s32.totalorder %s319_s25, %s3625_s23  ;;  %p3633_p9 = scmp.lt.s32.totalorder %s319_s25, %s319_s25 }
  0x49   : > { %p3634_p11 = scmp.lt.s32.totalorder %s3632_s16, %s3625_s23 }
  0x4a   : > { %p3628_p7 = pnand %p3626_p4, %p3838_p13 }
  0x4b   : > { %p3635_p5 = por %p3634_p11, %p3633_p9 }
  0x4c   : > { %p3629_p8 = pneg %p3628_p7 }
  0x4e   : > { %p3636_p6 = pnand %p3635_p5, %p3629_p8 }
  0x50   : > { %3639 = shalt.err (!%p3636_p6)
}
  0x51   : > { %3452 = dma.hbm_to_vmem [thread:$0]  (!%p3832_p12), %s5677_s8, 16, %s319_s25, [#allocation10]  }
  0x52   : > { %p5732_p0 = scmp.ne.s32.totalorder %s5729_s21, 0 }
  0x54   : > { %341 = sbr.rel (%p5732_p0) target bundleno = 1293 (0x50d), region = 56 }
  0x59   : > { %p5733_p1 = scmp.eq.s32.totalorder %s3796_s13, 0 }
  0x5b   : > { %3683 = dma.done.wait (%p5733_p1), [#allocation4], 96   ;;  %p5734_p13 = pmov %p5733_p1 }
  0x5c   : > { %p5735_p10 = pmov %p5733_p1 }
  0x5d   : > { %3685 = vsyncadd (%p5734_p13), [#allocation4], 4294967200 }
  0x5e   : > { %3687 = dma.done.wait (%p5735_p10), [#allocation7], 36912   ;;  %p5736_p3 = pmov %p5733_p1 }
  0x5f   : > { %p5737_p2 = pmov %p5733_p1 }
  0x60   : > { %3689 = vsyncadd (%p5736_p3), [#allocation7], 4294930384 }
  0x61   : > { %3691 = dma.done.wait (%p5737_p2), [#allocation10], 48   ;;  %p5738_p12 = pmov %p5733_p1 }
  0x62   : > { %s3170_s21 = sshll.u32 %s3796_s13, 2  ;;  %v5682_v0 = vmov 0.0   ;;  %vm568_vm0 = vcmask 1043456   ;;  %v3904_v1 = vld [vmem:[%s5670_s1 + $0x1e8] sm:$0xf]  ;;  %s3722_s18 = smov 28  }
  0x63   : > { %3693 = vsyncadd (%p5738_p12), [#allocation10], 4294967248  ;;  %p395_p4 = scmp.lt.s32.totalorder %s3170_s21, 7  ;;  %651 = vmatprep.mubr.f32.mxu0 %v5682_v0  ;;  %1630 = vst [vmem:[#allocation2 + $0x20] sm:$0xff] %v5682_v0  ;;  %740 = vmatprep.mubr.f32.mxu1 %v5682_v0  ;;  %v3909_v2 = vld [vmem:[%s5670_s1 + $0x1f8] sm:$0xf] }
  0x64   : > { %1631 = vst [vmem:[#allocation2 + $0x40] sm:$0xff] %v5682_v0  ;;  %5739 = vst [vmem:[#allocation18_spill] sm:$0xff] %v3904_v1  ;;  %v3914_v3 = vld [vmem:[%s5670_s1 + $0x1e0] sm:$0xf]  ;;  %3180 = vmatprep.subr.msk.mxu0 %vm568_vm0, %v3904_v1  ;;  %3186 = vmatprep.subr.msk.mxu1 %vm568_vm0, %v3909_v2  ;;  %s3723_s17 = smov 56   ;;  %v3956_v11 = vld [vmem:[%s5670_s1 + $0x1b8] sm:$0xff] }
  0x65   : > { %s5829_s21 = smov (!%p395_p4, %s3170_s21), 7  ;;  %5740 = vst [vmem:[#allocation19_spill] sm:$0xff] %v3914_v3  ;;  %3181 = vmatpush1.msk.msra.mxu0 %vm568_vm0, %v3914_v3  ;;  %v3951_v10 = vld [vmem:[%s5670_s1 + $0x1f0] sm:$0xf]  ;;  %5741 = vst [vmem:[#allocation20_spill] sm:$0xff] %v3956_v11  ;;  %v3961_v12 = vld [vmem:[%s5670_s1 + $0x1c8] sm:$0xff] }
  0x66   : > { %s3414_s24 = smul.u32 40, %s5829_s21  ;;  %3187 = vmatpush1.msk.msra.mxu1 %vm568_vm0, %v3951_v10  ;;  %599 = vmatprep.subr.mxu0 %v3956_v11  ;;  %v3969_v13 = vld [vmem:[%s5670_s1 + $0x1b0] sm:$0xff]  ;;  %v3974_v14 = vld [vmem:[%s5670_s1 + $0x1c0] sm:$0xff]  ;;  %v3979_v15 = vld [vmem:[%s5670_s1 + $0x188] sm:$0xff]  ;;  %vm514_vm1 = vcmask 228352   ;;  %vm519_vm2 = vcmask 457728  }
  0x67   : > { %5742 = vst [vmem:[#allocation21_spill] sm:$0xff] %v3969_v13  ;;  %5743 = vst [vmem:[#allocation22_spill] sm:$0xff] %v3979_v15  ;;  %688 = vmatprep.subr.mxu1 %v3961_v12  ;;  %600 = vmatpush1.msra.mxu0 %v3969_v13  ;;  %v3986_v16 = vld [vmem:[%s5670_s1 + $0x198] sm:$0xff]  ;;  %v3991_v17 = vld [vmem:[%s5670_s1 + $0x180] sm:$0xff]  ;;  %vm555_vm3 = vcmask 687104   ;;  %vm1672_vm4 = vcmask 1046528  }
  0x68   : > { %s3899_s25 = scalar_lea.vmem %s5669_s0, %s3414_s24  ;;  %5744 = vst [vmem:[#allocation23_spill] sm:$0xff] %v3991_v17  ;;  %v4000_v18 = vld [vmem:[%s5670_s1 + $0x190] sm:$0xff]  ;;  %v4005_v19 = vld [vmem:[%s5670_s1 + $0x158] sm:$0xff]  ;;  %689 = vmatpush1.msra.mxu1 %v3974_v14  ;;  %601 = vmatprep.subr.mxu0 %v3979_v15  ;;  %v4020_v22 = vld [vmem:[%s5670_s1 + $0x168] sm:$0xff]  ;;  %vm1703_vm5 = vcmask 1045504   ;;  %vm2569_vm6 = vcmask 1042432  }
  0x69   : > { %v3917_v4 = vld [vmem:[%s3899_s25 + $0x8] sm:$0xff]  ;;  %v3920_v5 = vld [vmem:[%s3899_s25 + $0x30] sm:$0xff]  ;;  %v3934_v7 = vld [vmem:[%s3899_s25 + $0x38] sm:$0xff]  ;;  %5745 = vst [vmem:[#allocation24_spill] sm:$0xff] %v4005_v19  ;;  %690 = vmatprep.subr.mxu1 %v3986_v16  ;;  %602 = vmatpush1.msra.mxu0 %v3991_v17  ;;  %vm2662_vm7 = vcmask 1045507   ;;  %vm2759_vm8 = vcmask 1041409  }
  0x6a   : > { %486 = vrot.lane.b32.xlu0 %v3917_v4, %s3722_s18  ;;  %488 = vrot.lane.b32.xlu1 %v3920_v5, %s3722_s18  ;;  %v3931_v6 = vld [vmem:[%s3899_s25 + $0x10] sm:$0xff]  ;;  %v3943_v8 = vld [vmem:[%s3899_s25 + $0x58] sm:$0xff]  ;;  %vm2761_vm9 = vcmask 1042434   ;;  %vm2763_vm10 = vcmask 1043459   ;;  %vm3030_vm11 = vcmask 76800   ;;  %p5821_p8 = scmp.ne.s32.totalorder %s5727_s19, 0 }
  0x6b   : > { %v3946_v9 = vld [vmem:[%s3899_s25 + $0x60] sm:$0xff]  ;;  %v4011_v21 = vld [vmem:[%s3899_s25 + $0x88] sm:$0xff]  ;;  %v4025_v23 = vld [vmem:[%s5670_s1 + $0x150] sm:$0xff]  ;;  %691 = vmatpush1.msra.mxu1 %v4000_v18  ;;  %603 = vmatprep.subr.mxu0 %v4005_v19  ;;  %s3724_s26 = smov [#allocation12]  }
  0x6c   : > { %v4008_v20 = vld [vmem:[%s3899_s25 + $0x80] sm:$0xff]  ;;  %5746 = vst [vmem:[#allocation25_spill] sm:$0xff] %v4025_v23  ;;  %v4037_v25 = vld [vmem:[%s5670_s1 + $0x128] sm:$0xff]  ;;  %v4046_v26 = vld [vmem:[%s5670_s1 + $0x138] sm:$0xff]  ;;  %692 = vmatprep.subr.mxu1 %v4020_v22  ;;  %604 = vmatpush1.msra.mxu0 %v4025_v23  ;;  %s3644_s27 = sshll.u32 %s3724_s26, 4  ;;  %s3645_s27 = int_to_ptr.vmem [resolvable:$false] %s3644_s27 }
  0x6d   : > { %v4032_v24 = vld [vmem:[%s5670_s1 + $0x160] sm:$0xff]  ;;  %5747 = vst [vmem:[#allocation26_spill] sm:$0xff] %v4037_v25  ;;  %v4054_v28 = vld [vmem:[%s3899_s25 + $0x18] sm:$0xff]  ;;  %605 = vmatprep.subr.mxu0 %v4037_v25  ;;  %v4063_v29 = vld [vmem:[%s5670_s1 + $0x130] sm:$0xff] }
  0x6e   : > { %502 = vrot.lane.b32.xlu0 %v3931_v6, %s3723_s17  ;;  %504 = vrot.lane.b32.xlu1 %v3934_v7, %s3723_s17  ;;  %v4051_v27 = vld [vmem:[%s5670_s1 + $0x120] sm:$0xff]  ;;  %v4068_v30 = vld [vmem:[%s5670_s1 + $0xf8] sm:$0xff] }
  0x6f   : > { %5748 = vst [vmem:[#allocation27_spill] sm:$0xff] %v4051_v27  ;;  %693 = vmatpush1.msra.mxu1 %v4032_v24  ;;  %5749 = vst [vmem:[#allocation28_spill] sm:$0xff] %v4068_v30  ;;  %606 = vmatpush1.msra.mxu0 %v4051_v27  ;;  %v4075_v31 = vld [vmem:[%s5670_s1 + $0x108] sm:$0xff]  ;;  %v4080_v32 = vld [vmem:[%s5670_s1 + $0xf0] sm:$0xff] }
  0x70   : > { %694 = vmatprep.subr.mxu1 %v4046_v26  ;;  %5750 = vst [vmem:[#allocation29_spill] sm:$0xff] %v4080_v32  ;;  %v4089_v33 = vld [vmem:[%s5670_s1 + $0x100] sm:$0xff]  ;;  %v4094_v34 = vld [vmem:[%s5670_s1 + $0xc8] sm:$0xff]  ;;  %607 = vmatprep.subr.mxu0 %v4068_v30  ;;  %v4104_v36 = vld [vmem:[%s5670_s1 + $0xd8] sm:$0xff] }
  0x71   : > { %5751 = vst [vmem:[#allocation30_spill] sm:$0xff] %v4094_v34  ;;  %v3199_v35 = vld [vmem:[%s3899_s25 + $0x40] sm:$0xff]  ;;  %695 = vmatpush1.msra.mxu1 %v4063_v29  ;;  %608 = vmatpush1.msra.mxu0 %v4080_v32  ;;  %v4116_v38 = vld [vmem:[%s5670_s1 + $0xd0] sm:$0xff]  ;;  %v4121_v39 = vld [vmem:[%s5670_s1 + $0x98] sm:$0xff] }
  0x72   : > { %490 = vrot.lane.b32.xlu0 %v3943_v8, %s3722_s18  ;;  %506 = vrot.lane.b32.xlu1 %v3946_v9, %s3723_s17  ;;  %v4109_v37 = vld [vmem:[%s5670_s1 + $0xc0] sm:$0xff]  ;;  %5753 = vst [vmem:[#allocation32_spill] sm:$0xff] %v4121_v39  ;;  %v4129_v40 = vld [vmem:[%s5670_s1 + $0xa8] sm:$0xff] }
  0x73   : > { %696 = vmatprep.subr.mxu1 %v4075_v31  ;;  %5752 = vst [vmem:[#allocation31_spill] sm:$0xff] %v4109_v37  ;;  %609 = vmatprep.subr.mxu0 %v4094_v34  ;;  %v4134_v41 = vld [vmem:[%s5670_s1 + $0x90] sm:$0xff]  ;;  %v3200_v42 = vld [vmem:[%s3899_s25 + $0x68] sm:$0xff]  ;;  %v4144_v43 = vld [vmem:[%s5670_s1 + $0xa0] sm:$0xff] }
  0x74   : > { %697 = vmatpush1.msra.mxu1 %v4089_v33  ;;  %5754 = vst [vmem:[#allocation33_spill] sm:$0xff] %v4134_v41  ;;  %610 = vmatpush1.msra.mxu0 %v4109_v37  ;;  %v4149_v44 = vld [vmem:[%s5670_s1 + $0x68] sm:$0xff]  ;;  %v4156_v45 = vld [vmem:[%s5670_s1 + $0x78] sm:$0xff]  ;;  %v4161_v46 = vld [vmem:[%s5670_s1 + $0x60] sm:$0xff] }
  0x75   : > { %698 = vmatprep.subr.mxu1 %v4104_v36  ;;  %611 = vmatprep.subr.mxu0 %v4121_v39  ;;  %5755 = vst [vmem:[#allocation34_spill] sm:$0xff] %v4149_v44  ;;  %5756 = vst [vmem:[#allocation35_spill] sm:$0xff] %v4156_v45  ;;  %v4169_v47 = vld [vmem:[%s5670_s1 + $0x70] sm:$0xff]  ;;  %v4174_v48 = vld [vmem:[%s5670_s1 + $0x38] sm:$0xff] }
  0x76   : > { %492 = vrot.lane.b32.xlu0 %v4008_v20, %s3722_s18  ;;  %508 = vrot.lane.b32.xlu1 %v4011_v21, %s3723_s17  ;;  %5757 = vst [vmem:[#allocation36_spill] sm:$0xff] %v4161_v46  ;;  %5758 = vst [vmem:[#allocation37_spill] sm:$0xff] %v4169_v47  ;;  %v3201_v49 = vld [vmem:[%s3899_s25 + $0x90] sm:$0xff]  ;;  %v4184_v50 = vld [vmem:[%s5670_s1 + $0x48] sm:$0xff] }
  0x77   : > { %699 = vmatpush1.msra.mxu1 %v4116_v38  ;;  %612 = vmatpush1.msra.mxu0 %v4134_v41  ;;  %5759 = vst [vmem:[#allocation38_spill] sm:$0xff] %v4174_v48  ;;  %5760 = vst [vmem:[#allocation39_spill] sm:$0xff] %v4184_v50  ;;  %v4189_v51 = vld [vmem:[%s5670_s1 + $0x30] sm:$0xff]  ;;  %v4196_v52 = vld [vmem:[%s5670_s1 + $0x40] sm:$0xff] }
  0x78   : > { %700 = vmatprep.subr.mxu1 %v4129_v40  ;;  %613 = vmatprep.subr.mxu0 %v4149_v44  ;;  %5761 = vst [vmem:[#allocation40_spill] sm:$0xff] %v4196_v52  ;;  %v4201_v53 = vld [vmem:[%s5670_s1 + $0x8] sm:$0xff]  ;;  %v4209_v54 = vld [vmem:[%s5670_s1 + $0x18] sm:$0xff]  ;;  %v4214_v55 = vld [vmem:[%s5670_s1] sm:$0xff] }
  0x79   : > { %701 = vmatpush1.msra.mxu1 %v4144_v43  ;;  %614 = vmatpush1.msra.mxu0 %v4161_v46  ;;  %5762 = vst [vmem:[#allocation41_spill] sm:$0xff] %v4209_v54  ;;  %v3220_v56 = vld [vmem:[%s3899_s25 + $0x20] sm:$0xff]  ;;  %v4224_v57 = vld [vmem:[%s5670_s1 + $0x10] sm:$0xff]  ;;  %v4229_v58 = vld [vmem:[%s5670_s1 + $0x208] sm:$0xf] }
  0x7a   : > { %883 = vrot.lane.b32.xlu0 %v3931_v6, %s3722_s18  ;;  %899 = vrot.lane.b32.xlu1 %v4054_v28, %s3723_s17  ;;  %5763 = vst [vmem:[#allocation42_spill] sm:$0xff] %v4224_v57  ;;  %v3221_v59 = vld [vmem:[%s3899_s25 + $0x48] sm:$0xff]  ;;  %v3222_v60 = vld [vmem:[%s3899_s25 + $0x70] sm:$0xff] }
  0x7b   : > { %702 = vmatprep.subr.mxu1 %v4156_v45  ;;  %615 = vmatprep.subr.mxu0 %v4174_v48  ;;  %v3223_v61 = vld [vmem:[%s3899_s25 + $0x98] sm:$0xff]  ;;  %v4441_v45 = vld [vmem:[%s5670_s1 + $0x20] sm:$0xff] }
  0x7c   : > { %703 = vmatpush1.msra.mxu1 %v4169_v47  ;;  %616 = vmatpush1.msra.mxu0 %v4189_v51 }
  0x7d   : > { %704 = vmatprep.subr.mxu1 %v4184_v50  ;;  %617 = vmatprep.subr.mxu0 %v4201_v53 }
  0x7e   : > { %885 = vrot.lane.b32.xlu0 %v3934_v7, %s3722_s18  ;;  %901 = vrot.lane.b32.xlu1 %v3199_v35, %s3723_s17 }
  0x7f   : > { %705 = vmatpush1.msra.mxu1 %v4196_v52  ;;  %618 = vmatpush1.msra.mxu0 %v4214_v55 }
  0x80   : > { %706 = vmatprep.subr.mxu1 %v4209_v54  ;;  %3192 = vmatprep.subr.msk.mxu0 %vm568_vm0, %v4229_v58  ;;  %v4343_v54 = vld [vmem:[%s5670_s1 + $0x110] sm:$0xff] }
  0x81   : > { %707 = vmatpush1.msra.mxu1 %v4224_v57  ;;  %v4335_v57 = vld [vmem:[%s5670_s1 + $0x118] sm:$0xff] }
  0x82   : > { %887 = vrot.lane.b32.xlu0 %v3946_v9, %s3722_s18  ;;  %903 = vrot.lane.b32.xlu1 %v3200_v42, %s3723_s17 }
  0x83   : > { %3202 = vmatprep.subr.msk.mxu1 %vm568_vm0, %v3904_v1  ;;  %v470_v1 = vld [vmem:[%s3899_s25 + $0x50] sm:$0xff] }
  0x86   : > { %889 = vrot.lane.b32.xlu0 %v4011_v21, %s3722_s18  ;;  %905 = vrot.lane.b32.xlu1 %v3201_v49, %s3723_s17 }
  0x8a   : > { %1251 = vrot.lane.b32.xlu0 %v4054_v28, %s3722_s18  ;;  %1267 = vrot.lane.b32.xlu1 %v3220_v56, %s3723_s17  ;;  %v468_v28 = vld [vmem:[%s3899_s25] sm:$0xff] }
  0x8e   : > { %1253 = vrot.lane.b32.xlu0 %v3199_v35, %s3722_s18  ;;  %1269 = vrot.lane.b32.xlu1 %v3221_v59, %s3723_s17  ;;  %v469_v59 = vld [vmem:[%s3899_s25 + $0x28] sm:$0xff] }
  0x92   : > { %1255 = vrot.lane.b32.xlu0 %v3200_v42, %s3722_s18  ;;  %1271 = vrot.lane.b32.xlu1 %v3222_v60, %s3723_s17  ;;  %v4256_v42 = vld [vmem:[%s5670_s1 + $0x200] sm:$0xf] }
  0x96   : > { %1257 = vrot.lane.b32.xlu0 %v3201_v49, %s3722_s18  ;;  %1273 = vrot.lane.b32.xlu1 %v3223_v61, %s3723_s17  ;;  %v4264_v61 = vld [vmem:[%s5670_s1 + $0x1d8] sm:$0xff]  ;;  %s391_s18 = sand.u32 1, %s3704_s10  }
  0x97   : > { %s3169_s17 = sshll.u32 %s391_s18, 2  ;;  %s3033_s24 = scalar_lea.sflag [#allocation5], %s391_s18 }
  0x98   : > { %s393_s22 = scalar_lea.vmem [#allocation12], %s3169_s17 }
  0x99   : > { %s3046_s28 = sshll.u32 %s393_s22, 4  ;;  %s3047_s28 = int_to_ptr.vmem [resolvable:$true] %s3046_s28 }
  0x9a   : > { %s3640_s29 = scalar_lea.vmem %s3047_s28, 64  ;;  %p3647_p5 = scmp.lt.s32.totalorder %s3047_s28, %s3645_s27 }
  0x9b   : > { %p3641_p7 = scmp.ne.s32.totalorder %s3047_s28, %s3640_s29 }
  0x9d   : > { %p3642_p9 = pnand %p3641_p7, %p5821_p8 }
  0x9f   : > { %p3643_p11 = pneg %p3642_p9 }
  0xdc   : > { %v487_v62 = vpop.permute.xlu0 %486  ;;  %v489_v63 = vpop.permute.xlu1 %488 }
  0xdd   : > { %v515_v35 = vsel %vm514_vm1, %v468_v28, %v487_v62  ;;  %v4273_v62 = vld [vmem:[%s5670_s1 + $0x1d0] sm:$0xff]  ;;  %v516_v28 = vsel %vm514_vm1, %v469_v59, %v489_v63  ;;  %v4292_v63 = vld [vmem:[%s5670_s1 + $0x1a0] sm:$0xff] }
  0xe0   : > { %v503_v56 = vpop.permute.xlu0 %502  ;;  %v505_v60 = vpop.permute.xlu1 %504 }
  0xe1   : > { %v4259_v49 = vsel %vm519_vm2, %v515_v35, %v503_v56  ;;  %v4283_v35 = vld [vmem:[%s5670_s1 + $0x1a8] sm:$0xff]  ;;  %v4295_v59 = vsel %vm519_vm2, %v516_v28, %v505_v60  ;;  %v4311_v60 = vld [vmem:[%s5670_s1 + $0x170] sm:$0xff] }
  0xe2   : > { %3182 = vmatmul.mubr.msk.f32.vlgmr.msra.gmra.mxu0 %vm555_vm3, %v4259_v49  ;;  %3188 = vmatmul.mubr.msk.f32.vlgmr.msra.gmra.mxu1 %vm555_vm3, %v4259_v49 }
  0xe3   : > { %3193 = vmatpush1.msk.msra.mxu0 %vm568_vm0, %v4256_v42  ;;  %3203 = vmatpush1.msk.msra.mxu1 %vm568_vm0, %v3914_v3  ;;  %v4320_v3 = vld [vmem:[%s5670_s1 + $0x148] sm:$0xff] }
  0xe4   : > { %777 = vmatprep.subr.mxu0 %v4264_v61  ;;  %943 = vmatprep.subr.mxu1 %v3956_v11  ;;  %v491_v56 = vpop.permute.xlu0 %490  ;;  %v507_v0 = vpop.permute.xlu1 %506  ;;  %v5764_v11 = vmov 0.0  }
  0xe5   : > { %778 = vmatpush1.msra.mxu0 %v4273_v62  ;;  %944 = vmatpush1.msra.mxu1 %v3969_v13  ;;  %v4304_v13 = vld [vmem:[%s5670_s1 + $0x178] sm:$0xff] }
  0xe6   : > { %779 = vmatprep.subr.mxu0 %v4283_v35  ;;  %945 = vmatprep.subr.mxu1 %v3979_v15 }
  0xe7   : > { %657 = vmatprep.mubr.f32.mxu0 %v5764_v11  ;;  %746 = vmatprep.mubr.f32.mxu1 %v5764_v11 }
  0xe8   : > { %780 = vmatpush1.msra.mxu0 %v4292_v63  ;;  %946 = vmatpush1.msra.mxu1 %v3991_v17  ;;  %v493_v28 = vpop.permute.xlu0 %492  ;;  %v509_v15 = vpop.permute.xlu1 %508  ;;  %v4328_v17 = vld [vmem:[%s5670_s1 + $0x140] sm:$0xff] }
  0xe9   : > { %3183 = vmatmul.mubr.msk.f32.gmra.mxu0 %vm555_vm3, %v4295_v59  ;;  %3189 = vmatmul.mubr.msk.f32.gmra.mxu1 %vm555_vm3, %v4295_v59 }
  0xea   : > { %781 = vmatprep.subr.mxu0 %v4304_v13  ;;  %947 = vmatprep.subr.mxu1 %v4005_v19  ;;  %v517_v19 = vsel %vm514_vm1, %v470_v1, %v491_v56  ;;  %v471_v56 = vld [vmem:[%s3899_s25 + $0x78] sm:$0xff]  ;;  %s3244_s25 = sshll.u32 %s3796_s13, 6  ;;  %s3646_s13 = scalar_lea.vmem %s3645_s27, 128 }
  0xeb   : > { %782 = vmatpush1.msra.mxu0 %v4311_v60  ;;  %948 = vmatpush1.msra.mxu1 %v4025_v23  ;;  %v4355_v1 = vsel %vm519_vm2, %v517_v19, %v507_v0  ;;  %v4372_v0 = vld [vmem:[%s5670_s1 + $0xb8] sm:$0xff]  ;;  %v518_v19 = vsel %vm514_vm1, %v471_v56, %v493_v28  ;;  %s3044_s21 = scalar_lea.hbm %s5678_s9, %s3244_s25  ;;  %p3648_p6 = scmp.lt.s32.totalorder %s3646_s13, %s3640_s29 }
  0xec   : > { %783 = vmatprep.subr.mxu0 %v4320_v3  ;;  %949 = vmatprep.subr.mxu1 %v4037_v25  ;;  %v884_v52 = vpop.permute.xlu0 %883  ;;  %v900_v50 = vpop.permute.xlu1 %899  ;;  %v4352_v25 = vld [vmem:[%s5670_s1 + $0xe8] sm:$0xff]  ;;  %v4396_v56 = vsel %vm519_vm2, %v518_v19, %v509_v15  ;;  %v4412_v15 = vld [vmem:[%s5670_s1 + $0x58] sm:$0xff]  ;;  %v4421_v19 = vld [vmem:[%s5670_s1 + $0x50] sm:$0xff] }
  0xed   : > { %784 = vmatpush1.msra.mxu0 %v4328_v17  ;;  %950 = vmatpush1.msra.mxu1 %v4051_v27  ;;  %p3649_p0 = por %p3648_p6, %p3647_p5 }
  0xee   : > { %785 = vmatprep.subr.mxu0 %v4335_v57  ;;  %951 = vmatprep.subr.mxu1 %v4068_v30  ;;  %v4365_v30 = vld [vmem:[%s5670_s1 + $0xe0] sm:$0xff] }
  0xef   : > { %786 = vmatpush1.msra.mxu0 %v4343_v54  ;;  %952 = vmatpush1.msra.mxu1 %v4080_v32  ;;  %v4382_v32 = vld [vmem:[%s5670_s1 + $0xb0] sm:$0xff]  ;;  %p3650_p1 = pnand %p3649_p0, %p3643_p11 }
  0xf0   : > { %663 = vmatprep.mubr.f32.mxu0 %v5764_v11  ;;  %752 = vmatprep.mubr.f32.mxu1 %v5764_v11  ;;  %v886_v27 = vpop.permute.xlu0 %885  ;;  %v902_v23 = vpop.permute.xlu1 %901 }
  0xf1   : > { %787 = vmatprep.subr.mxu0 %v4352_v25  ;;  %953 = vmatprep.subr.mxu1 %v4094_v34  ;;  %v4391_v34 = vld [vmem:[%s5670_s1 + $0x88] sm:$0xff] }
  0xf2   : > { %3184 = vmatmul.mubr.msk.f32.gmra.mxu0 %vm555_vm3, %v4355_v1  ;;  %3190 = vmatmul.mubr.msk.f32.gmra.mxu1 %vm555_vm3, %v4355_v1  ;;  %5765 = vst [vmem:[#allocation43_spill] sm:$0xff] %v4391_v34 }
  0xf3   : > { %788 = vmatpush1.msra.mxu0 %v4365_v30  ;;  %954 = vmatpush1.msra.mxu1 %v4109_v37 }
  0xf4   : > { %789 = vmatprep.subr.mxu0 %v4372_v0  ;;  %955 = vmatprep.subr.mxu1 %v4121_v39  ;;  %v888_v47 = vpop.permute.xlu0 %887  ;;  %v4393_v28 = vpop.permute.xlu1 %903  ;;  %v4405_v39 = vld [vmem:[%s5670_s1 + $0x80] sm:$0xff] }
  0xf5   : > { %790 = vmatpush1.msra.mxu0 %v4382_v32  ;;  %956 = vmatpush1.msra.mxu1 %v4134_v41 }
  0xf6   : > { %669 = vmatprep.mubr.f32.mxu0 %v5764_v11  ;;  %758 = vmatprep.mubr.f32.mxu1 %v5764_v11 }
  0xf7   : > { %791 = vmatprep.subr.mxu0 %v4391_v34  ;;  %957 = vmatprep.subr.mxu1 %v4149_v44  ;;  %v911_v44 = vsel %vm514_vm1, %v3917_v4, %v884_v52  ;;  %v4434_v34 = vld [vmem:[%s5670_s1 + $0x28] sm:$0xff] }
  0xf8   : > { %3185 = vmatmul.mubr.msk.f32.gmra.mxu0 %vm555_vm3, %v4396_v56  ;;  %3191 = vmatmul.mubr.msk.f32.gmra.mxu1 %vm555_vm3, %v4396_v56  ;;  %v4423_v41 = vpop.permute.xlu0 %889  ;;  %v4425_v37 = vpop.permute.xlu1 %905  ;;  %v4446_v4 = vsel %vm519_vm2, %v911_v44, %v900_v50  ;;  %v912_v50 = vsel %vm514_vm1, %v3920_v5, %v886_v27 }
  0xf9   : > { %792 = vmatpush1.msra.mxu0 %v4405_v39  ;;  %958 = vmatpush1.msra.mxu1 %v4161_v46 }
  0xfa   : > { %793 = vmatprep.subr.mxu0 %v4412_v15  ;;  %959 = vmatprep.subr.mxu1 %v4174_v48 }
  0xfb   : > { %794 = vmatpush1.msra.mxu0 %v4421_v19  ;;  %960 = vmatpush1.msra.mxu1 %v4189_v51 }
  0xfc   : > { %795 = vmatprep.subr.mxu0 %v4434_v34  ;;  %961 = vmatprep.subr.mxu1 %v4201_v53  ;;  %v1252_v52 = vpop.permute.xlu0 %1251  ;;  %v1268_v46 = vpop.permute.xlu1 %1267 }
  0xfd   : > { %796 = vmatpush1.msra.mxu0 %v4441_v45  ;;  %829 = vmatprep.mubr.f32.mxu0 %v5764_v11  ;;  %v1279_v48 = vsel %vm514_vm1, %v3931_v6, %v1252_v52 }
  0xfe   : > { %962 = vmatpush1.msra.mxu1 %v4214_v55  ;;  %995 = vmatprep.mubr.f32.mxu1 %v5764_v11  ;;  %v4457_v44 = vsel %vm519_vm2, %v1279_v48, %v1268_v46  ;;  %v4476_v48 = vsel %vm519_vm2, %v912_v50, %v902_v23  ;;  %v913_v23 = vsel %vm514_vm1, %v3943_v8, %v888_v47 }
  0xff   : > { %3194 = vmatmul.mubr.msk.f32.vlgmr.msra.gmra.mxu0 %vm555_vm3, %v4259_v49  ;;  %3204 = vmatmul.mubr.msk.f32.vlgmr.msra.gmra.mxu1 %vm555_vm3, %v4446_v4 }
 0x100   : > { %3208 = vmatprep.subr.msk.mxu0 %vm568_vm0, %v3909_v2  ;;  %3214 = vmatprep.subr.msk.mxu1 %vm568_vm0, %v4229_v58  ;;  %v1254_v6 = vpop.permute.xlu0 %1253  ;;  %v1270_v52 = vpop.permute.xlu1 %1269 }
 0x101   : > { %3209 = vmatpush1.msk.msra.mxu0 %vm568_vm0, %v3951_v10  ;;  %3215 = vmatpush1.msk.msra.mxu1 %vm568_vm0, %v4256_v42  ;;  %v1280_v46 = vsel %vm514_vm1, %v3934_v7, %v1254_v6  ;;  %v914_v6 = vsel %vm514_vm1, %v4008_v20, %v4423_v41  ;;  %v5766_v20 = vld [vmem:[#allocation35_spill] sm:$0xff]  ;;  %v5768_v41 = vld [vmem:[#allocation37_spill] sm:$0xff] }
 0x102   : > { %1032 = vmatprep.subr.mxu0 %v3961_v12  ;;  %1121 = vmatprep.subr.mxu1 %v4264_v61  ;;  %v4481_v5 = vsel %vm519_vm2, %v1280_v46, %v1270_v52  ;;  %v5771_v52 = vld [vmem:[#allocation41_spill] sm:$0xff]  ;;  %v5772_v46 = vld [vmem:[#allocation42_spill] sm:$0xff] }
 0x103   : > { %835 = vmatprep.mubr.f32.mxu0 %v5764_v11  ;;  %1001 = vmatprep.mubr.f32.mxu1 %v5764_v11 }
 0x104   : > { %1033 = vmatpush1.msra.mxu0 %v3974_v14  ;;  %1122 = vmatpush1.msra.mxu1 %v4273_v62  ;;  %v1256_v27 = vpop.permute.xlu0 %1255  ;;  %v1272_v7 = vpop.permute.xlu1 %1271 }
 0x105   : > { %3195 = vmatmul.mubr.msk.f32.gmra.mxu0 %vm555_vm3, %v4295_v59  ;;  %3205 = vmatmul.mubr.msk.f32.gmra.mxu1 %vm555_vm3, %v4476_v48  ;;  %v1281_v49 = vsel %vm514_vm1, %v3946_v9, %v1256_v27  ;;  %v4504_v59 = vsel %vm519_vm2, %v913_v23, %v4393_v28  ;;  %v5773_v27 = vld [vmem:[#allocation18_spill] sm:$0xff]  ;;  %v5775_v23 = vld [vmem:[#allocation20_spill] sm:$0xff] }
 0x106   : > { %1034 = vmatprep.subr.mxu0 %v3986_v16  ;;  %1123 = vmatprep.subr.mxu1 %v4283_v35  ;;  %v4498_v50 = vsel %vm519_vm2, %v1281_v49, %v1272_v7  ;;  %v5774_v7 = vld [vmem:[#allocation19_spill] sm:$0xff]  ;;  %v5790_v49 = vld [vmem:[#allocation36_spill] sm:$0xff] }
 0x107   : > { %1035 = vmatpush1.msra.mxu0 %v4000_v18  ;;  %1124 = vmatpush1.msra.mxu1 %v4292_v63 }
 0x108   : > { %1036 = vmatprep.subr.mxu0 %v4020_v22  ;;  %1125 = vmatprep.subr.mxu1 %v4304_v13  ;;  %v1258_v8 = vpop.permute.xlu0 %1257  ;;  %v1274_v9 = vpop.permute.xlu1 %1273 }
 0x109   : > { %841 = vmatprep.mubr.f32.mxu0 %v5764_v11  ;;  %1007 = vmatprep.mubr.f32.mxu1 %v5764_v11  ;;  %v1282_v47 = vsel %vm514_vm1, %v4011_v21, %v1258_v8  ;;  %v4530_v21 = vsel %vm519_vm2, %v914_v6, %v4425_v37  ;;  %v5767_v37 = vld [vmem:[#allocation43_spill] sm:$0xff]  ;;  %v1742_v6 = vld [vmem:[#allocation6 + $0x60] sm:$0xff] }
 0x10a   : > { %1037 = vmatpush1.msra.mxu0 %v4032_v24  ;;  %1126 = vmatpush1.msra.mxu1 %v4311_v60  ;;  %v4515_v28 = vsel %vm519_vm2, %v1282_v47, %v1274_v9  ;;  %v1745_v8 = vld [vmem:[#allocation6 + $0x78] sm:$0xff]  ;;  %v1856_v9 = vld [vmem:[#allocation6 + $0x3f0] sm:$0xff]  ;;  %v1743_v47 = vld [vmem:[#allocation6 + $0x68] sm:$0xff] }
 0x10b   : > { %3196 = vmatmul.mubr.msk.f32.gmra.mxu0 %vm555_vm3, %v4355_v1  ;;  %3206 = vmatmul.mubr.msk.f32.gmra.mxu1 %vm555_vm3, %v4504_v59  ;;  %v5769_v1 = vld [vmem:[#allocation39_spill] sm:$0xff] }
 0x10c   : > { %1038 = vmatprep.subr.mxu0 %v4046_v26  ;;  %1127 = vmatprep.subr.mxu1 %v4320_v3 }
 0x10d   : > { %1039 = vmatpush1.msra.mxu0 %v4063_v29  ;;  %1128 = vmatpush1.msra.mxu1 %v4328_v17 }
 0x10e   : > { %1040 = vmatprep.subr.mxu0 %v4075_v31  ;;  %1129 = vmatprep.subr.mxu1 %v4335_v57 }
 0x10f   : > { %847 = vmatprep.mubr.f32.mxu0 %v5764_v11  ;;  %1013 = vmatprep.mubr.f32.mxu1 %v5764_v11 }
 0x110   : > { %1041 = vmatpush1.msra.mxu0 %v4089_v33  ;;  %1130 = vmatpush1.msra.mxu1 %v4343_v54 }
 0x111   : > { %3197 = vmatmul.mubr.msk.f32.gmra.mxu0 %vm555_vm3, %v4396_v56  ;;  %3207 = vmatmul.mubr.msk.f32.gmra.mxu1 %vm555_vm3, %v4530_v21  ;;  %v5770_v56 = vld [vmem:[#allocation40_spill] sm:$0xff] }
 0x112   : > { %1042 = vmatprep.subr.mxu0 %v4104_v36  ;;  %1131 = vmatprep.subr.mxu1 %v4352_v25 }
 0x113   : > { %1043 = vmatpush1.msra.mxu0 %v4116_v38  ;;  %1132 = vmatpush1.msra.mxu1 %v4365_v30 }
 0x114   : > { %1044 = vmatprep.subr.mxu0 %v4129_v40  ;;  %1133 = vmatprep.subr.mxu1 %v4372_v0 }
 0x115   : > { %1045 = vmatpush1.msra.mxu0 %v4144_v43  ;;  %1134 = vmatpush1.msra.mxu1 %v4382_v32 }
 0x116   : > { %1046 = vmatprep.subr.mxu0 %v5766_v20  ;;  %1135 = vmatprep.subr.mxu1 %v5767_v37 }
 0x117   : > { %1047 = vmatpush1.msra.mxu0 %v5768_v41  ;;  %1136 = vmatpush1.msra.mxu1 %v4405_v39 }
 0x118   : > { %1048 = vmatprep.subr.mxu0 %v5769_v1  ;;  %1137 = vmatprep.subr.mxu1 %v4412_v15 }
 0x119   : > { %1049 = vmatpush1.msra.mxu0 %v5770_v56  ;;  %1138 = vmatpush1.msra.mxu1 %v4421_v19 }
 0x11a   : > { %1050 = vmatprep.subr.mxu0 %v5771_v52  ;;  %1139 = vmatprep.subr.mxu1 %v4434_v34 }
 0x11b   : > { %1051 = vmatpush1.msra.mxu0 %v5772_v46  ;;  %1084 = vmatprep.mubr.f32.mxu0 %v5764_v11 }
 0x11c   : > { %1140 = vmatpush1.msra.mxu1 %v4441_v45  ;;  %1173 = vmatprep.mubr.f32.mxu1 %v5764_v11 }
 0x11d   : > { %3210 = vmatmul.mubr.msk.f32.vlgmr.msra.gmra.mxu0 %vm555_vm3, %v4446_v4  ;;  %3216 = vmatmul.mubr.msk.f32.vlgmr.msra.gmra.mxu1 %vm555_vm3, %v4446_v4  ;;  %v5776_v4 = vld [vmem:[#allocation21_spill] sm:$0xff] }
 0x11e   : > { %3224 = vmatprep.subr.msk.mxu0 %vm568_vm0, %v5773_v27  ;;  %3230 = vmatprep.subr.msk.mxu1 %vm568_vm0, %v3909_v2  ;;  %v5777_v2 = vld [vmem:[#allocation22_spill] sm:$0xff]  ;;  %v1847_v27 = vld [vmem:[#allocation6 + $0x3a8] sm:$0xff] }
 0x11f   : > { %3225 = vmatpush1.msk.msra.mxu0 %vm568_vm0, %v5774_v7  ;;  %3231 = vmatpush1.msk.msra.mxu1 %vm568_vm0, %v3951_v10  ;;  %v5778_v10 = vld [vmem:[#allocation23_spill] sm:$0xff]  ;;  %v1734_v7 = vld [vmem:[#allocation6 + $0x20] sm:$0xff] }
 0x120   : > { %1311 = vmatprep.subr.mxu0 %v5775_v23  ;;  %1400 = vmatprep.subr.mxu1 %v3961_v12  ;;  %v5779_v12 = vld [vmem:[#allocation24_spill] sm:$0xff]  ;;  %v1845_v23 = vld [vmem:[#allocation6 + $0x398] sm:$0xff] }
 0x121   : > { %1090 = vmatprep.mubr.f32.mxu0 %v5764_v11  ;;  %1179 = vmatprep.mubr.f32.mxu1 %v5764_v11 }
 0x122   : > { %1312 = vmatpush1.msra.mxu0 %v5776_v4  ;;  %1401 = vmatpush1.msra.mxu1 %v3974_v14  ;;  %v5780_v14 = vld [vmem:[#allocation25_spill] sm:$0xff]  ;;  %v1733_v4 = vld [vmem:[#allocation6 + $0x18] sm:$0xff] }
 0x123   : > { %3211 = vmatmul.mubr.msk.f32.gmra.mxu0 %vm555_vm3, %v4476_v48  ;;  %3217 = vmatmul.mubr.msk.f32.gmra.mxu1 %vm555_vm3, %v4476_v48  ;;  %v5788_v48 = vld [vmem:[#allocation33_spill] sm:$0xff] }
 0x124   : > { %1313 = vmatprep.subr.mxu0 %v5777_v2  ;;  %1402 = vmatprep.subr.mxu1 %v3986_v16  ;;  %v5781_v16 = vld [vmem:[#allocation26_spill] sm:$0xff] }
 0x125   : > { %1314 = vmatpush1.msra.mxu0 %v5778_v10  ;;  %1403 = vmatpush1.msra.mxu1 %v4000_v18  ;;  %v5782_v18 = vld [vmem:[#allocation27_spill] sm:$0xff]  ;;  %v1844_v2 = vld [vmem:[#allocation6 + $0x390] sm:$0xff]  ;;  %v1731_v10 = vld [vmem:[#allocation6 + $0x8] sm:$0xff] }
 0x126   : > { %1315 = vmatprep.subr.mxu0 %v5779_v12  ;;  %1404 = vmatprep.subr.mxu1 %v4020_v22  ;;  %v5783_v22 = vld [vmem:[#allocation28_spill] sm:$0xff] }
 0x127   : > { %1096 = vmatprep.mubr.f32.mxu0 %v5764_v11  ;;  %1185 = vmatprep.mubr.f32.mxu1 %v5764_v11  ;;  %v1842_v12 = vld [vmem:[#allocation6 + $0x380] sm:$0xff] }
 0x128   : > { %1316 = vmatpush1.msra.mxu0 %v5780_v14  ;;  %1405 = vmatpush1.msra.mxu1 %v4032_v24  ;;  %v5784_v24 = vld [vmem:[#allocation29_spill] sm:$0xff]  ;;  %v1730_v14 = vld [vmem:[#allocation6] sm:$0xff] }
 0x129   : > { %3212 = vmatmul.mubr.msk.f32.gmra.mxu0 %vm555_vm3, %v4504_v59  ;;  %3218 = vmatmul.mubr.msk.f32.gmra.mxu1 %vm555_vm3, %v4504_v59  ;;  %v1857_v59 = vld [vmem:[#allocation6 + $0x3f8] sm:$0xff] }
 0x12a   : > { %1317 = vmatprep.subr.mxu0 %v5781_v16  ;;  %1406 = vmatprep.subr.mxu1 %v4046_v26  ;;  %v5785_v26 = vld [vmem:[#allocation30_spill] sm:$0xff]  ;;  %v1841_v16 = vld [vmem:[#allocation6 + $0x378] sm:$0xff] }
 0x12b   : > { %1318 = vmatpush1.msra.mxu0 %v5782_v18  ;;  %1407 = vmatpush1.msra.mxu1 %v4063_v29  ;;  %v5786_v29 = vld [vmem:[#allocation31_spill] sm:$0xff]  ;;  %v1824_v18 = vld [vmem:[#allocation6 + $0x2f0] sm:$0xff] }
 0x12c   : > { %1319 = vmatprep.subr.mxu0 %v5783_v22  ;;  %1408 = vmatprep.subr.mxu1 %v4075_v31  ;;  %v5787_v31 = vld [vmem:[#allocation32_spill] sm:$0xff]  ;;  %v1839_v22 = vld [vmem:[#allocation6 + $0x368] sm:$0xff] }
 0x12d   : > { %1102 = vmatprep.mubr.f32.mxu0 %v5764_v11  ;;  %1191 = vmatprep.mubr.f32.mxu1 %v5764_v11 }
 0x12e   : > { %1320 = vmatpush1.msra.mxu0 %v5784_v24  ;;  %1409 = vmatpush1.msra.mxu1 %v4089_v33  ;;  %v5789_v33 = vld [vmem:[#allocation34_spill] sm:$0xff]  ;;  %v1823_v24 = vld [vmem:[#allocation6 + $0x2e8] sm:$0xff] }
 0x12f   : > { %3213 = vmatmul.mubr.msk.f32.gmra.mxu0 %vm555_vm3, %v4530_v21  ;;  %3219 = vmatmul.mubr.msk.f32.gmra.mxu1 %vm555_vm3, %v4530_v21  ;;  %v1853_v21 = vld [vmem:[#allocation6 + $0x3d8] sm:$0xff] }
 0x130   : > { %1321 = vmatprep.subr.mxu0 %v5785_v26  ;;  %1410 = vmatprep.subr.mxu1 %v4104_v36  ;;  %v5791_v36 = vld [vmem:[#allocation38_spill] sm:$0xff]  ;;  %v1838_v26 = vld [vmem:[#allocation6 + $0x360] sm:$0xff] }
 0x131   : > { %1322 = vmatpush1.msra.mxu0 %v5786_v29  ;;  %1411 = vmatpush1.msra.mxu1 %v4116_v38  ;;  %v1766_v38 = vld [vmem:[#allocation6 + $0x120] sm:$0xff]  ;;  %v1821_v29 = vld [vmem:[#allocation6 + $0x2d8] sm:$0xff] }
 0x132   : > { %1323 = vmatprep.subr.mxu0 %v5787_v31  ;;  %1412 = vmatprep.subr.mxu1 %v4129_v40  ;;  %v1761_v40 = vld [vmem:[#allocation6 + $0xf8] sm:$0xff]  ;;  %v1836_v31 = vld [vmem:[#allocation6 + $0x350] sm:$0xff] }
 0x133   : > { %1324 = vmatpush1.msra.mxu0 %v5788_v48  ;;  %1413 = vmatpush1.msra.mxu1 %v4144_v43  ;;  %v1872_v43 = vld [vmem:[#allocation6 + $0x470] sm:$0xff] }
 0x134   : > { %1325 = vmatprep.subr.mxu0 %v5789_v33  ;;  %1414 = vmatprep.subr.mxu1 %v5766_v20  ;;  %v1740_v20 = vld [vmem:[#allocation6 + $0x50] sm:$0xff]  ;;  %v1835_v33 = vld [vmem:[#allocation6 + $0x348] sm:$0xff] }
 0x135   : > { %1326 = vmatpush1.msra.mxu0 %v5790_v49  ;;  %1415 = vmatpush1.msra.mxu1 %v5768_v41  ;;  %v1739_v41 = vld [vmem:[#allocation6 + $0x48] sm:$0xff]  ;;  %v1820_v48 = vld [vmem:[#allocation6 + $0x2d0] sm:$0xff]  ;;  %v1818_v49 = vld [vmem:[#allocation6 + $0x2c0] sm:$0xff] }
 0x136   : > { %1327 = vmatprep.subr.mxu0 %v5791_v36  ;;  %1416 = vmatprep.subr.mxu1 %v5769_v1  ;;  %v1850_v1 = vld [vmem:[#allocation6 + $0x3c0] sm:$0xff]  ;;  %v1833_v36 = vld [vmem:[#allocation6 + $0x338] sm:$0xff] }
 0x137   : > { %1328 = vmatpush1.msra.mxu0 %v4189_v51  ;;  %1417 = vmatpush1.msra.mxu1 %v5770_v56  ;;  %v1871_v51 = vld [vmem:[#allocation6 + $0x468] sm:$0xff]  ;;  %v1737_v56 = vld [vmem:[#allocation6 + $0x38] sm:$0xff] }
 0x138   : > { %1329 = vmatprep.subr.mxu0 %v4201_v53  ;;  %1418 = vmatprep.subr.mxu1 %v5771_v52  ;;  %v1758_v53 = vld [vmem:[#allocation6 + $0xe0] sm:$0xff]  ;;  %v1848_v52 = vld [vmem:[#allocation6 + $0x3b0] sm:$0xff] }
 0x139   : > { %1330 = vmatpush1.msra.mxu0 %v4214_v55  ;;  %1363 = vmatprep.mubr.f32.mxu0 %v5764_v11  ;;  %v1757_v55 = vld [vmem:[#allocation6 + $0xd8] sm:$0xff] }
 0x13a   : > { %1419 = vmatpush1.msra.mxu1 %v5772_v46  ;;  %1452 = vmatprep.mubr.f32.mxu1 %v5764_v11  ;;  %v1736_v46 = vld [vmem:[#allocation6 + $0x30] sm:$0xff] }
 0x13b   : > { %3226 = vmatmul.mubr.msk.f32.vlgmr.msra.gmra.mxu0 %vm555_vm3, %v4457_v44  ;;  %3232 = vmatmul.mubr.msk.f32.vlgmr.msra.gmra.mxu1 %vm555_vm3, %v4457_v44 }
 0x13c   : > { %3236 = vmatprep.subr.msk.mxu0 %vm568_vm0, %v4229_v58  ;;  %1369 = vmatprep.mubr.f32.mxu0 %v5764_v11  ;;  %v1755_v58 = vld [vmem:[#allocation6 + $0xc8] sm:$0xff] }
 0x13d   : > { %3237 = vmatpush1.msk.msra.mxu0 %vm568_vm0, %v4256_v42  ;;  %1458 = vmatprep.mubr.f32.mxu1 %v5764_v11  ;;  %v1866_v42 = vld [vmem:[#allocation6 + $0x440] sm:$0xff] }
 0x13e   : > { %1489 = vmatprep.subr.mxu0 %v4264_v61  ;;  %v1754_v61 = vld [vmem:[#allocation6 + $0xc0] sm:$0xff] }
 0x13f   : > { %1490 = vmatpush1.msra.mxu0 %v4273_v62  ;;  %3233 = vmatmul.mubr.msk.f32.gmra.mxu1 %vm555_vm3, %v4481_v5  ;;  %v1865_v62 = vld [vmem:[#allocation6 + $0x438] sm:$0xff] }
 0x140   : > { %3227 = vmatmul.mubr.msk.f32.gmra.mxu0 %vm555_vm3, %v4481_v5  ;;  %1491 = vmatprep.subr.mxu0 %v4283_v35  ;;  %v1752_v35 = vld [vmem:[#allocation6 + $0xb0] sm:$0xff] }
 0x141   : > { %1492 = vmatpush1.msra.mxu0 %v4292_v63  ;;  %1375 = vmatprep.mubr.f32.mxu0 %v5764_v11  ;;  %v1863_v63 = vld [vmem:[#allocation6 + $0x428] sm:$0xff] }
 0x142   : > { %1493 = vmatprep.subr.mxu0 %v4304_v13  ;;  %1464 = vmatprep.mubr.f32.mxu1 %v5764_v11  ;;  %v1775_v13 = vld [vmem:[#allocation6 + $0x168] sm:$0xff] }
 0x143   : > { %1494 = vmatpush1.msra.mxu0 %v4311_v60  ;;  %3234 = vmatmul.mubr.msk.f32.gmra.mxu1 %vm555_vm3, %v4498_v50  ;;  %v1751_v60 = vld [vmem:[#allocation6 + $0xa8] sm:$0xff] }
 0x144   : > { %3228 = vmatmul.mubr.msk.f32.gmra.mxu0 %vm555_vm3, %v4498_v50  ;;  %1495 = vmatprep.subr.mxu0 %v4320_v3  ;;  %v1776_v3 = vld [vmem:[#allocation6 + $0x170] sm:$0xff] }
 0x145   : > { %1496 = vmatpush1.msra.mxu0 %v4328_v17  ;;  %1381 = vmatprep.mubr.f32.mxu0 %v5764_v11  ;;  %v1773_v17 = vld [vmem:[#allocation6 + $0x158] sm:$0xff] }
 0x146   : > { %1497 = vmatprep.subr.mxu0 %v4335_v57  ;;  %1470 = vmatprep.mubr.f32.mxu1 %v5764_v11  ;;  %v1868_v57 = vld [vmem:[#allocation6 + $0x450] sm:$0xff] }
 0x147   : > { %1498 = vmatpush1.msra.mxu0 %v4343_v54  ;;  %3235 = vmatmul.mubr.msk.f32.gmra.mxu1 %vm555_vm3, %v4515_v28  ;;  %v1869_v54 = vld [vmem:[#allocation6 + $0x458] sm:$0xff] }
 0x148   : > { %3229 = vmatmul.mubr.msk.f32.gmra.mxu0 %vm555_vm3, %v4515_v28  ;;  %1499 = vmatprep.subr.mxu0 %v4352_v25  ;;  %v1772_v25 = vld [vmem:[#allocation6 + $0x150] sm:$0xff] }
 0x149   : > { %1500 = vmatpush1.msra.mxu0 %v4365_v30  ;;  %1541 = vmatprep.mubr.f32.mxu0 %v5764_v11  ;;  %v1770_v30 = vld [vmem:[#allocation6 + $0x140] sm:$0xff] }
 0x14a   : > { %1501 = vmatprep.subr.mxu0 %v4372_v0  ;;  %2035 = vmatprep.subr.mxu1 %v1776_v3  ;;  %v1862_v0 = vld [vmem:[#allocation6 + $0x420] sm:$0xff]  ;;  %v1817_v3 = vld [vmem:[#allocation6 + $0x2b8] sm:$0xff] }
 0x14b   : > { %1502 = vmatpush1.msra.mxu0 %v4382_v32  ;;  %2036 = vmatpush1.msra.mxu1 %v1775_v13  ;;  %v1769_v32 = vld [vmem:[#allocation6 + $0x138] sm:$0xff]  ;;  %v1832_v13 = vld [vmem:[#allocation6 + $0x330] sm:$0xff] }
 0x14c   : > { %1503 = vmatprep.subr.mxu0 %v5767_v37  ;;  %2037 = vmatprep.subr.mxu1 %v1773_v17  ;;  %v1851_v37 = vld [vmem:[#allocation6 + $0x3c8] sm:$0xff] }
 0x14d   : > { %1504 = vmatpush1.msra.mxu0 %v4405_v39  ;;  %2038 = vmatpush1.msra.mxu1 %v1772_v25  ;;  %v1764_v39 = vld [vmem:[#allocation6 + $0x110] sm:$0xff]  ;;  %v1815_v17 = vld [vmem:[#allocation6 + $0x2a8] sm:$0xff]  ;;  %v1830_v25 = vld [vmem:[#allocation6 + $0x320] sm:$0xff] }
 0x14e   : > { %1505 = vmatprep.subr.mxu0 %v4412_v15  ;;  %2039 = vmatprep.subr.mxu1 %v1770_v30  ;;  %v1749_v15 = vld [vmem:[#allocation6 + $0x98] sm:$0xff]  ;;  %v1814_v30 = vld [vmem:[#allocation6 + $0x2a0] sm:$0xff] }
 0x14f   : > { %1506 = vmatpush1.msra.mxu0 %v4421_v19  ;;  %2040 = vmatpush1.msra.mxu1 %v1769_v32  ;;  %v1860_v19 = vld [vmem:[#allocation6 + $0x410] sm:$0xff]  ;;  %v1829_v32 = vld [vmem:[#allocation6 + $0x318] sm:$0xff] }
 0x150   : > { %1507 = vmatprep.subr.mxu0 %v4434_v34  ;;  %v1767_v34 = vld [vmem:[#allocation6 + $0x128] sm:$0xff] }
 0x151   : > { %1508 = vmatpush1.msra.mxu0 %v4441_v45  ;;  %2041 = vmatprep.subr.mxu1 %v1767_v34  ;;  %v1760_v45 = vld [vmem:[#allocation6 + $0xf0] sm:$0xff] }
 0x152   : > { %3238 = vmatmul.mubr.msk.f32.vlgmr.msra.gmra.mxu0 %vm555_vm3, %v4457_v44  ;;  %2042 = vmatpush1.msra.mxu1 %v1766_v38  ;;  %v1748_v44 = vld [vmem:[#allocation6 + $0x90] sm:$0xff]  ;;  %v1827_v38 = vld [vmem:[#allocation6 + $0x308] sm:$0xff] }
 0x153   : > { %1547 = vmatprep.mubr.f32.mxu0 %v5764_v11  ;;  %2043 = vmatprep.subr.mxu1 %v1764_v39  ;;  %v1812_v34 = vld [vmem:[#allocation6 + $0x290] sm:$0xff]  ;;  %v1811_v39 = vld [vmem:[#allocation6 + $0x288] sm:$0xff] }
 0x154   : > { %2124 = vmatprep.subr.mxu0 %v1872_v43  ;;  %v1920_v43 = vld [vmem:[#allocation6 + $0x5f0] sm:$0xff] }
 0x155   : > { %2125 = vmatpush1.msra.mxu0 %v1871_v51  ;;  %v1919_v51 = vld [vmem:[#allocation6 + $0x5e8] sm:$0xff] }
 0x156   : > { %3239 = vmatmul.mubr.msk.f32.gmra.mxu0 %vm555_vm3, %v4481_v5  ;;  %2126 = vmatprep.subr.mxu0 %v1869_v54  ;;  %v1859_v5 = vld [vmem:[#allocation6 + $0x408] sm:$0xff]  ;;  %v1917_v54 = vld [vmem:[#allocation6 + $0x5d8] sm:$0xff] }
 0x157   : > { %1553 = vmatprep.mubr.f32.mxu0 %v5764_v11  ;;  %2127 = vmatpush1.msra.mxu0 %v1868_v57  ;;  %v1916_v57 = vld [vmem:[#allocation6 + $0x5d0] sm:$0xff] }
 0x158   : > { %2128 = vmatprep.subr.mxu0 %v1866_v42  ;;  %v1914_v42 = vld [vmem:[#allocation6 + $0x5c0] sm:$0xff] }
 0x159   : > { %2129 = vmatpush1.msra.mxu0 %v1865_v62  ;;  %v1913_v62 = vld [vmem:[#allocation6 + $0x5b8] sm:$0xff] }
 0x15a   : > { %3240 = vmatmul.mubr.msk.f32.gmra.mxu0 %vm555_vm3, %v4498_v50  ;;  %2130 = vmatprep.subr.mxu0 %v1863_v63  ;;  %v1746_v50 = vld [vmem:[#allocation6 + $0x80] sm:$0xff]  ;;  %v1911_v63 = vld [vmem:[#allocation6 + $0x5a8] sm:$0xff] }
 0x15b   : > { %1559 = vmatprep.mubr.f32.mxu0 %v5764_v11  ;;  %v1763_v11 = vld [vmem:[#allocation6 + $0x108] sm:$0xff]  ;;  %2131 = vmatpush1.msra.mxu0 %v1862_v0  ;;  %v1910_v0 = vld [vmem:[#allocation6 + $0x5a0] sm:$0xff] }
 0x15c   : > { %2044 = vmatpush1.msra.mxu1 %v1763_v11  ;;  %2132 = vmatprep.subr.mxu0 %v1860_v19  ;;  %v1826_v11 = vld [vmem:[#allocation6 + $0x300] sm:$0xff]  ;;  %v1908_v19 = vld [vmem:[#allocation6 + $0x590] sm:$0xff] }
 0x15d   : > { %2045 = vmatprep.subr.mxu1 %v1761_v40  ;;  %2133 = vmatpush1.msra.mxu0 %v1859_v5  ;;  %v1809_v40 = vld [vmem:[#allocation6 + $0x278] sm:$0xff]  ;;  %v1907_v5 = vld [vmem:[#allocation6 + $0x588] sm:$0xff] }
 0x15e   : > { %3241 = vmatmul.mubr.msk.f32.gmra.mxu0 %vm555_vm3, %v4515_v28  ;;  %2046 = vmatpush1.msra.mxu1 %v1760_v45  ;;  %v1854_v28 = vld [vmem:[#allocation6 + $0x3e0] sm:$0xff]  ;;  %v1808_v45 = vld [vmem:[#allocation6 + $0x270] sm:$0xff] }
 0x15f   : > { %2047 = vmatprep.subr.mxu1 %v1758_v53  ;;  %2134 = vmatprep.subr.mxu0 %v1857_v59  ;;  %v1806_v53 = vld [vmem:[#allocation6 + $0x260] sm:$0xff]  ;;  %v1905_v59 = vld [vmem:[#allocation6 + $0x578] sm:$0xff] }
 0x160   : > { %2048 = vmatpush1.msra.mxu1 %v1757_v55  ;;  %2135 = vmatpush1.msra.mxu0 %v1856_v9  ;;  %v1805_v55 = vld [vmem:[#allocation6 + $0x258] sm:$0xff]  ;;  %v1904_v9 = vld [vmem:[#allocation6 + $0x570] sm:$0xff] }
 0x161   : > { %2049 = vmatprep.subr.mxu1 %v1755_v58  ;;  %2136 = vmatprep.subr.mxu0 %v1854_v28  ;;  %v1803_v58 = vld [vmem:[#allocation6 + $0x248] sm:$0xff]  ;;  %v1902_v28 = vld [vmem:[#allocation6 + $0x560] sm:$0xff] }
 0x162   : > { %2050 = vmatpush1.msra.mxu1 %v1754_v61  ;;  %2137 = vmatpush1.msra.mxu0 %v1853_v21  ;;  %v1802_v61 = vld [vmem:[#allocation6 + $0x240] sm:$0xff]  ;;  %v1901_v21 = vld [vmem:[#allocation6 + $0x558] sm:$0xff] }
 0x163   : > { %2051 = vmatprep.subr.mxu1 %v1752_v35  ;;  %2138 = vmatprep.subr.mxu0 %v1851_v37  ;;  %v1800_v35 = vld [vmem:[#allocation6 + $0x230] sm:$0xff]  ;;  %v1899_v37 = vld [vmem:[#allocation6 + $0x548] sm:$0xff] }
 0x164   : > { %2052 = vmatpush1.msra.mxu1 %v1751_v60  ;;  %2139 = vmatpush1.msra.mxu0 %v1850_v1  ;;  %v1799_v60 = vld [vmem:[#allocation6 + $0x228] sm:$0xff]  ;;  %v1898_v1 = vld [vmem:[#allocation6 + $0x540] sm:$0xff] }
 0x165   : > { %2053 = vmatprep.subr.mxu1 %v1749_v15  ;;  %2140 = vmatprep.subr.mxu0 %v1848_v52  ;;  %v1797_v15 = vld [vmem:[#allocation6 + $0x218] sm:$0xff]  ;;  %v1896_v52 = vld [vmem:[#allocation6 + $0x530] sm:$0xff] }
 0x166   : > { %2054 = vmatpush1.msra.mxu1 %v1748_v44  ;;  %2141 = vmatpush1.msra.mxu0 %v1847_v27  ;;  %v1796_v44 = vld [vmem:[#allocation6 + $0x210] sm:$0xff]  ;;  %v1895_v27 = vld [vmem:[#allocation6 + $0x528] sm:$0xff] }
 0x167   : > { %2055 = vmatprep.subr.mxu1 %v1746_v50  ;;  %2142 = vmatprep.subr.mxu0 %v1845_v23  ;;  %v1794_v50 = vld [vmem:[#allocation6 + $0x200] sm:$0xff]  ;;  %v1893_v23 = vld [vmem:[#allocation6 + $0x518] sm:$0xff] }
 0x168   : > { %2056 = vmatpush1.msra.mxu1 %v1745_v8  ;;  %2143 = vmatpush1.msra.mxu0 %v1844_v2  ;;  %v1793_v8 = vld [vmem:[#allocation6 + $0x1f8] sm:$0xff]  ;;  %v1892_v2 = vld [vmem:[#allocation6 + $0x510] sm:$0xff] }
 0x169   : > { %2057 = vmatprep.subr.mxu1 %v1743_v47  ;;  %2144 = vmatprep.subr.mxu0 %v1842_v12  ;;  %v1791_v47 = vld [vmem:[#allocation6 + $0x1e8] sm:$0xff]  ;;  %v1890_v12 = vld [vmem:[#allocation6 + $0x500] sm:$0xff] }
 0x16a   : > { %2058 = vmatpush1.msra.mxu1 %v1742_v6  ;;  %2145 = vmatpush1.msra.mxu0 %v1841_v16  ;;  %v1790_v6 = vld [vmem:[#allocation6 + $0x1e0] sm:$0xff]  ;;  %v1889_v16 = vld [vmem:[#allocation6 + $0x4f8] sm:$0xff] }
 0x16b   : > { %2059 = vmatprep.subr.mxu1 %v1740_v20  ;;  %2146 = vmatprep.subr.mxu0 %v1839_v22  ;;  %v1788_v20 = vld [vmem:[#allocation6 + $0x1d0] sm:$0xff]  ;;  %v1887_v22 = vld [vmem:[#allocation6 + $0x4e8] sm:$0xff] }
 0x16c   : > { %2060 = vmatpush1.msra.mxu1 %v1739_v41  ;;  %2147 = vmatpush1.msra.mxu0 %v1838_v26  ;;  %v1787_v41 = vld [vmem:[#allocation6 + $0x1c8] sm:$0xff]  ;;  %v1884_v26 = vld [vmem:[#allocation6 + $0x4d0] sm:$0xff] }
 0x16d   : > { %2061 = vmatprep.subr.mxu1 %v1737_v56  ;;  %2148 = vmatprep.subr.mxu0 %v1836_v31  ;;  %v1785_v56 = vld [vmem:[#allocation6 + $0x1b8] sm:$0xff] }
 0x16e   : > { %2062 = vmatpush1.msra.mxu1 %v1736_v46  ;;  %2149 = vmatpush1.msra.mxu0 %v1835_v33  ;;  %v1784_v46 = vld [vmem:[#allocation6 + $0x1b0] sm:$0xff]  ;;  %v1881_v31 = vld [vmem:[#allocation6 + $0x4b8] sm:$0xff] }
 0x16f   : > { %2063 = vmatprep.subr.mxu1 %v1734_v7  ;;  %2150 = vmatprep.subr.mxu0 %v1833_v36  ;;  %v1782_v7 = vld [vmem:[#allocation6 + $0x1a0] sm:$0xff] }
 0x170   : > { %2064 = vmatpush1.msra.mxu1 %v1733_v4  ;;  %2151 = vmatpush1.msra.mxu0 %v1832_v13  ;;  %v1781_v4 = vld [vmem:[#allocation6 + $0x198] sm:$0xff]  ;;  %v1878_v36 = vld [vmem:[#allocation6 + $0x4a0] sm:$0xff]  ;;  %v1875_v13 = vld [vmem:[#allocation6 + $0x488] sm:$0xff] }
 0x171   : > { %2065 = vmatprep.subr.mxu1 %v1731_v10  ;;  %2152 = vmatprep.subr.mxu0 %v1830_v25  ;;  %v1779_v10 = vld [vmem:[#allocation6 + $0x188] sm:$0xff] }
 0x172   : > { %2066 = vmatpush1.msra.mxu1 %v1730_v14  ;;  %2153 = vmatpush1.msra.mxu0 %v1829_v32  ;;  %v1778_v14 = vld [vmem:[#allocation6 + $0x180] sm:$0xff]  ;;  %v1825_v32 = vld [vmem:[#allocation6 + $0x2f8] sm:$0xff] }
 0x173   : > { %2067 = vmatprep.subr.mxu1 %v1824_v18  ;;  %2154 = vmatprep.subr.mxu0 %v1827_v38  ;;  %v1968_v18 = vld [vmem:[#allocation6 + $0x770] sm:$0xff] }
 0x174   : > { %2068 = vmatpush2.msra.mxu1 %v1823_v24  ;;  %2155 = vmatpush1.msra.mxu0 %v1826_v11  ;;  %v1886_v24 = vld [vmem:[#allocation6 + $0x4e0] sm:$0xff] }
 0x175   : > { %2069 = vmatprep.subr.mxu1 %v1821_v29  ;;  %2156 = vmatprep.subr.mxu0 %v1920_v43  ;;  %v1883_v29 = vld [vmem:[#allocation6 + $0x4c8] sm:$0xff] }
 0x176   : > { %2070 = vmatpush2.msra.mxu1 %v1820_v48  ;;  %2157 = vmatpush2.msra.mxu0 %v1919_v51  ;;  %v1880_v48 = vld [vmem:[#allocation6 + $0x4b0] sm:$0xff] }
 0x177   : > { %2071 = vmatprep.subr.mxu1 %v1818_v49  ;;  %2158 = vmatprep.subr.mxu0 %v1917_v54 }
 0x178   : > { %2072 = vmatpush2.msra.mxu1 %v1817_v3  ;;  %2159 = vmatpush2.msra.mxu0 %v1916_v57  ;;  %v1877_v3 = vld [vmem:[#allocation6 + $0x498] sm:$0xff] }
 0x179   : > { %2073 = vmatprep.subr.mxu1 %v1815_v17  ;;  %2160 = vmatprep.subr.mxu0 %v1914_v42  ;;  %v1874_v17 = vld [vmem:[#allocation6 + $0x480] sm:$0xff] }
 0x17a   : > { %2074 = vmatpush2.msra.mxu1 %v1814_v30  ;;  %2161 = vmatpush2.msra.mxu0 %v1913_v62 }
 0x17b   : > { %2075 = vmatprep.subr.mxu1 %v1812_v34  ;;  %2162 = vmatprep.subr.mxu0 %v1911_v63 }
 0x17c   : > { %2076 = vmatpush2.msra.mxu1 %v1811_v39  ;;  %2163 = vmatpush2.msra.mxu0 %v1910_v0 }
 0x17d   : > { %2077 = vmatprep.subr.mxu1 %v1809_v40  ;;  %2164 = vmatprep.subr.mxu0 %v1908_v19 }
 0x17e   : > { %2078 = vmatpush2.msra.mxu1 %v1808_v45  ;;  %2165 = vmatpush2.msra.mxu0 %v1907_v5 }
 0x17f   : > { %2079 = vmatprep.subr.mxu1 %v1806_v53  ;;  %2166 = vmatprep.subr.mxu0 %v1905_v59 }
 0x180   : > { %2080 = vmatpush2.msra.mxu1 %v1805_v55  ;;  %2167 = vmatpush2.msra.mxu0 %v1904_v9 }
 0x181   : > { %2081 = vmatprep.subr.mxu1 %v1803_v58  ;;  %2168 = vmatprep.subr.mxu0 %v1902_v28 }
 0x182   : > { %2082 = vmatpush2.msra.mxu1 %v1802_v61  ;;  %2169 = vmatpush2.msra.mxu0 %v1901_v21 }
 0x183   : > { %2083 = vmatprep.subr.mxu1 %v1800_v35  ;;  %2170 = vmatprep.subr.mxu0 %v1899_v37 }
 0x184   : > { %2084 = vmatpush2.msra.mxu1 %v1799_v60  ;;  %2171 = vmatpush2.msra.mxu0 %v1898_v1 }
 0x185   : > { %2085 = vmatprep.subr.mxu1 %v1797_v15  ;;  %2172 = vmatprep.subr.mxu0 %v1896_v52  ;;  %v467_v52 = vld [vmem:[#allocation3] sm:$0x3f] }
 0x186   : > { %2086 = vmatpush2.msra.mxu1 %v1796_v44  ;;  %2173 = vmatpush2.msra.mxu0 %v1895_v27 }
 0x187   : > { %2087 = vmatprep.subr.mxu1 %v1794_v50  ;;  %2174 = vmatprep.subr.mxu0 %v1893_v23 }
 0x188   : > { %2088 = vmatpush2.msra.mxu1 %v1793_v8  ;;  %2175 = vmatpush2.msra.mxu0 %v1892_v2 }
 0x189   : > { %2089 = vmatprep.subr.mxu1 %v1791_v47  ;;  %2176 = vmatprep.subr.mxu0 %v1890_v12  ;;  %v525_v47 = vlaneseq }
 0x18a   : > { %2090 = vmatpush2.msra.mxu1 %v1790_v6  ;;  %2177 = vmatpush2.msra.mxu0 %v1889_v16 }
 0x18b   : > { %2091 = vmatprep.subr.mxu1 %v1788_v20  ;;  %2178 = vmatprep.subr.mxu0 %v1887_v22  ;;  %v4744_v21 = vshrl.u32 %v525_v47, 7 }
 0x18c   : > { %2092 = vmatpush2.msra.mxu1 %v1787_v41  ;;  %2179 = vmatpush2.msra.mxu0 %v1886_v24 }
 0x18d   : > { %2093 = vmatprep.subr.mxu1 %v1785_v56  ;;  %2180 = vmatprep.subr.mxu0 %v1884_v26  ;;  %5792 = vst [vmem:[#allocation35_spill] sm:$0xff] %v4744_v21  ;;  %v4751_v41 = vsub.s32 0, %v4744_v21  ;;  %v4759_v27 = vsub.s32 1, %v4744_v21  ;;  %v547_v22 = vsub.s32 5, %v4744_v21 }
 0x18e   : > { %2094 = vmatpush2.msra.mxu1 %v1784_v46  ;;  %2181 = vmatpush2.msra.mxu0 %v1883_v29  ;;  %v5717_v46 = vsub.s32 2, %v4744_v21 }
 0x18f   : > { %2095 = vmatprep.subr.mxu1 %v1782_v7  ;;  %2182 = vmatprep.subr.mxu0 %v1881_v31  ;;  %5793 = vst [vmem:[#allocation43_spill] sm:$0xff] %v4751_v41  ;;  %5794 = vst [vmem:[#allocation37_spill] sm:$0xff] %v4759_v27  ;;  %v539_v7 = vsub.s32 3, %v4744_v21  ;;  %v4763_v23 = vrot.slane %v467_v52, %v4751_v41  ;;  %v4774_v12 = vrot.slane %v467_v52, %v4759_v27 }
 0x190   : > { %2096 = vmatpush2.msra.mxu1 %v1781_v4  ;;  %2183 = vmatpush2.msra.mxu0 %v1880_v48 }
 0x191   : > { %2097 = vmatprep.subr.mxu1 %v1779_v10  ;;  %2184 = vmatprep.subr.mxu0 %v1878_v36  ;;  %v4771_v10 = vrot.slane %v467_v52, %v5717_v46 }
 0x192   : > { %2098 = vmatpush2.msra.mxu1 %v1778_v14  ;;  %2185 = vmatpush2.msra.mxu0 %v1877_v3  ;;  %v4776_v14 = vrot.slane %v467_v52, %v539_v7 }
 0x193   : > { %2213 = vmatprep.subr.mxu1 %v1968_v18  ;;  %2186 = vmatprep.subr.mxu0 %v1875_v13  ;;  %v543_v18 = vsub.s32 4, %v4744_v21 }
 0x194   : > { %2187 = vmatpush2.msra.mxu0 %v1874_v17  ;;  %v4801_v17 = vrot.slane %v467_v52, %v547_v22 }
 0x195   : > { %3247 = vmatprep.subr.mxu0 %v1825_v32  ;;  %v4799_v13 = vrot.slane %v467_v52, %v543_v18 }
 0x1a2   : > { %v653_v33 = vpop.f32.mrf.mxu0  ;;  %v4694_v49 = vpop.f32.mrf.mxu1 }
 0x1a3   : > { %v654_v16 = vadd.f32 %v653_v33, %v4763_v23  ;;  %v4787_v29 = vadd.f32 %v4694_v49, %v4771_v10 }
 0x1a4   : > { %v655_v25 = vpop.f32.mrf.mxu0  ;;  %v744_v30 = vpop.f32.mrf.mxu1 }
 0x1a5   : > { %v656_v31 = vadd.f32 %v655_v25, %v4774_v12  ;;  %v4791_v48 = vadd.f32 %v744_v30, %v4776_v14  ;;  %v854_v3 = vmax.f32 %v654_v16, 0.0 }
 0x1a7   : > { %v855_v47 = vmax.f32 %v656_v31, 0.0 }
 0x1a9   : > { %v659_v34 = vpop.f32.mrf.mxu0  ;;  %v748_v38 = vpop.f32.mrf.mxu1 }
 0x1aa   : > { %v4794_v36 = vadd.f32 %v659_v34, %v4763_v23  ;;  %v4797_v33 = vadd.f32 %v748_v38, %v4771_v10 }
 0x1ab   : > { %v661_v39 = vpop.f32.mrf.mxu0  ;;  %v750_v11 = vpop.f32.mrf.mxu1 }
 0x1ac   : > { %v662_v30 = vadd.f32 %v661_v39, %v4774_v12  ;;  %v4810_v34 = vadd.f32 %v750_v11, %v4776_v14  ;;  %v860_v7 = vmax.f32 %v4794_v36, 0.0 }
 0x1ae   : > { %v861_v46 = vmax.f32 %v662_v30, 0.0 }
 0x1b2   : > { %v4696_v40 = vpop.f32.mrf.mxu0  ;;  %v4698_v43 = vpop.f32.mrf.mxu1 }
 0x1b3   : > { %v4816_v52 = vadd.f32 %v4696_v40, %v4763_v23  ;;  %v4820_v16 = vadd.f32 %v4698_v43, %v4771_v10 }
 0x1b4   : > { %v4700_v45 = vpop.f32.mrf.mxu0  ;;  %v4702_v51 = vpop.f32.mrf.mxu1 }
 0x1b5   : > { %v4825_v39 = vadd.f32 %v4700_v45, %v4774_v12  ;;  %v4829_v11 = vadd.f32 %v4702_v51, %v4776_v14  ;;  %v866_v18 = vmax.f32 %v4816_v52, 0.0 }
 0x1b8   : > { %v4704_v53 = vpop.f32.mrf.mxu0  ;;  %v4706_v54 = vpop.f32.mrf.mxu1 }
 0x1b9   : > { %v4834_v40 = vadd.f32 %v4704_v53, %v4763_v23  ;;  %v4838_v43 = vadd.f32 %v4706_v54, %v4771_v10 }
 0x1ba   : > { %v4708_v55 = vpop.f32.mrf.mxu0  ;;  %v4710_v57 = vpop.f32.mrf.mxu1 }
 0x1bb   : > { %5795 = vst [vmem:[#allocation39_spill] sm:$0xff] %v4838_v43  ;;  %v4842_v31 = vadd.f32 %v4708_v55, %v4774_v12  ;;  %v4852_v53 = vadd.f32 %v4710_v57, %v4776_v14 }
 0x1bd   : > { %5796 = vst [vmem:[#allocation40_spill] sm:$0xff] %v4852_v53  ;;  %v873_v55 = vmax.f32 %v4842_v31, 0.0 }
 0x1bf   : > { %v4712_v58 = vpop.f32.mrf.mxu0  ;;  %v997_v42 = vpop.f32.mrf.mxu1 }
 0x1c0   : > { %v998_v22 = vadd.f32 %v997_v42, %v4763_v23  ;;  %v867_v42 = vmax.f32 %v4825_v39, 0.0 }
 0x1c1   : > { %v4714_v61 = vpop.f32.mrf.mxu0  ;;  %v999_v62 = vpop.f32.mrf.mxu1 }
 0x1c2   : > { %v1000_v45 = vadd.f32 %v999_v62, %v4774_v12  ;;  %v4860_v62 = vadd.f32 %v4712_v58, %v4799_v13  ;;  %v1198_v57 = vmax.f32 %v998_v22, 0.0  ;;  %v4868_v25 = vadd.f32 %v4714_v61, %v4801_v17 }
 0x1c4   : > { %v1199_v58 = vmax.f32 %v1000_v45, 0.0  ;;  %v4893_v41 = vmax.f32 %v854_v3, %v1198_v57 }
 0x1c5   : > { %v4716_v35 = vpop.f32.mrf.mxu0  ;;  %v4718_v63 = vpop.f32.mrf.mxu1 }
 0x1c6   : > { %v1004_v54 = vadd.f32 %v4718_v63, %v4763_v23  ;;  %v872_v63 = vmax.f32 %v4834_v40, 0.0  ;;  %v4880_v39 = vadd.f32 %v4716_v35, %v4799_v13  ;;  %v858_v40 = vmax.f32 %v4860_v62, 0.0 }
 0x1c7   : > { %v4720_v60 = vpop.f32.mrf.mxu0  ;;  %v4722_v0 = vpop.f32.mrf.mxu1  ;;  %v859_v35 = vmax.f32 %v4868_v25, 0.0  ;;  %v4900_v62 = vmax.f32 %v855_v47, %v1199_v58 }
 0x1c8   : > { %v1006_v30 = vadd.f32 %v4722_v0, %v4774_v12  ;;  %v1204_v22 = vmax.f32 %v1004_v54, 0.0  ;;  %v4887_v31 = vadd.f32 %v4720_v60, %v4801_v17  ;;  %v864_v25 = vmax.f32 %v4880_v39, 0.0 }
 0x1ca   : > { %v1205_v45 = vmax.f32 %v1006_v30, 0.0  ;;  %v4909_v53 = vmax.f32 %v860_v7, %v1204_v22  ;;  %v865_v47 = vmax.f32 %v4887_v31, 0.0 }
 0x1cb   : > { %v4724_v15 = vpop.f32.mrf.mxu0  ;;  %v4726_v19 = vpop.f32.mrf.mxu1 }
 0x1cc   : > { %v1010_v61 = vadd.f32 %v4726_v19, %v4763_v23  ;;  %v4891_v52 = vadd.f32 %v4724_v15, %v4799_v13  ;;  %v4914_v58 = vmax.f32 %v861_v46, %v1205_v45 }
 0x1cd   : > { %v4728_v44 = vpop.f32.mrf.mxu0  ;;  %v4730_v5 = vpop.f32.mrf.mxu1 }
 0x1ce   : > { %v1012_v19 = vadd.f32 %v4730_v5, %v4774_v12  ;;  %v1210_v5 = vmax.f32 %v1010_v61, 0.0  ;;  %5797 = vst [vmem:[#allocation41_spill] sm:$0xff] %v4914_v58 }
 0x1d1   : > { %v4732_v50 = vpop.f32.mrf.mxu0  ;;  %v4734_v59 = vpop.f32.mrf.mxu1 }
 0x1d2   : > { %v1016_v54 = vadd.f32 %v4734_v59, %v4763_v23  ;;  %v4923_v39 = vadd.f32 %v4732_v50, %v4799_v13 }
 0x1d3   : > { %v4736_v8 = vpop.f32.mrf.mxu0  ;;  %v4738_v9 = vpop.f32.mrf.mxu1 }
 0x1d4   : > { %v1018_v60 = vadd.f32 %v4738_v9, %v4774_v12  ;;  %v1216_v7 = vmax.f32 %v1016_v54, 0.0  ;;  %v4927_v22 = vadd.f32 %v4736_v8, %v4801_v17 }
 0x1d6   : > { %5798 = vst [vmem:[#allocation42_spill] sm:$0xff] %v4927_v22  ;;  %v1217_v61 = vmax.f32 %v1018_v60, 0.0 }
 0x1dd   : > { %v4740_v28 = vpop.f32.mrf.mxu0  ;;  %v4742_v6 = vpop.f32.mrf.mxu1 }
 0x1de   : > { %v1087_v15 = vadd.f32 %v4740_v28, %v4771_v10  ;;  %v1176_v3 = vadd.f32 %v4742_v6, %v4799_v13  ;;  %v4919_v28 = vadd.f32 %v4728_v44, %v4801_v17  ;;  %v1211_v6 = vmax.f32 %v1012_v19, 0.0 }
 0x1df   : > { %v4746_v20 = vpop.f32.mrf.mxu0  ;;  %v4748_v37 = vpop.f32.mrf.mxu1  ;;  %v4931_v44 = vmax.f32 %v866_v18, %v1210_v5 }
 0x1e0   : > { %v1089_v59 = vadd.f32 %v4746_v20, %v4776_v14  ;;  %v1200_v46 = vmax.f32 %v1087_v15, 0.0  ;;  %v1202_v31 = vmax.f32 %v1176_v3, 0.0  ;;  %v1178_v45 = vadd.f32 %v4748_v37, %v4801_v17 }
 0x1e1   : > { %5799 = vst [vmem:[#allocation18_spill] sm:$0xff] %v4931_v44  ;;  %v4944_v18 = vmax.f32 %v867_v42, %v1211_v6 }
 0x1e2   : > { %v1201_v19 = vmax.f32 %v1089_v59, 0.0  ;;  %v4952_v59 = vmax.f32 %v873_v55, %v1217_v61  ;;  %v4956_v44 = vmax.f32 %v858_v40, %v1202_v31 }
 0x1e3   : > { %v4753_v1 = vpop.f32.mrf.mxu0  ;;  %v4755_v56 = vpop.f32.mrf.mxu1 }
 0x1e4   : > { %v1093_v50 = vadd.f32 %v4753_v1, %v4771_v10  ;;  %v1182_v54 = vadd.f32 %v4755_v56, %v4799_v13  ;;  %v4947_v1 = vmax.f32 %v872_v63, %v1216_v7 }
 0x1e5   : > { %v4765_v4 = vpop.f32.mrf.mxu0  ;;  %v4767_v2 = vpop.f32.mrf.mxu1 }
 0x1e6   : > { %v1095_v60 = vadd.f32 %v4765_v4, %v4776_v14  ;;  %v1184_v15 = vadd.f32 %v4767_v2, %v4801_v17  ;;  %v5800_v4 = vmax.f32 %v4787_v29, 0.0  ;;  %v1203_v2 = vmax.f32 %v1178_v45, 0.0 }
 0x1e7   : > { %v1206_v6 = vmax.f32 %v1093_v50, 0.0  ;;  %v1208_v3 = vmax.f32 %v1182_v54, 0.0 }
 0x1e8   : > { %v1224_v8 = vmax.f32 %v5800_v4, %v1200_v46  ;;  %v1207_v7 = vmax.f32 %v1095_v60, 0.0  ;;  %v1209_v56 = vmax.f32 %v1184_v15, 0.0  ;;  %v4968_v31 = vmax.f32 %v859_v35, %v1203_v2 }
 0x1e9   : > { %v4781_v24 = vpop.f32.mrf.mxu0  ;;  %v4783_v26 = vpop.f32.mrf.mxu1  ;;  %v4976_v54 = vmax.f32 %v864_v25, %v1208_v3  ;;  %v5803_v35 = vmax.f32 %v4810_v34, 0.0  ;;  %v5805_v34 = vmax.f32 %v4891_v52, 0.0 }
 0x1ea   : > { %v1099_v37 = vadd.f32 %v4781_v24, %v4771_v10  ;;  %v5801_v24 = vmax.f32 %v4791_v48, 0.0  ;;  %v1188_v63 = vadd.f32 %v4783_v26, %v4799_v13  ;;  %v4982_v60 = vmax.f32 %v865_v47, %v1209_v56 }
 0x1eb   : > { %v4803_v32 = vpop.f32.mrf.mxu0  ;;  %v4805_v49 = vpop.f32.mrf.mxu1  ;;  %v5806_v56 = vmax.f32 %v4829_v11, 0.0  ;;  %v5807_v11 = vmax.f32 %v4919_v28, 0.0 }
 0x1ec   : > { %v1225_v42 = vmax.f32 %v5801_v24, %v1201_v19  ;;  %v1212_v22 = vmax.f32 %v1099_v37, 0.0  ;;  %v1101_v55 = vadd.f32 %v4803_v32, %v4776_v14  ;;  %v1190_v26 = vadd.f32 %v4805_v49, %v4801_v17 }
 0x1ed   : > { %v5802_v32 = vmax.f32 %v4797_v33, 0.0  ;;  %v5804_v49 = vmax.f32 %v4820_v16, 0.0 }
 0x1ee   : > { %v1213_v15 = vmax.f32 %v1101_v55, 0.0  ;;  %v1215_v25 = vmax.f32 %v1190_v26, 0.0 }
 0x1ef   : > { %v4845_v36 = vpop.f32.mrf.mxu0  ;;  %v4847_v51 = vpop.f32.mrf.mxu1 }
 0x1f0   : > { %v4993_v16 = vadd.f32 %v4847_v51, %v4799_v13 }
 0x1f1   : > { %v4873_v21 = vpop.f32.mrf.mxu0  ;;  %v4875_v27 = vpop.f32.mrf.mxu1 }
 0x1f2   : > { %v5000_v55 = vadd.f32 %v4873_v21, %v4776_v14 }
 0x1f4   : > { %v1219_v28 = vmax.f32 %v5000_v55, 0.0 }
 0x1fb   : > { %v1365_v0 = vpop.f32.mrf.mxu0  ;;  %v1454_v38 = vpop.f32.mrf.mxu1 }
 0x1fc   : > { %v1366_v29 = vadd.f32 %v1365_v0, %v4763_v23  ;;  %v1455_v40 = vadd.f32 %v1454_v38, %v4771_v10  ;;  %v1230_v0 = vmax.f32 %v5802_v32, %v1206_v6  ;;  %v1214_v38 = vmax.f32 %v1188_v63, 0.0 }
 0x1fd   : > { %v1367_v30 = vpop.f32.mrf.mxu0  ;;  %v1456_v57 = vpop.f32.mrf.mxu1 }
 0x1fe   : > { %v1368_v61 = vadd.f32 %v1367_v30, %v4774_v12  ;;  %v1457_v48 = vadd.f32 %v1456_v57, %v4776_v14  ;;  %v1105_v30 = vadd.f32 %v4845_v36, %v4771_v10  ;;  %v1231_v57 = vmax.f32 %v5803_v35, %v1207_v7 }
 0x1ff   : > { %v1460_v9 = vpop.f32.mrf.mxu1  ;;  %v1568_v37 = vmax.f32 %v1455_v40, 0.0  ;;  %v4989_v63 = vmax.f32 %v5805_v34, %v1214_v38  ;;  %v1237_v7 = vmax.f32 %v5806_v56, %v1213_v15 }
 0x200   : > { %v1371_v20 = vpop.f32.mrf.mxu0  ;;  %v1461_v19 = vadd.f32 %v1460_v9, %v4771_v10  ;;  %v1566_v9 = vmax.f32 %v1366_v29, 0.0  ;;  %v1567_v4 = vmax.f32 %v1368_v61, 0.0  ;;  %v1569_v33 = vmax.f32 %v1457_v48, 0.0 }
 0x201   : > { %v1462_v43 = vpop.f32.mrf.mxu1  ;;  %v1372_v45 = vadd.f32 %v1371_v20, %v4763_v23  ;;  %v1236_v20 = vmax.f32 %v5804_v49, %v1212_v22  ;;  %v1218_v47 = vmax.f32 %v1105_v30, 0.0  ;;  %v1592_v40 = vmax.f32 %v1224_v8, %v1568_v37 }
 0x202   : > { %v1373_v58 = vpop.f32.mrf.mxu0  ;;  %v1574_v24 = vmax.f32 %v1461_v19, 0.0  ;;  %v1463_v6 = vadd.f32 %v1462_v43, %v4776_v14  ;;  %v5004_v43 = vadd.f32 %v4875_v27, %v4801_v17  ;;  %v1590_v29 = vmax.f32 %v4893_v41, %v1566_v9  ;;  %v5808_v27 = vld [vmem:[#allocation39_spill] sm:$0xff] }
 0x203   : > { %v1466_v50 = vpop.f32.mrf.mxu1  ;;  %v1572_v3 = vmax.f32 %v1372_v45, 0.0  ;;  %v1374_v22 = vadd.f32 %v1373_v58, %v4774_v12  ;;  %v1591_v51 = vmax.f32 %v4900_v62, %v1567_v4  ;;  %v1593_v61 = vmax.f32 %v1225_v42, %v1569_v33 }
 0x204   : > { %v4950_v5 = vpop.f32.mrf.mxu0  ;;  %v1467_v52 = vadd.f32 %v1466_v50, %v4771_v10  ;;  %v5011_v48 = vmax.f32 %v5807_v11, %v1215_v25  ;;  %v1598_v26 = vmax.f32 %v1230_v0, %v1574_v24  ;;  %v1575_v45 = vmax.f32 %v1463_v6, 0.0  ;;  %v5811_v11 = vld [vmem:[#allocation18_spill] sm:$0xff] }
 0x205   : > { %v1468_v36 = vpop.f32.mrf.mxu1  ;;  %v1596_v21 = vmax.f32 %v4909_v53, %v1572_v3  ;;  %v5809_v32 = vmax.f32 %v5808_v27, 0.0  ;;  %v1220_v41 = vmax.f32 %v4993_v16, 0.0  ;;  %v1573_v8 = vmax.f32 %v1374_v22, 0.0  ;;  %v5810_v3 = vld [vmem:[#allocation41_spill] sm:$0xff] }
 0x206   : > { %v1379_v46 = vpop.f32.mrf.mxu0  ;;  %v1378_v62 = vadd.f32 %v4950_v5, %v4763_v23  ;;  %v1221_v50 = vmax.f32 %v5004_v43, 0.0  ;;  %v1580_v30 = vmax.f32 %v1467_v52, 0.0  ;;  %v1614_v0 = vmax.f32 %v1590_v29, %v1592_v40  ;;  %v1959_v16 = vld [vmem:[#allocation6 + $0x728] sm:$0xff] }
 0x207   : > { %v1472_v19 = vpop.f32.mrf.mxu1  ;;  %v5016_v38 = vmax.f32 %v5809_v32, %v1218_v47  ;;  %v1615_v35 = vmax.f32 %v1591_v51, %v1593_v61  ;;  %v1380_v49 = vadd.f32 %v1379_v46, %v4774_v12  ;;  %v1469_v15 = vadd.f32 %v1468_v36, %v4776_v14 }
 0x208   : > { %v1383_v2 = vpop.f32.mrf.mxu0  ;;  %v1616_v37 = vmax.f32 %v1596_v21, %v1598_v26  ;;  %v1599_v4 = vmax.f32 %v1231_v57, %v1575_v45  ;;  %v1597_v24 = vmax.f32 %v5810_v3, %v1573_v8  ;;  %v1578_v6 = vmax.f32 %v1378_v62, 0.0 }
 0x209   : > { %v1474_v33 = vpop.f32.mrf.mxu1  ;;  %v1384_v34 = vadd.f32 %v1383_v2, %v4763_v23  ;;  %v1473_v47 = vadd.f32 %v1472_v19, %v4771_v10  ;;  %v1604_v56 = vmax.f32 %v1236_v20, %v1580_v30  ;;  %v1579_v52 = vmax.f32 %v1380_v49, 0.0  ;;  %v5812_v49 = vld [vmem:[#allocation40_spill] sm:$0xff] }
 0x20a   : > { %v1385_v58 = vpop.f32.mrf.mxu0  ;;  %v1581_v57 = vmax.f32 %v1469_v15, 0.0  ;;  %v1475_v40 = vadd.f32 %v1474_v33, %v4776_v14  ;;  %v1617_v20 = vmax.f32 %v1597_v24, %v1599_v4  ;;  %v5813_v15 = vmax.f32 %v5812_v49, 0.0  ;;  %v1962_v24 = vld [vmem:[#allocation6 + $0x740] sm:$0xff] }
 0x20b   : > { %v1386_v29 = vadd.f32 %v1385_v58, %v4774_v12  ;;  %v1584_v21 = vmax.f32 %v1384_v34, 0.0  ;;  %v1586_v26 = vmax.f32 %v1473_v47, 0.0  ;;  %v1774_v49 = vld [vmem:[#allocation6 + $0x160] sm:$0xff] }
 0x20c   : > { %v1605_v27 = vmax.f32 %v1237_v7, %v1581_v57  ;;  %v1587_v8 = vmax.f32 %v1475_v40, 0.0  ;;  %v1660_v40 = vld [vmem:[#allocation2 + $0x20] sm:$0x3] }
 0x20d   : > { %v1585_v32 = vmax.f32 %v1386_v29, 0.0  ;;  %v1610_v4 = vmax.f32 %v5016_v38, %v1586_v26  ;;  %v1956_v29 = vld [vmem:[#allocation6 + $0x710] sm:$0xff] }
 0x20f   : > { %v1609_v38 = vmax.f32 %v4952_v59, %v1585_v32 }
 0x212   : > { %v1543_v42 = vpop.f32.mrf.mxu0 }
 0x213   : > { %v1544_v53 = vadd.f32 %v1543_v42, %v4799_v13  ;;  %v1967_v42 = vld [vmem:[#allocation6 + $0x768] sm:$0xff] }
 0x214   : > { %v1545_v9 = vpop.f32.mrf.mxu0 }
 0x215   : > { %v1570_v25 = vmax.f32 %v1544_v53, 0.0  ;;  %v1546_v5 = vadd.f32 %v1545_v9, %v4801_v17  ;;  %v1608_v9 = vmax.f32 %v4947_v1, %v1584_v21  ;;  %v1953_v21 = vld [vmem:[#allocation6 + $0x6f8] sm:$0xff] }
 0x216   : > { %v1549_v22 = vpop.f32.mrf.mxu0 }
 0x217   : > { %v1594_v46 = vmax.f32 %v4956_v44, %v1570_v25  ;;  %v1571_v55 = vmax.f32 %v1546_v5, 0.0  ;;  %v1550_v36 = vadd.f32 %v1549_v22, %v4799_v13  ;;  %v1602_v44 = vmax.f32 %v5811_v11, %v1578_v6  ;;  %v1961_v22 = vld [vmem:[#allocation6 + $0x738] sm:$0xff] }
 0x218   : > { %v1551_v51 = vpop.f32.mrf.mxu0 }
 0x219   : > { %v5034_v61 = vmax.f32 %v1614_v0, %v1594_v46  ;;  %v1595_v23 = vmax.f32 %v4968_v31, %v1571_v55  ;;  %v1576_v2 = vmax.f32 %v1550_v36, 0.0  ;;  %v1552_v10 = vadd.f32 %v1551_v51, %v4801_v17  ;;  %v1958_v55 = vld [vmem:[#allocation6 + $0x720] sm:$0xff] }
 0x21a   : > { %v1555_v45 = vpop.f32.mrf.mxu0  ;;  %v1603_v31 = vmax.f32 %v4944_v18, %v1579_v52  ;;  %v1243_v18 = vmax.f32 %v5813_v15, %v1219_v28  ;;  %v1618_v7 = vmax.f32 %v1602_v44, %v1604_v56  ;;  %v5814_v28 = vmax.f32 %v4923_v39, 0.0  ;;  %v5815_v39 = vld [vmem:[#allocation42_spill] sm:$0xff] }
 0x21b   : > { %1632 = vst [vmem:[#allocation2 + $0x8] sm:$0xff] %v5034_v61  ;;  %v5040_v19 = vmax.f32 %v1615_v35, %v1595_v23  ;;  %v1600_v12 = vmax.f32 %v4976_v54, %v1576_v2  ;;  %v1577_v14 = vmax.f32 %v1552_v10, 0.0  ;;  %v1556_v58 = vadd.f32 %v1555_v45, %v4799_v13  ;;  %v1965_v54 = vld [vmem:[#allocation6 + $0x758] sm:$0xff]  ;;  %v1955_v2 = vld [vmem:[#allocation6 + $0x708] sm:$0xff] }
 0x21c   : > { %v1557_v62 = vpop.f32.mrf.mxu0  ;;  %v1244_v1 = vmax.f32 %v5814_v28, %v1220_v41  ;;  %v1619_v6 = vmax.f32 %v1603_v31, %v1605_v27  ;;  %v1611_v34 = vmax.f32 %v1243_v18, %v1587_v8  ;;  %v5816_v41 = vmax.f32 %v5815_v39, 0.0  ;;  %v1777_v27 = vld [vmem:[#allocation6 + $0x178] sm:$0xff]  ;;  %v1950_v18 = vld [vmem:[#allocation6 + $0x6e0] sm:$0xff] }
 0x21d   : > { %1633 = vst [vmem:[#allocation2] sm:$0xff] %v5040_v19  ;;  %v5046_v30 = vmax.f32 %v1616_v37, %v1600_v12  ;;  %v1601_v53 = vmax.f32 %v4982_v60, %v1577_v14  ;;  %v1582_v0 = vmax.f32 %v1556_v58, 0.0  ;;  %v1558_v35 = vadd.f32 %v1557_v62, %v4801_v17  ;;  %2099 = vmatprep.mubr.f32.mxu1 %v5040_v19  ;;  %v1964_v37 = vld [vmem:[#allocation6 + $0x750] sm:$0xff]  ;;  %v1949_v28 = vld [vmem:[#allocation6 + $0x6d8] sm:$0xff]  ;;  %v1946_v39 = vld [vmem:[#allocation6 + $0x6c0] sm:$0xff] }
 0x21e   : > { %v1561_v33 = vpop.f32.mrf.mxu0  ;;  %2100 = vmatmul.mubr.f32.vlgmr.msra.gmra.mxu1 %v5034_v61  ;;  %v1245_v59 = vmax.f32 %v5816_v41, %v1221_v50  ;;  %v1620_v52 = vmax.f32 %v1608_v9, %v1610_v4  ;;  %v1621_v51 = vmax.f32 %v1609_v38, %v1611_v34  ;;  %v1661_v50 = vld [vmem:[#allocation2 + $0x40] sm:$0x3]  ;;  %v1952_v12 = vld [vmem:[#allocation6 + $0x6f0] sm:$0xff]  ;;  %v1718_v14 = vrot.slane %v1660_v40, 2  ;;  %v1813_v41 = vld [vmem:[#allocation6 + $0x298] sm:$0xff] }
 0x21f   : > { %v5056_v25 = vmax.f32 %v1617_v20, %v1601_v53  ;;  %v1606_v60 = vmax.f32 %v4989_v63, %v1582_v0  ;;  %v1583_v5 = vmax.f32 %v1558_v35, 0.0  ;;  %v1562_v3 = vadd.f32 %v1561_v33, %v4799_v13  ;;  %2214 = vmatpush1.msra.mxu1 %v1967_v42  ;;  %v1822_v42 = vld [vmem:[#allocation6 + $0x2e0] sm:$0xff]  ;;  %v1819_v9 = vld [vmem:[#allocation6 + $0x2c8] sm:$0xff] }
 0x220   : > { %v1563_v47 = vpop.f32.mrf.mxu0  ;;  %2215 = vmatprep.subr.mxu1 %v1965_v54  ;;  %v1674_v26 = vrot.slane %v5046_v30, 1  ;;  %v1705_v32 = vrot.slane %v5046_v30, 2  ;;  %v1720_v8 = vrot.slane %v1661_v50, 2  ;;  %v1657_v38 = vld [vmem:[#allocation2 + $0x40] sm:$0x1]  ;;  %v1810_v40 = vld [vmem:[#allocation6 + $0x280] sm:$0xff] }
 0x221   : > { %v5065_v56 = vmax.f32 %v1618_v7, %v1606_v60  ;;  %v1607_v63 = vmax.f32 %v5011_v48, %v1583_v5  ;;  %v1588_v46 = vmax.f32 %v1562_v3, 0.0  ;;  %v1564_v13 = vadd.f32 %v1563_v47, %v4801_v17  ;;  %2216 = vmatpush1.msra.mxu1 %v1964_v37  ;;  %2105 = vmatprep.mubr.f32.mxu1 %v5056_v25  ;;  %v1771_v5 = vld [vmem:[#allocation6 + $0x148] sm:$0xff]  ;;  %v1940_v50 = vld [vmem:[#allocation6 + $0x690] sm:$0xff] }
 0x222   : > { %2217 = vmatprep.subr.mxu1 %v1962_v24  ;;  %2106 = vmatmul.mubr.f32.gmra.mxu1 %v5046_v30  ;;  %v1648_v36 = vld [vmem:[#allocation2 + $0x8] sm:$0xfe]  ;;  %v1677_v44 = vrot.slane %v5056_v25, 1 }
 0x223   : > { %v5075_v48 = vmax.f32 %v1619_v6, %v1607_v63  ;;  %v1612_v57 = vmax.f32 %v1244_v1, %v1588_v46  ;;  %v1589_v17 = vmax.f32 %v1564_v13, 0.0  ;;  %2218 = vmatpush1.msra.mxu1 %v1961_v22  ;;  %v1673_v23 = vrot.slane %v1648_v36, 1  ;;  %v1816_v1 = vld [vmem:[#allocation6 + $0x2b0] sm:$0xff]  ;;  %v1947_v22 = vld [vmem:[#allocation6 + $0x6c8] sm:$0xff] }
 0x224   : > { %2219 = vmatprep.subr.mxu1 %v1959_v16  ;;  %v1649_v43 = vld [vmem:[#allocation2] sm:$0xfe]  ;;  %v1679_v53 = vrot.slane %v5065_v56, 1  ;;  %v1710_v35 = vrot.slane %v5065_v56, 2  ;;  %v1708_v63 = vrot.slane %v5056_v25, 2 }
 0x225   : > { %v5077_v10 = vmax.f32 %v1620_v52, %v1612_v57  ;;  %v1613_v20 = vmax.f32 %v1245_v59, %v1589_v17  ;;  %v1676_v11 = vrot.slane %v1649_v43, 1  ;;  %2220 = vmatpush1.msra.mxu1 %v1958_v55  ;;  %2111 = vmatprep.mubr.f32.mxu1 %v5075_v48  ;;  %v1681_v45 = vrot.slane %v5075_v48, 1  ;;  %v1659_v0 = vld [vmem:[#allocation2] sm:$0xfc]  ;;  %v1656_v52 = vld [vmem:[#allocation2 + $0x20] sm:$0x1] }
 0x226   : > { %2221 = vmatprep.subr.mxu1 %v1956_v29  ;;  %2112 = vmatmul.mubr.f32.gmra.mxu1 %v5065_v56  ;;  %v5092_v62 = vsel %vm1672_vm4, %v1673_v23, %v1674_v26  ;;  %v1712_v7 = vrot.slane %v5075_v48, 2  ;;  %v5106_v4 = vsel %vm1703_vm5, %v1705_v32, %v1710_v35  ;;  %v1707_v3 = vrot.slane %v1659_v0, 2  ;;  %v1768_v46 = vld [vmem:[#allocation6 + $0x130] sm:$0xff]  ;;  %v1765_v57 = vld [vmem:[#allocation6 + $0x118] sm:$0xff]  ;;  %v1943_v29 = vld [vmem:[#allocation6 + $0x6a8] sm:$0xff] }
 0x227   : > { %v5084_v58 = vmax.f32 %v1621_v51, %v1613_v20  ;;  %v5087_v31 = vsel %vm1672_vm4, %v1676_v11, %v1677_v44  ;;  %2222 = vmatpush1.msra.mxu1 %v1955_v2  ;;  %v1714_v54 = vrot.slane %v5077_v10, 2  ;;  %v5099_v15 = vsel %vm1672_vm4, %v1677_v44, %v1681_v45  ;;  %v1944_v36 = vld [vmem:[#allocation6 + $0x6b0] sm:$0xff]  ;;  %v1941_v43 = vld [vmem:[#allocation6 + $0x698] sm:$0xff]  ;;  %v1762_v23 = vld [vmem:[#allocation6 + $0x100] sm:$0xff] }
 0x228   : > { %2188 = vmatprep.mubr.f32.mxu0 %v5087_v31  ;;  %2223 = vmatprep.subr.mxu1 %v1953_v21  ;;  %v5117_v24 = vsel %vm1672_vm4, %v1674_v26, %v1679_v53  ;;  %v1683_v13 = vrot.slane %v5077_v10, 1  ;;  %v5135_v16 = vsel %vm1703_vm5, %v1707_v3, %v1708_v63  ;;  %v1689_v59 = vrot.slane %v1657_v38, 1  ;;  %v1807_v20 = vld [vmem:[#allocation6 + $0x268] sm:$0xff]  ;;  %v1938_v11 = vld [vmem:[#allocation6 + $0x680] sm:$0xff]  ;;  %v1937_v21 = vld [vmem:[#allocation6 + $0x678] sm:$0xff] }
 0x229   : > { %2189 = vmatmul.mubr.f32.vlgmr.msra.gmra.mxu0 %v5092_v62  ;;  %2224 = vmatpush1.msra.mxu1 %v1952_v12  ;;  %v1716_v33 = vrot.slane %v5084_v58, 2  ;;  %v5110_v37 = vsel %vm1703_vm5, %v1710_v35, %v1714_v54  ;;  %v5113_v60 = vsel %vm1703_vm5, %v1714_v54, %v1718_v14  ;;  %v1685_v6 = vrot.slane %v5084_v58, 1  ;;  %v1759_v44 = vld [vmem:[#allocation6 + $0xe8] sm:$0xff]  ;;  %v1756_v14 = vld [vmem:[#allocation6 + $0xd0] sm:$0xff]  ;;  %v1798_v35 = vld [vmem:[#allocation6 + $0x220] sm:$0xff] }
 0x22a   : > { %3248 = vmatpush3.msra.mxu0 %v1777_v27  ;;  %2194 = vmatprep.mubr.f32.mxu0 %v5099_v15  ;;  %v5143_v17 = vsel %vm1672_vm4, %v1679_v53, %v1683_v13  ;;  %v1687_v2 = vrot.slane %v1656_v52, 1  ;;  %v1935_v12 = vld [vmem:[#allocation6 + $0x668] sm:$0xff]  ;;  %v1934_v27 = vld [vmem:[#allocation6 + $0x660] sm:$0xff]  ;;  %v1753_v53 = vld [vmem:[#allocation6 + $0xb8] sm:$0xff] }
 0x22b   : > { %3249 = vmatprep.subr.mxu0 %v1822_v42  ;;  %2117 = vmatprep.mubr.f32.mxu1 %v5084_v58  ;;  %v5123_v34 = vsel %vm1703_vm5, %v1712_v7, %v1716_v33  ;;  %v5126_v47 = vsel %vm1703_vm5, %v1716_v33, %v1720_v8  ;;  %v5139_v55 = vsel %vm1672_vm4, %v1681_v45, %v1685_v6  ;;  %v1804_v45 = vld [vmem:[#allocation6 + $0x250] sm:$0xff]  ;;  %v1801_v8 = vld [vmem:[#allocation6 + $0x238] sm:$0xff]  ;;  %v1931_v0 = vld [vmem:[#allocation6 + $0x648] sm:$0xff] }
 0x22c   : > { %3250 = vmatpush3.msra.mxu0 %v1774_v49  ;;  %2225 = vmatprep.subr.mxu1 %v1950_v18  ;;  %v5147_v51 = vsel %vm1672_vm4, %v1685_v6, %v1689_v59  ;;  %v5151_v26 = vsel %vm1672_vm4, %v1683_v13, %v1687_v2  ;;  %v1932_v42 = vld [vmem:[#allocation6 + $0x650] sm:$0xff]  ;;  %v1929_v54 = vld [vmem:[#allocation6 + $0x638] sm:$0xff]  ;;  %v1750_v49 = vld [vmem:[#allocation6 + $0xa0] sm:$0xff] }
 0x22d   : > { %3251 = vmatprep.subr.mxu0 %v1819_v9  ;;  %2195 = vmatmul.mubr.f32.gmra.mxu0 %v5117_v24  ;;  %v1928_v18 = vld [vmem:[#allocation6 + $0x630] sm:$0xff]  ;;  %v1795_v9 = vld [vmem:[#allocation6 + $0x208] sm:$0xff]  ;;  %v1926_v33 = vld [vmem:[#allocation6 + $0x620] sm:$0xff] }
 0x22e   : > { %3252 = vmatpush3.msra.mxu0 %v1771_v5  ;;  %2118 = vmatmul.mubr.f32.gmra.mxu1 %v5077_v10  ;;  %v1747_v5 = vld [vmem:[#allocation6 + $0x88] sm:$0xff]  ;;  %v1792_v3 = vld [vmem:[#allocation6 + $0x1f0] sm:$0xff]  ;;  %v1922_v6 = vld [vmem:[#allocation6 + $0x600] sm:$0xff] }
 0x22f   : > { %2226 = vmatpush1.msra.mxu1 %v1949_v28  ;;  %3253 = vmatprep.subr.mxu0 %v1816_v1  ;;  %v1923_v28 = vld [vmem:[#allocation6 + $0x608] sm:$0xff]  ;;  %v1744_v1 = vld [vmem:[#allocation6 + $0x70] sm:$0xff]  ;;  %v1789_v38 = vld [vmem:[#allocation6 + $0x1d8] sm:$0xff] }
 0x230   : > { %2227 = vmatprep.subr.mxu1 %v1947_v22  ;;  %2277 = vmatprep.mubr.f32.mxu1 %v5135_v16  ;;  %v2016_v22 = vld [vmem:[#allocation6 + $0x8f0] sm:$0xff]  ;;  %v2015_v13 = vld [vmem:[#allocation6 + $0x8e8] sm:$0xff]  ;;  %v1738_v59 = vld [vmem:[#allocation6 + $0x40] sm:$0xff] }
 0x231   : > { %3254 = vmatpush3.msra.mxu0 %v1768_v46  ;;  %2200 = vmatprep.mubr.f32.mxu0 %v5139_v55  ;;  %v1741_v46 = vld [vmem:[#allocation6 + $0x58] sm:$0xff]  ;;  %v1783_v52 = vld [vmem:[#allocation6 + $0x1a8] sm:$0xff]  ;;  %v1732_v2 = vld [vmem:[#allocation6 + $0x10] sm:$0xff] }
 0x232   : > { %2228 = vmatpush1.msra.mxu1 %v1946_v39  ;;  %3255 = vmatprep.subr.mxu0 %v1813_v41  ;;  %v1786_v39 = vld [vmem:[#allocation6 + $0x1c0] sm:$0xff]  ;;  %v2013_v41 = vld [vmem:[#allocation6 + $0x8d8] sm:$0xff] }
 0x233   : > { %2201 = vmatmul.mubr.f32.gmra.mxu0 %v5143_v17  ;;  %2229 = vmatprep.subr.mxu1 %v1944_v36  ;;  %v2012_v36 = vld [vmem:[#allocation6 + $0x8d0] sm:$0xff] }
 0x234   : > { %3256 = vmatpush3.msra.mxu0 %v1765_v57  ;;  %2206 = vmatprep.mubr.f32.mxu0 %v5147_v51  ;;  %v2010_v57 = vld [vmem:[#allocation6 + $0x8c0] sm:$0xff] }
 0x235   : > { %2230 = vmatpush1.msra.mxu1 %v1943_v29  ;;  %3257 = vmatprep.subr.mxu0 %v1810_v40  ;;  %v1735_v29 = vld [vmem:[#allocation6 + $0x28] sm:$0xff]  ;;  %v2009_v40 = vld [vmem:[#allocation6 + $0x8b8] sm:$0xff] }
 0x236   : > { %2231 = vmatprep.subr.mxu1 %v1941_v43  ;;  %3258 = vmatpush3.msra.mxu0 %v1762_v23  ;;  %v1780_v43 = vld [vmem:[#allocation6 + $0x190] sm:$0xff]  ;;  %v2007_v23 = vld [vmem:[#allocation6 + $0x8a8] sm:$0xff] }
 0x237   : > { %2232 = vmatpush1.msra.mxu1 %v1940_v50  ;;  %3259 = vmatprep.subr.mxu0 %v1807_v20  ;;  %v2006_v50 = vld [vmem:[#allocation6 + $0x8a0] sm:$0xff]  ;;  %v1921_v20 = vld [vmem:[#allocation6 + $0x5f8] sm:$0xff] }
 0x238   : > { %2207 = vmatmul.mubr.f32.gmra.mxu0 %v5151_v26  ;;  %2233 = vmatprep.subr.mxu1 %v1938_v11  ;;  %v2004_v11 = vld [vmem:[#allocation6 + $0x890] sm:$0xff] }
 0x239   : > { %3260 = vmatpush3.msra.mxu0 %v1759_v44  ;;  %2234 = vmatpush1.msra.mxu1 %v1937_v21  ;;  %v1873_v44 = vld [vmem:[#allocation6 + $0x478] sm:$0xff]  ;;  %v2003_v21 = vld [vmem:[#allocation6 + $0x888] sm:$0xff] }
 0x23a   : > { %3261 = vmatprep.subr.mxu0 %v1804_v45  ;;  %2366 = vmatprep.mubr.f32.mxu0 %v5040_v19  ;;  %v1925_v19 = vld [vmem:[#allocation6 + $0x618] sm:$0xff]  ;;  %v1918_v45 = vld [vmem:[#allocation6 + $0x5e0] sm:$0xff] }
 0x23b   : > { %2235 = vmatprep.subr.mxu1 %v1935_v12  ;;  %3262 = vmatpush3.msra.mxu0 %v1756_v14  ;;  %v2001_v12 = vld [vmem:[#allocation6 + $0x878] sm:$0xff]  ;;  %v1870_v14 = vld [vmem:[#allocation6 + $0x460] sm:$0xff] }
 0x23c   : > { %2236 = vmatpush1.msra.mxu1 %v1934_v27  ;;  %3263 = vmatprep.subr.mxu0 %v1801_v8  ;;  %v2000_v27 = vld [vmem:[#allocation6 + $0x870] sm:$0xff]  ;;  %v1915_v8 = vld [vmem:[#allocation6 + $0x5c8] sm:$0xff] }
 0x23d   : > { %2237 = vmatprep.subr.mxu1 %v1932_v42  ;;  %3264 = vmatpush3.msra.mxu0 %v1753_v53  ;;  %v1998_v42 = vld [vmem:[#allocation6 + $0x860] sm:$0xff]  ;;  %v1867_v53 = vld [vmem:[#allocation6 + $0x448] sm:$0xff] }
 0x23e   : > { %2238 = vmatpush1.msra.mxu1 %v1931_v0  ;;  %3265 = vmatprep.subr.mxu0 %v1798_v35  ;;  %v1912_v0 = vld [vmem:[#allocation6 + $0x5b0] sm:$0xff]  ;;  %v1995_v35 = vld [vmem:[#allocation6 + $0x848] sm:$0xff] }
 0x23f   : > { %2239 = vmatprep.subr.mxu1 %v1929_v54  ;;  %3266 = vmatpush3.msra.mxu0 %v1750_v49  ;;  %v1864_v54 = vld [vmem:[#allocation6 + $0x430] sm:$0xff]  ;;  %v1994_v49 = vld [vmem:[#allocation6 + $0x840] sm:$0xff] }
 0x240   : > { %2240 = vmatpush1.msra.mxu1 %v1928_v18  ;;  %3267 = vmatprep.subr.mxu0 %v1795_v9  ;;  %v1909_v18 = vld [vmem:[#allocation6 + $0x598] sm:$0xff]  ;;  %v1992_v9 = vld [vmem:[#allocation6 + $0x830] sm:$0xff] }
 0x241   : > { %2241 = vmatprep.subr.mxu1 %v1926_v33  ;;  %3268 = vmatpush3.msra.mxu0 %v1747_v5  ;;  %v1861_v33 = vld [vmem:[#allocation6 + $0x418] sm:$0xff]  ;;  %v1991_v5 = vld [vmem:[#allocation6 + $0x828] sm:$0xff] }
 0x242   : > { %2242 = vmatpush1.msra.mxu1 %v1925_v19  ;;  %3269 = vmatprep.subr.mxu0 %v1792_v3  ;;  %v1906_v19 = vld [vmem:[#allocation6 + $0x580] sm:$0xff]  ;;  %v1989_v3 = vld [vmem:[#allocation6 + $0x818] sm:$0xff] }
 0x243   : > { %2243 = vmatprep.subr.mxu1 %v1923_v28  ;;  %3270 = vmatpush3.msra.mxu0 %v1744_v1  ;;  %v1858_v28 = vld [vmem:[#allocation6 + $0x400] sm:$0xff]  ;;  %v1988_v1 = vld [vmem:[#allocation6 + $0x810] sm:$0xff] }
 0x244   : > { %2244 = vmatpush1.msra.mxu1 %v1922_v6  ;;  %3271 = vmatprep.subr.mxu0 %v1789_v38  ;;  %v1903_v6 = vld [vmem:[#allocation6 + $0x568] sm:$0xff]  ;;  %v1986_v38 = vld [vmem:[#allocation6 + $0x800] sm:$0xff] }
 0x245   : > { %2245 = vmatprep.subr.mxu1 %v2016_v22  ;;  %3272 = vmatpush3.msra.mxu0 %v1741_v46  ;;  %v1855_v22 = vld [vmem:[#allocation6 + $0x3e8] sm:$0xff]  ;;  %v1900_v46 = vld [vmem:[#allocation6 + $0x550] sm:$0xff] }
 0x246   : > { %2246 = vmatpush2.msra.mxu1 %v2015_v13  ;;  %3273 = vmatprep.subr.mxu0 %v1786_v39  ;;  %v1983_v13 = vld [vmem:[#allocation6 + $0x7e8] sm:$0xff]  ;;  %v1852_v39 = vld [vmem:[#allocation6 + $0x3d0] sm:$0xff] }
 0x247   : > { %2247 = vmatprep.subr.mxu1 %v2013_v41  ;;  %3274 = vmatpush3.msra.mxu0 %v1738_v59  ;;  %v1897_v41 = vld [vmem:[#allocation6 + $0x538] sm:$0xff]  ;;  %v1980_v59 = vld [vmem:[#allocation6 + $0x7d0] sm:$0xff] }
 0x248   : > { %2248 = vmatpush2.msra.mxu1 %v2012_v36  ;;  %3275 = vmatprep.subr.mxu0 %v1783_v52  ;;  %v1849_v36 = vld [vmem:[#allocation6 + $0x3b8] sm:$0xff]  ;;  %v1979_v52 = vld [vmem:[#allocation6 + $0x7c8] sm:$0xff] }
 0x249   : > { %2249 = vmatprep.subr.mxu1 %v2010_v57  ;;  %3276 = vmatpush3.msra.mxu0 %v1735_v29  ;;  %v1894_v57 = vld [vmem:[#allocation6 + $0x520] sm:$0xff] }
 0x24a   : > { %2250 = vmatpush2.msra.mxu1 %v2009_v40  ;;  %3277 = vmatprep.subr.mxu0 %v1780_v43  ;;  %v1846_v29 = vld [vmem:[#allocation6 + $0x3a0] sm:$0xff]  ;;  %v1976_v40 = vld [vmem:[#allocation6 + $0x7b0] sm:$0xff]  ;;  %v1891_v43 = vld [vmem:[#allocation6 + $0x508] sm:$0xff] }
 0x24b   : > { %2251 = vmatprep.subr.mxu1 %v2007_v23  ;;  %3278 = vmatpush3.msra.mxu0 %v1732_v2  ;;  %v1658_v23 = vld [vmem:[#allocation2 + $0x8] sm:$0xfc]  ;;  %v1843_v2 = vld [vmem:[#allocation6 + $0x388] sm:$0xff] }
 0x24c   : > { %2252 = vmatpush2.msra.mxu1 %v2006_v50  ;;  %2367 = vmatmul.mubr.f32.vlgmr.msra.gmra.mxu0 %v5034_v61  ;;  %v1997_v61 = vld [vmem:[#allocation6 + $0x858] sm:$0xff] }
 0x24d   : > { %3291 = vmatprep.subr.mxu0 %v1921_v20  ;;  %2253 = vmatprep.subr.mxu1 %v2004_v11  ;;  %v1973_v50 = vld [vmem:[#allocation6 + $0x798] sm:$0xff]  ;;  %v1888_v20 = vld [vmem:[#allocation6 + $0x4f0] sm:$0xff]  ;;  %v1971_v11 = vld [vmem:[#allocation6 + $0x788] sm:$0xff] }
 0x24e   : > { %2371 = vmatprep.mubr.f32.mxu0 %v5056_v25  ;;  %3292 = vmatpush3.msra.mxu0 %v1873_v44  ;;  %v1840_v44 = vld [vmem:[#allocation6 + $0x370] sm:$0xff]  ;;  %v1963_v25 = vld [vmem:[#allocation6 + $0x748] sm:$0xff] }
 0x24f   : > { %2254 = vmatpush2.msra.mxu1 %v2003_v21  ;;  %3293 = vmatprep.subr.mxu0 %v1918_v45  ;;  %v1704_v21 = vrot.slane %v1658_v23, 2  ;;  %v1970_v45 = vld [vmem:[#allocation6 + $0x780] sm:$0xff]  ;;  %v2792_v23 = vld [vmem:[%s5674_s5 + $0x90] sm:$0xff] }
 0x250   : > { %2255 = vmatprep.subr.mxu1 %v2001_v12  ;;  %3294 = vmatpush3.msra.mxu0 %v1870_v14  ;;  %v1885_v12 = vld [vmem:[#allocation6 + $0x4d8] sm:$0xff] }
 0x251   : > { %2256 = vmatpush2.msra.mxu1 %v2000_v27  ;;  %2372 = vmatmul.mubr.f32.gmra.mxu0 %v5046_v30  ;;  %v1837_v14 = vld [vmem:[#allocation6 + $0x358] sm:$0xff]  ;;  %v1879_v30 = vld [vmem:[#allocation6 + $0x4a8] sm:$0xff] }
 0x252   : > { %3295 = vmatprep.subr.mxu0 %v1915_v8  ;;  %2257 = vmatprep.subr.mxu1 %v1998_v42  ;;  %v2017_v27 = vld [vmem:[#allocation6 + $0x8f8] sm:$0xff]  ;;  %v5166_v8 = vsel %vm1703_vm5, %v1704_v21, %v1705_v32  ;;  %v1882_v42 = vld [vmem:[#allocation6 + $0x4c0] sm:$0xff] }
 0x253   : > { %2376 = vmatprep.mubr.f32.mxu0 %v5075_v48  ;;  %3296 = vmatpush3.msra.mxu0 %v1867_v53  ;;  %v1969_v53 = vld [vmem:[#allocation6 + $0x778] sm:$0xff]  ;;  %v1966_v32 = vld [vmem:[#allocation6 + $0x760] sm:$0xff]  ;;  %v1876_v48 = vld [vmem:[#allocation6 + $0x490] sm:$0xff] }
 0x254   : > { %2258 = vmatpush2.msra.mxu1 %v1997_v61  ;;  %3297 = vmatprep.subr.mxu0 %v1912_v0  ;;  %v5174_v61 = vsel %vm1703_vm5, %v1708_v63, %v1712_v7  ;;  %v1834_v0 = vld [vmem:[#allocation6 + $0x340] sm:$0xff]  ;;  %v1828_v7 = vld [vmem:[#allocation6 + $0x310] sm:$0xff] }
 0x255   : > { %2259 = vmatprep.subr.mxu1 %v1995_v35  ;;  %3298 = vmatpush3.msra.mxu0 %v1864_v54  ;;  %v2014_v35 = vld [vmem:[#allocation6 + $0x8e0] sm:$0xff]  ;;  %v1831_v54 = vld [vmem:[#allocation6 + $0x328] sm:$0xff]  ;;  %v2008_v63 = vld [vmem:[#allocation6 + $0x8b0] sm:$0xff] }
 0x256   : > { %2260 = vmatpush2.msra.mxu1 %v1994_v49  ;;  %2377 = vmatmul.mubr.f32.gmra.mxu0 %v5065_v56  ;;  %v1985_v56 = vld [vmem:[#allocation6 + $0x7f8] sm:$0xff]  ;;  %v2011_v49 = vld [vmem:[#allocation6 + $0x8c8] sm:$0xff] }
 0x257   : > { %3299 = vmatprep.subr.mxu0 %v1909_v18  ;;  %2261 = vmatprep.subr.mxu1 %v1992_v9  ;;  %v1960_v18 = vld [vmem:[#allocation6 + $0x730] sm:$0xff]  ;;  %v2005_v9 = vld [vmem:[#allocation6 + $0x898] sm:$0xff] }
 0x258   : > { %2381 = vmatprep.mubr.f32.mxu0 %v5084_v58  ;;  %3300 = vmatpush3.msra.mxu0 %v1861_v33  ;;  %v1982_v58 = vld [vmem:[#allocation6 + $0x7e0] sm:$0xff]  ;;  %v1957_v33 = vld [vmem:[#allocation6 + $0x718] sm:$0xff] }
 0x259   : > { %2262 = vmatpush2.msra.mxu1 %v1991_v5  ;;  %3301 = vmatprep.subr.mxu0 %v1906_v19  ;;  %v2002_v5 = vld [vmem:[#allocation6 + $0x880] sm:$0xff]  ;;  %v2785_v21 = vld [vmem:[%s5674_s5 + $0x58] sm:$0xff] }
 0x25a   : > { %2263 = vmatprep.subr.mxu1 %v1989_v3  ;;  %3302 = vmatpush3.msra.mxu0 %v1858_v28  ;;  %v1954_v19 = vld [vmem:[#allocation6 + $0x700] sm:$0xff]  ;;  %v1999_v3 = vld [vmem:[#allocation6 + $0x868] sm:$0xff] }
 0x25b   : > { %2264 = vmatpush2.msra.mxu1 %v1988_v1  ;;  %2382 = vmatmul.mubr.f32.gmra.mxu0 %v5077_v10  ;;  %v1977_v10 = vld [vmem:[#allocation6 + $0x7b8] sm:$0xff]  ;;  %v1951_v28 = vld [vmem:[#allocation6 + $0x6e8] sm:$0xff]  ;;  %v1948_v1 = vld [vmem:[#allocation6 + $0x6d0] sm:$0xff] }
 0x25c   : > { %3303 = vmatprep.subr.mxu0 %v1903_v6  ;;  %2265 = vmatprep.subr.mxu1 %v1986_v38  ;;  %v1945_v6 = vld [vmem:[#allocation6 + $0x6b8] sm:$0xff]  ;;  %v1942_v38 = vld [vmem:[#allocation6 + $0x6a0] sm:$0xff] }
 0x25d   : > { %3304 = vmatpush3.msra.mxu0 %v1855_v22  ;;  %2451 = vmatprep.mubr.f32.mxu0 %v5087_v31  ;;  %v1974_v31 = vld [vmem:[#allocation6 + $0x7a0] sm:$0xff]  ;;  %v1939_v22 = vld [vmem:[#allocation6 + $0x688] sm:$0xff] }
 0x25e   : > { %2266 = vmatpush2.msra.mxu1 %v1985_v56  ;;  %3305 = vmatprep.subr.mxu0 %v1900_v46  ;;  %v1984_v56 = vld [vmem:[#allocation6 + $0x7f0] sm:$0xff]  ;;  %v1981_v46 = vld [vmem:[#allocation6 + $0x7d8] sm:$0xff] }
 0x25f   : > { %2267 = vmatprep.subr.mxu1 %v1983_v13  ;;  %3306 = vmatpush3.msra.mxu0 %v1852_v39  ;;  %v1978_v13 = vld [vmem:[#allocation6 + $0x7c0] sm:$0xff]  ;;  %v1975_v39 = vld [vmem:[#allocation6 + $0x7a8] sm:$0xff] }
 0x260   : > { %2268 = vmatpush2.msra.mxu1 %v1982_v58  ;;  %3307 = vmatprep.subr.mxu0 %v1897_v41  ;;  %v1927_v58 = vld [vmem:[#allocation6 + $0x628] sm:$0xff]  ;;  %v1972_v41 = vld [vmem:[#allocation6 + $0x790] sm:$0xff] }
 0x261   : > { %2269 = vmatprep.subr.mxu1 %v1980_v59  ;;  %3308 = vmatpush3.msra.mxu0 %v1849_v36  ;;  %v2805_v59 = vld [vmem:[%s5674_s5 + $0xf8] sm:$0xff]  ;;  %v2804_v36 = vld [vmem:[%s5674_s5 + $0xf0] sm:$0xff] }
 0x262   : > { %2270 = vmatpush2.msra.mxu1 %v1979_v52  ;;  %3309 = vmatprep.subr.mxu0 %v1894_v57  ;;  %v2798_v52 = vld [vmem:[%s5674_s5 + $0xc0] sm:$0xff]  ;;  %v2797_v57 = vld [vmem:[%s5674_s5 + $0xb8] sm:$0xff] }
 0x263   : > { %2271 = vmatprep.subr.mxu1 %v1977_v10  ;;  %3310 = vmatpush3.msra.mxu0 %v1846_v29  ;;  %v2796_v10 = vld [vmem:[%s5674_s5 + $0xb0] sm:$0xff]  ;;  %v2795_v29 = vld [vmem:[%s5674_s5 + $0xa8] sm:$0xff] }
 0x264   : > { %2272 = vmatpush2.msra.mxu1 %v1976_v40  ;;  %3311 = vmatprep.subr.mxu0 %v1891_v43  ;;  %v2794_v40 = vld [vmem:[%s5674_s5 + $0xa0] sm:$0xff]  ;;  %v2793_v43 = vld [vmem:[%s5674_s5 + $0x98] sm:$0xff] }
 0x265   : > { %2273 = vmatprep.subr.mxu1 %v1974_v31  ;;  %3312 = vmatpush3.msra.mxu0 %v1843_v2  ;;  %v2791_v31 = vld [vmem:[%s5674_s5 + $0x88] sm:$0xff]  ;;  %v2790_v2 = vld [vmem:[%s5674_s5 + $0x80] sm:$0xff] }
 0x266   : > { %2274 = vmatpush2.msra.mxu1 %v1973_v50  ;;  %3313 = vmatprep.subr.mxu0 %v1888_v20  ;;  %v2789_v50 = vld [vmem:[%s5674_s5 + $0x78] sm:$0xff]  ;;  %v2788_v20 = vld [vmem:[%s5674_s5 + $0x70] sm:$0xff] }
 0x267   : > { %2275 = vmatprep.subr.mxu1 %v1971_v11  ;;  %3314 = vmatpush3.msra.mxu0 %v1840_v44  ;;  %v2787_v11 = vld [vmem:[%s5674_s5 + $0x68] sm:$0xff]  ;;  %v2786_v44 = vld [vmem:[%s5674_s5 + $0x60] sm:$0xff] }
 0x268   : > { %2276 = vmatpush2.msra.mxu1 %v1970_v45  ;;  %3315 = vmatprep.subr.mxu0 %v1885_v12  ;;  %v2784_v45 = vld [vmem:[%s5674_s5 + $0x50] sm:$0xff]  ;;  %v2783_v12 = vld [vmem:[%s5674_s5 + $0x48] sm:$0xff] }
 0x269   : > { %2278 = vmatmul.mubr.f32.vlgmr.msra.gmra.mxu1 %v5166_v8  ;;  %3316 = vmatpush3.msra.mxu0 %v1837_v14  ;;  %v2782_v14 = vld [vmem:[%s5674_s5 + $0x40] sm:$0xff] }
 0x26a   : > { %3335 = vmatprep.subr.mxu1 %v2017_v27  ;;  %2283 = vmatprep.mubr.f32.mxu1 %v5174_v61  ;;  %v2781_v27 = vld [vmem:[%s5674_s5 + $0x38] sm:$0xff] }
 0x26b   : > { %3317 = vmatprep.subr.mxu0 %v1882_v42  ;;  %3336 = vmatpush3.msra.mxu1 %v1969_v53  ;;  %v2779_v42 = vld [vmem:[%s5674_s5 + $0x28] sm:$0xff]  ;;  %v2778_v53 = vld [vmem:[%s5674_s5 + $0x20] sm:$0xff] }
 0x26c   : > { %3318 = vmatpush3.msra.mxu0 %v1834_v0  ;;  %3337 = vmatprep.subr.mxu1 %v2014_v35  ;;  %v2776_v0 = vld [vmem:[%s5674_s5 + $0x10] sm:$0xff]  ;;  %v2775_v35 = vld [vmem:[%s5674_s5 + $0x8] sm:$0xff] }
 0x26d   : > { %3319 = vmatprep.subr.mxu0 %v1879_v30  ;;  %3338 = vmatpush3.msra.mxu1 %v1966_v32  ;;  %v2774_v30 = vld [vmem:[%s5674_s5] sm:$0xff]  ;;  %v2837_v32 = vld [vmem:[%s5674_s5 + $0x1f8] sm:$0xff] }
 0x26e   : > { %2284 = vmatmul.mubr.f32.gmra.mxu1 %v5106_v4  ;;  %3320 = vmatpush3.msra.mxu0 %v1831_v54  ;;  %v2836_v54 = vld [vmem:[%s5674_s5 + $0x1f0] sm:$0xff] }
 0x26f   : > { %3339 = vmatprep.subr.mxu1 %v2011_v49  ;;  %2289 = vmatprep.mubr.f32.mxu1 %v5123_v34  ;;  %v2835_v49 = vld [vmem:[%s5674_s5 + $0x1e8] sm:$0xff] }
 0x270   : > { %3321 = vmatprep.subr.mxu0 %v1876_v48  ;;  %3340 = vmatpush3.msra.mxu1 %v1963_v25  ;;  %v2834_v48 = vld [vmem:[%s5674_s5 + $0x1e0] sm:$0xff]  ;;  %v2833_v25 = vld [vmem:[%s5674_s5 + $0x1d8] sm:$0xff] }
 0x271   : > { %3322 = vmatpush3.msra.mxu0 %v1828_v7  ;;  %3341 = vmatprep.subr.mxu1 %v2008_v63  ;;  %v2832_v7 = vld [vmem:[%s5674_s5 + $0x1d0] sm:$0xff]  ;;  %v2831_v63 = vld [vmem:[%s5674_s5 + $0x1c8] sm:$0xff] }
 0x272   : > { %2452 = vmatmul.mubr.f32.vlgmr.msra.gmra.mxu0 %v5092_v62  ;;  %3342 = vmatpush3.msra.mxu1 %v1960_v18  ;;  %v1996_v62 = vld [vmem:[#allocation6 + $0x850] sm:$0xff]  ;;  %v2830_v18 = vld [vmem:[%s5674_s5 + $0x1c0] sm:$0xff] }
 0x273   : > { %2290 = vmatmul.mubr.f32.gmra.mxu1 %v5110_v37  ;;  %2456 = vmatprep.mubr.f32.mxu0 %v5099_v15  ;;  %v1993_v15 = vld [vmem:[#allocation6 + $0x838] sm:$0xff] }
 0x274   : > { %3343 = vmatprep.subr.mxu1 %v2005_v9  ;;  %2295 = vmatprep.mubr.f32.mxu1 %v5126_v47  ;;  %v2829_v9 = vld [vmem:[%s5674_s5 + $0x1b8] sm:$0xff] }
 0x275   : > { %3344 = vmatpush3.msra.mxu1 %v1957_v33  ;;  %2850 = vmatprep.subr.mxu0 %v2805_v59  ;;  %v2828_v33 = vld [vmem:[%s5674_s5 + $0x1b0] sm:$0xff]  ;;  %v2809_v59 = vld [vmem:[%s5674_s5 + $0x118] sm:$0xff] }
 0x276   : > { %3345 = vmatprep.subr.mxu1 %v2002_v5  ;;  %2457 = vmatmul.mubr.f32.gmra.mxu0 %v5117_v24  ;;  %v1990_v24 = vld [vmem:[#allocation6 + $0x820] sm:$0xff] }
 0x277   : > { %3346 = vmatpush3.msra.mxu1 %v1954_v19  ;;  %2461 = vmatprep.mubr.f32.mxu0 %v5139_v55  ;;  %v1987_v55 = vld [vmem:[#allocation6 + $0x808] sm:$0xff]  ;;  %v2826_v19 = vld [vmem:[%s5674_s5 + $0x1a0] sm:$0xff] }
 0x278   : > { %2296 = vmatmul.mubr.f32.gmra.mxu1 %v5113_v60  ;;  %3347 = vmatprep.subr.mxu1 %v1999_v3  ;;  %v2827_v5 = vld [vmem:[%s5674_s5 + $0x1a8] sm:$0xff]  ;;  %v2825_v3 = vld [vmem:[%s5674_s5 + $0x198] sm:$0xff] }
 0x279   : > { %3348 = vmatpush3.msra.mxu1 %v1951_v28  ;;  %2536 = vmatprep.mubr.f32.mxu1 %v5135_v16  ;;  %v1936_v16 = vld [vmem:[#allocation6 + $0x670] sm:$0xff] }
 0x27a   : > { %3349 = vmatprep.subr.mxu1 %v1996_v62  ;;  %2462 = vmatmul.mubr.f32.gmra.mxu0 %v5143_v17  ;;  %v1933_v17 = vld [vmem:[#allocation6 + $0x658] sm:$0xff]  ;;  %v2824_v28 = vld [vmem:[%s5674_s5 + $0x190] sm:$0xff]  ;;  %v2823_v62 = vld [vmem:[%s5674_s5 + $0x188] sm:$0xff] }
 0x27b   : > { %3350 = vmatpush3.msra.mxu1 %v1948_v1  ;;  %2466 = vmatprep.mubr.f32.mxu0 %v5147_v51  ;;  %v1930_v51 = vld [vmem:[#allocation6 + $0x640] sm:$0xff] }
 0x27c   : > { %3351 = vmatprep.subr.mxu1 %v1993_v15  ;;  %2851 = vmatpush1.msra.mxu0 %v2804_v36  ;;  %v2822_v1 = vld [vmem:[%s5674_s5 + $0x180] sm:$0xff]  ;;  %v2821_v15 = vld [vmem:[%s5674_s5 + $0x178] sm:$0xff]  ;;  %v2950_v36 = vld [vmem:[%s5676_s7 + $0xe8] sm:$0xff] }
 0x27d   : > { %3352 = vmatpush3.msra.mxu1 %v1945_v6  ;;  %v2820_v6 = vld [vmem:[%s5674_s5 + $0x170] sm:$0xff] }
 0x27e   : > { %3353 = vmatprep.subr.mxu1 %v1990_v24  ;;  %2467 = vmatmul.mubr.f32.gmra.mxu0 %v5151_v26  ;;  %v1924_v26 = vld [vmem:[#allocation6 + $0x610] sm:$0xff]  ;;  %v2819_v24 = vld [vmem:[%s5674_s5 + $0x168] sm:$0xff] }
 0x27f   : > { %3354 = vmatpush3.msra.mxu1 %v1942_v38  ;;  %v2818_v38 = vld [vmem:[%s5674_s5 + $0x160] sm:$0xff] }
 0x280   : > { %3355 = vmatprep.subr.mxu1 %v1987_v55  ;;  %v2817_v55 = vld [vmem:[%s5674_s5 + $0x158] sm:$0xff] }
 0x281   : > { %3356 = vmatpush3.msra.mxu1 %v1939_v22  ;;  %v2816_v22 = vld [vmem:[%s5674_s5 + $0x150] sm:$0xff] }
 0x282   : > { %3357 = vmatprep.subr.mxu1 %v1984_v56  ;;  %v2815_v56 = vld [vmem:[%s5674_s5 + $0x148] sm:$0xff] }
 0x283   : > { %3358 = vmatpush3.msra.mxu1 %v1936_v16  ;;  %v2814_v16 = vld [vmem:[%s5674_s5 + $0x140] sm:$0xff] }
 0x284   : > { %3359 = vmatprep.subr.mxu1 %v1981_v46  ;;  %v2813_v46 = vld [vmem:[%s5674_s5 + $0x138] sm:$0xff] }
 0x285   : > { %3360 = vmatpush3.msra.mxu1 %v1933_v17  ;;  %v2812_v17 = vld [vmem:[%s5674_s5 + $0x130] sm:$0xff] }
 0x286   : > { %3361 = vmatprep.subr.mxu1 %v1978_v13  ;;  %v2811_v13 = vld [vmem:[%s5674_s5 + $0x128] sm:$0xff] }
 0x287   : > { %3362 = vmatpush3.msra.mxu1 %v1930_v51  ;;  %v2952_v51 = vld [vmem:[%s5676_s7 + $0xf8] sm:$0xff] }
 0x288   : > { %3363 = vmatprep.subr.mxu1 %v1975_v39  ;;  %v2936_v39 = vld [vmem:[%s5676_s7 + $0x78] sm:$0xff] }
 0x289   : > { %3364 = vmatpush3.msra.mxu1 %v1927_v58  ;;  %v2951_v58 = vld [vmem:[%s5676_s7 + $0xf0] sm:$0xff] }
 0x28a   : > { %3365 = vmatprep.subr.mxu1 %v1972_v41  ;;  %v2810_v41 = vld [vmem:[%s5674_s5 + $0x120] sm:$0xff] }
 0x28b   : > { %3366 = vmatpush3.msra.mxu1 %v1924_v26  ;;  %v2935_v26 = vld [vmem:[%s5676_s7 + $0x70] sm:$0xff] }
 0x28c   : > { %2537 = vmatmul.mubr.f32.vlgmr.msra.gmra.mxu1 %v5166_v8  ;;  %v2780_v8 = vld [vmem:[%s5674_s5 + $0x30] sm:$0xff]  ;;  %3379 = vmatprep.subr.mxu1 %v2952_v51 }
 0x28d   : > { %2541 = vmatprep.mubr.f32.mxu1 %v5174_v61  ;;  %v2777_v61 = vld [vmem:[%s5674_s5 + $0x18] sm:$0xff]  ;;  %3380 = vmatpush3.msra.mxu1 %v2936_v39 }
 0x28e   : > { %3381 = vmatprep.subr.mxu1 %v2951_v58 }
 0x28f   : > { %3382 = vmatpush3.msra.mxu1 %v2935_v26 }
 0x290   : > { %2542 = vmatmul.mubr.f32.gmra.mxu1 %v5106_v4  ;;  %v2803_v4 = vld [vmem:[%s5674_s5 + $0xe8] sm:$0xff]  ;;  %3383 = vmatprep.subr.mxu1 %v2950_v36 }
 0x291   : > { %2546 = vmatprep.mubr.f32.mxu1 %v5123_v34  ;;  %2852 = vmatprep.subr.mxu0 %v2803_v4  ;;  %v2800_v34 = vld [vmem:[%s5674_s5 + $0xd0] sm:$0xff] }
 0x292   : > { %v2808_v4 = vld [vmem:[%s5674_s5 + $0x110] sm:$0xff] }
 0x294   : > { %2547 = vmatmul.mubr.f32.gmra.mxu1 %v5110_v37  ;;  %v2802_v37 = vld [vmem:[%s5674_s5 + $0xe0] sm:$0xff] }
 0x295   : > { %2551 = vmatprep.mubr.f32.mxu1 %v5126_v47  ;;  %2853 = vmatpush1.msra.mxu0 %v2802_v37  ;;  %v2799_v47 = vld [vmem:[%s5674_s5 + $0xc8] sm:$0xff] }
 0x296   : > { %v2934_v37 = vld [vmem:[%s5676_s7 + $0x68] sm:$0xff] }
 0x297   : > { %3384 = vmatpush3.msra.mxu1 %v2934_v37 }
 0x298   : > { %2552 = vmatmul.mubr.f32.gmra.mxu1 %v5113_v60  ;;  %v2801_v60 = vld [vmem:[%s5674_s5 + $0xd8] sm:$0xff] }
 0x299   : > { %2854 = vmatprep.subr.mxu0 %v2801_v60  ;;  %v2807_v60 = vld [vmem:[%s5674_s5 + $0x108] sm:$0xff] }
 0x29a   : > { %2855 = vmatpush1.msra.mxu0 %v2800_v34  ;;  %v2949_v34 = vld [vmem:[%s5676_s7 + $0xe0] sm:$0xff] }
 0x29b   : > { %2856 = vmatprep.subr.mxu0 %v2799_v47  ;;  %v2806_v47 = vld [vmem:[%s5674_s5 + $0x100] sm:$0xff]  ;;  %3385 = vmatprep.subr.mxu1 %v2949_v34 }
 0x29c   : > { %2857 = vmatpush1.msra.mxu0 %v2798_v52  ;;  %v2933_v52 = vld [vmem:[%s5676_s7 + $0x60] sm:$0xff] }
 0x29d   : > { %2858 = vmatprep.subr.mxu0 %v2797_v57  ;;  %v2948_v57 = vld [vmem:[%s5676_s7 + $0xd8] sm:$0xff]  ;;  %3386 = vmatpush3.msra.mxu1 %v2933_v52 }
 0x29e   : > { %2859 = vmatpush1.msra.mxu0 %v2796_v10  ;;  %v2932_v10 = vld [vmem:[%s5676_s7 + $0x58] sm:$0xff]  ;;  %3387 = vmatprep.subr.mxu1 %v2948_v57 }
 0x29f   : > { %2860 = vmatprep.subr.mxu0 %v2795_v29  ;;  %3388 = vmatpush3.msra.mxu1 %v2932_v10 }
 0x2a0   : > { %2861 = vmatpush1.msra.mxu0 %v2794_v40  ;;  %v2947_v40 = vld [vmem:[%s5676_s7 + $0xd0] sm:$0xff] }
 0x2a1   : > { %2862 = vmatprep.subr.mxu0 %v2793_v43  ;;  %v2931_v43 = vld [vmem:[%s5676_s7 + $0x50] sm:$0xff]  ;;  %3389 = vmatprep.subr.mxu1 %v2947_v40 }
 0x2a2   : > { %2863 = vmatpush1.msra.mxu0 %v2792_v23  ;;  %v2946_v23 = vld [vmem:[%s5676_s7 + $0xc8] sm:$0xff]  ;;  %3390 = vmatpush3.msra.mxu1 %v2931_v43 }
 0x2a3   : > { %2864 = vmatprep.subr.mxu0 %v2791_v31  ;;  %v2930_v31 = vld [vmem:[%s5676_s7 + $0x48] sm:$0xff]  ;;  %3391 = vmatprep.subr.mxu1 %v2946_v23 }
 0x2a4   : > { %2865 = vmatpush1.msra.mxu0 %v2790_v2  ;;  %3392 = vmatpush3.msra.mxu1 %v2930_v31 }
 0x2a5   : > { %2866 = vmatprep.subr.mxu0 %v2789_v50  ;;  %v2945_v50 = vld [vmem:[%s5676_s7 + $0xc0] sm:$0xff] }
 0x2a6   : > { %2867 = vmatpush1.msra.mxu0 %v2788_v20  ;;  %v2929_v20 = vld [vmem:[%s5676_s7 + $0x40] sm:$0xff]  ;;  %3393 = vmatprep.subr.mxu1 %v2945_v50 }
 0x2a7   : > { %2868 = vmatprep.subr.mxu0 %v2787_v11  ;;  %v2944_v11 = vld [vmem:[%s5676_s7 + $0xb8] sm:$0xff]  ;;  %3394 = vmatpush3.msra.mxu1 %v2929_v20 }
 0x2a8   : > { %2869 = vmatpush1.msra.mxu0 %v2786_v44  ;;  %v2928_v44 = vld [vmem:[%s5676_s7 + $0x38] sm:$0xff]  ;;  %3395 = vmatprep.subr.mxu1 %v2944_v11 }
 0x2a9   : > { %2870 = vmatprep.subr.mxu0 %v2785_v21  ;;  %3396 = vmatpush3.msra.mxu1 %v2928_v44 }
 0x2aa   : > { %2871 = vmatpush1.msra.mxu0 %v2784_v45  ;;  %v2943_v45 = vld [vmem:[%s5676_s7 + $0xb0] sm:$0xff] }
 0x2ab   : > { %2872 = vmatprep.subr.mxu0 %v2783_v12  ;;  %v2927_v12 = vld [vmem:[%s5676_s7 + $0x30] sm:$0xff]  ;;  %3397 = vmatprep.subr.mxu1 %v2943_v45 }
 0x2ac   : > { %2873 = vmatpush1.msra.mxu0 %v2782_v14  ;;  %v2942_v14 = vld [vmem:[%s5676_s7 + $0xa8] sm:$0xff]  ;;  %3398 = vmatpush3.msra.mxu1 %v2927_v12 }
 0x2ad   : > { %2874 = vmatprep.subr.mxu0 %v2781_v27  ;;  %v2926_v27 = vld [vmem:[%s5676_s7 + $0x28] sm:$0xff]  ;;  %3399 = vmatprep.subr.mxu1 %v2942_v14 }
 0x2ae   : > { %2875 = vmatpush1.msra.mxu0 %v2780_v8  ;;  %3400 = vmatpush3.msra.mxu1 %v2926_v27 }
 0x2af   : > { %2876 = vmatprep.subr.mxu0 %v2779_v42  ;;  %v2941_v42 = vld [vmem:[%s5676_s7 + $0xa0] sm:$0xff] }
 0x2b0   : > { %2877 = vmatpush1.msra.mxu0 %v2778_v53  ;;  %v2925_v53 = vld [vmem:[%s5676_s7 + $0x20] sm:$0xff]  ;;  %3401 = vmatprep.subr.mxu1 %v2941_v42 }
 0x2b1   : > { %2878 = vmatprep.subr.mxu0 %v2777_v61  ;;  %v2940_v61 = vld [vmem:[%s5676_s7 + $0x98] sm:$0xff]  ;;  %3402 = vmatpush3.msra.mxu1 %v2925_v53 }
 0x2b2   : > { %2879 = vmatpush1.msra.mxu0 %v2776_v0  ;;  %3403 = vmatprep.subr.mxu1 %v2940_v61 }
 0x2b3   : > { %2880 = vmatprep.subr.mxu0 %v2775_v35  ;;  %v2924_v35 = vld [vmem:[%s5676_s7 + $0x18] sm:$0xff] }
 0x2b4   : > { %2881 = vmatpush1.msra.mxu0 %v2774_v30  ;;  %3404 = vmatpush3.msra.mxu1 %v2924_v35 }
 0x2b5   : > { %2882 = vmatprep.subr.mxu0 %v2837_v32 }
 0x2b6   : > { %2883 = vmatpush2.msra.mxu0 %v2836_v54 }
 0x2b7   : > { %2884 = vmatprep.subr.mxu0 %v2835_v49 }
 0x2b8   : > { %2885 = vmatpush2.msra.mxu0 %v2834_v48 }
 0x2b9   : > { %2886 = vmatprep.subr.mxu0 %v2833_v25 }
 0x2ba   : > { %2887 = vmatpush2.msra.mxu0 %v2832_v7 }
 0x2bb   : > { %2888 = vmatprep.subr.mxu0 %v2831_v63 }
 0x2bc   : > { %2889 = vmatpush2.msra.mxu0 %v2830_v18 }
 0x2bd   : > { %2890 = vmatprep.subr.mxu0 %v2829_v9 }
 0x2be   : > { %2891 = vmatpush2.msra.mxu0 %v2828_v33  ;;  %v2018_v33 = vld [vmem:[#allocation8] sm:$0x7] }
 0x2bf   : > { %2892 = vmatprep.subr.mxu0 %v2827_v5 }
 0x2c0   : > { %2893 = vmatpush2.msra.mxu0 %v2826_v19  ;;  %v5817_v19 = vld [vmem:[#allocation43_spill] sm:$0xff] }
 0x2c1   : > { %2894 = vmatprep.subr.mxu0 %v2825_v3  ;;  %v5478_v3 = vrot.slane %v2018_v33, %v5817_v19 }
 0x2c2   : > { %2895 = vmatpush2.msra.mxu0 %v2824_v28 }
 0x2c3   : > { %2896 = vmatprep.subr.mxu0 %v2823_v62 }
 0x2c4   : > { %2897 = vmatpush2.msra.mxu0 %v2822_v1  ;;  %v5818_v1 = vld [vmem:[#allocation37_spill] sm:$0xff] }
 0x2c5   : > { %2898 = vmatprep.subr.mxu0 %v2821_v15  ;;  %v5485_v15 = vrot.slane %v2018_v33, %v5818_v1 }
 0x2c6   : > { %2899 = vmatpush2.msra.mxu0 %v2820_v6 }
 0x2c7   : > { %2900 = vmatprep.subr.mxu0 %v2819_v24 }
 0x2c8   : > { %2901 = vmatpush2.msra.mxu0 %v2818_v38 }
 0x2c9   : > { %2902 = vmatprep.subr.mxu0 %v2817_v55 }
 0x2ca   : > { %2903 = vmatpush2.msra.mxu0 %v2816_v22 }
 0x2cb   : > { %2904 = vmatprep.subr.mxu0 %v2815_v56 }
 0x2cc   : > { %2905 = vmatpush2.msra.mxu0 %v2814_v16 }
 0x2cd   : > { %2906 = vmatprep.subr.mxu0 %v2813_v46 }
 0x2ce   : > { %2907 = vmatpush2.msra.mxu0 %v2812_v17 }
 0x2cf   : > { %2908 = vmatprep.subr.mxu0 %v2811_v13 }
 0x2d0   : > { %2909 = vmatpush2.msra.mxu0 %v2810_v41 }
 0x2d1   : > { %2910 = vmatprep.subr.mxu0 %v2809_v59 }
 0x2d2   : > { %2911 = vmatpush2.msra.mxu0 %v2808_v4 }
 0x2d3   : > { %2912 = vmatprep.subr.mxu0 %v2807_v60 }
 0x2d4   : > { %2913 = vmatpush2.msra.mxu0 %v2806_v47 }
 0x2de   : > { %v2101_v0 = vpop.f32.mrf.mxu1 }
 0x2df   : > { %v2102_v6 = vadd.f32 %v2101_v0, %v5478_v3 }
 0x2e0   : > { %v2103_v32 = vpop.f32.mrf.mxu1 }
 0x2e1   : > { %v2104_v55 = vadd.f32 %v2103_v32, %v5485_v15 }
 0x2e2   : > { %v2107_v49 = vpop.f32.mrf.mxu1 }
 0x2e3   : > { %v2108_v51 = vadd.f32 %v2107_v49, %v5478_v3 }
 0x2e4   : > { %v2109_v25 = vpop.f32.mrf.mxu1 }
 0x2e5   : > { %v2110_v58 = vadd.f32 %v2109_v25, %v5485_v15 }
 0x2e6   : > { %v2113_v18 = vpop.f32.mrf.mxu1 }
 0x2e7   : > { %v2114_v40 = vadd.f32 %v2113_v18, %v5478_v3 }
 0x2e8   : > { %v2115_v5 = vpop.f32.mrf.mxu1 }
 0x2e9   : > { %v2190_v29 = vpop.f32.mrf.mxu0 }
 0x2ea   : > { %v2191_v22 = vadd.f32 %v2190_v29, %v2102_v6 }
 0x2eb   : > { %v2192_v2 = vpop.f32.mrf.mxu0 }
 0x2ec   : > { %v2193_v16 = vadd.f32 %v2192_v2, %v2104_v55 }
 0x2ed   : > { %v2196_v21 = vpop.f32.mrf.mxu0 }
 0x2ee   : > { %v5482_v62 = vpop.f32.mrf.mxu1  ;;  %v2197_v41 = vadd.f32 %v2196_v21, %v2108_v51 }
 0x2ef   : > { %v2198_v8 = vpop.f32.mrf.mxu0 }
 0x2f0   : > { %v2121_v38 = vpop.f32.mrf.mxu1  ;;  %v2199_v37 = vadd.f32 %v2198_v8, %v2110_v58 }
 0x2f3   : > { %v2202_v30 = vpop.f32.mrf.mxu0 }
 0x2f4   : > { %v2203_v50 = vadd.f32 %v2202_v30, %v2114_v40  ;;  %v2116_v30 = vadd.f32 %v2115_v5, %v5485_v15  ;;  %v2120_v5 = vadd.f32 %v5482_v62, %v5478_v3 }
 0x2f5   : > { %v5467_v54 = vpop.f32.mrf.mxu0 }
 0x2f6   : > { %v2205_v55 = vadd.f32 %v5467_v54, %v2116_v30 }
 0x2f8   : > { %v5469_v48 = vpop.f32.mrf.mxu0 }
 0x2fa   : > { %v5471_v7 = vpop.f32.mrf.mxu0 }
 0x30c   : > { %v5473_v63 = vpop.f32.mrf.mxu0 }
 0x30e   : > { %v5475_v9 = vpop.f32.mrf.mxu0 }
 0x30f   : > { %v3281_v54 = vadd.f32 %v5475_v9, %v5473_v63  ;;  %v2209_v63 = vadd.f32 %v5469_v48, %v2120_v5 }
 0x311   : > { %v5480_v28 = vpop.f32.mrf.mxu0 }
 0x313   : > { %v5488_v24 = vpop.f32.mrf.mxu0 }
 0x316   : > { %v5491_v46 = vpop.f32.mrf.mxu0 }
 0x318   : > { %v5495_v26 = vpop.f32.mrf.mxu0 }
 0x319   : > { %v3287_v3 = vadd.f32 %v5495_v26, %v5491_v46 }
 0x31b   : > { %v5497_v47 = vpop.f32.mrf.mxu0 }
 0x31d   : > { %v5504_v21 = vpop.f32.mrf.mxu0 }
 0x329   : > { %v2279_v56 = vpop.f32.mrf.mxu1 }
 0x32a   : > { %v2280_v17 = vadd.f32 %v2279_v56, %v2191_v22  ;;  %v5819_v22 = vld [vmem:[#allocation35_spill] sm:$0xff] }
 0x32b   : > { %v2281_v13 = vpop.f32.mrf.mxu1  ;;  %v5820_v56 = vsub.s32 2, %v5819_v22 }
 0x32c   : > { %v2282_v39 = vadd.f32 %v2281_v13, %v2193_v16  ;;  %v2557_v59 = vmax.f32 %v2280_v17, 0.0 }
 0x32d   : > { %v5516_v16 = vrot.slane %v2018_v33, %v5820_v56 }
 0x32e   : > { %v2558_v36 = vmax.f32 %v2282_v39, 0.0  ;;  %v2285_v4 = vpop.f32.mrf.mxu1  ;;  %v2570_v52 = vsel %vm2569_vm6, %v2557_v59, -inf  ;;  %v2663_v43 = vsel %vm2662_vm7, %v2557_v59, -inf }
 0x32f   : > { %v2286_v60 = vadd.f32 %v2285_v4, %v2197_v41  ;;  %v2571_v20 = vrot.slane %v2570_v52, 4  ;;  %v2664_v45 = vrot.slane %v2663_v43, 4 }
 0x330   : > { %v2287_v34 = vpop.f32.mrf.mxu1  ;;  %v2577_v57 = vsel %vm2569_vm6, %v2558_v36, -inf  ;;  %v2670_v10 = vsel %vm2662_vm7, %v2558_v36, -inf  ;;  %v2122_v36 = vadd.f32 %v2121_v38, %v5485_v15 }
 0x331   : > { %v2288_v29 = vadd.f32 %v2287_v34, %v2199_v37  ;;  %v2560_v23 = vmax.f32 %v2286_v60, 0.0  ;;  %v2578_v11 = vrot.slane %v2577_v57, 4  ;;  %v2671_v44 = vrot.slane %v2670_v10, 4 }
 0x332   : > { %v5509_v42 = vpop.f32.mrf.mxu0  ;;  %v2572_v53 = vmax.f32 %v2570_v52, %v2571_v20  ;;  %v2665_v25 = vmax.f32 %v2663_v43, %v2664_v45  ;;  %v3284_v52 = vadd.f32 %v5488_v24, %v5480_v28  ;;  %v2369_v20 = vadd.f32 %v3281_v54, %v5516_v16 }
 0x333   : > { %v2561_v31 = vmax.f32 %v2288_v29, 0.0  ;;  %v2291_v2 = vpop.f32.mrf.mxu1  ;;  %v2591_v8 = vsel %vm2569_vm6, %v2560_v23, -inf  ;;  %v2579_v61 = vmax.f32 %v2577_v57, %v2578_v11  ;;  %v2672_v0 = vmax.f32 %v2670_v10, %v2671_v44 }
 0x334   : > { %v2292_v27 = vadd.f32 %v2291_v2, %v2203_v50  ;;  %v2684_v35 = vsel %vm2662_vm7, %v2560_v23, -inf  ;;  %v2592_v18 = vrot.slane %v2591_v8, 4  ;;  %v3324_v13 = vpop.f32.mrf.mxu0  ;;  %v2573_v39 = vrot.slane %v2572_v53, 2 }
 0x335   : > { %v2598_v12 = vsel %vm2569_vm6, %v2561_v31, -inf  ;;  %v2691_v14 = vsel %vm2662_vm7, %v2561_v31, -inf  ;;  %v2685_v17 = vrot.slane %v2684_v35, 4  ;;  %v2293_v51 = vpop.f32.mrf.mxu1  ;;  %v2580_v58 = vrot.slane %v2579_v61, 2 }
 0x336   : > { %v2599_v32 = vrot.slane %v2598_v12, 4  ;;  %v2692_v49 = vrot.slane %v2691_v14, 4  ;;  %v2563_v6 = vmax.f32 %v2292_v27, 0.0  ;;  %v2673_v41 = vrot.slane %v2672_v0, 2  ;;  %v3326_v40 = vpop.f32.mrf.mxu0 }
 0x337   : > { %v2666_v33 = vrot.slane %v2665_v25, 2  ;;  %v2593_v60 = vmax.f32 %v2591_v8, %v2592_v18  ;;  %v2294_v34 = vadd.f32 %v2293_v51, %v2205_v55  ;;  %v2686_v57 = vmax.f32 %v2684_v35, %v2685_v17 }
 0x338   : > { %v2612_v59 = vsel %vm2569_vm6, %v2563_v6, -inf  ;;  %v2600_v4 = vmax.f32 %v2598_v12, %v2599_v32  ;;  %v2693_v37 = vmax.f32 %v2691_v14, %v2692_v49  ;;  %v2705_v29 = vsel %vm2662_vm7, %v2563_v6, -inf  ;;  %v2297_v43 = vpop.f32.mrf.mxu1  ;;  %v3327_v26 = vpop.f32.mrf.mxu0 }
 0x339   : > { %v2613_v10 = vrot.slane %v2612_v59, 4  ;;  %v2574_v62 = vmax.f32 %v2572_v53, %v2573_v39  ;;  %v2581_v15 = vmax.f32 %v2579_v61, %v2580_v58  ;;  %v2674_v38 = vmax.f32 %v2672_v0, %v2673_v41 }
 0x33a   : > { %v2601_v9 = vrot.slane %v2600_v4, 2  ;;  %v2694_v23 = vrot.slane %v2693_v37, 2  ;;  %v2564_v31 = vmax.f32 %v2294_v34, 0.0  ;;  %v2211_v2 = vadd.f32 %v5471_v7, %v2122_v36  ;;  %v2299_v45 = vpop.f32.mrf.mxu1  ;;  %v3329_v55 = vpop.f32.mrf.mxu0 }
 0x33b   : > { %v2667_v28 = vmax.f32 %v2665_v25, %v2666_v33  ;;  %v2594_v24 = vrot.slane %v2593_v60, 2  ;;  %v2706_v50 = vrot.slane %v2705_v29, 4  ;;  %v5533_v11 = vadd.f32 %v3284_v52, %v5516_v16 }
 0x33c   : > { %v2687_v44 = vrot.slane %v2686_v57, 2  ;;  %v2614_v46 = vmax.f32 %v2612_v59, %v2613_v10  ;;  %v5536_v12 = vadd.f32 %v3287_v3, %v5516_v16  ;;  %v2575_v48 = vrot.slane %v2574_v62, 1 }
 0x33d   : > { %v2582_v14 = vrot.slane %v2581_v15, 1  ;;  %v2675_v27 = vrot.slane %v2674_v38, 1  ;;  %v2602_v8 = vmax.f32 %v2600_v4, %v2601_v9  ;;  %v2695_v7 = vmax.f32 %v2693_v37, %v2694_v23 }
 0x33e   : > { %v2619_v53 = vsel %vm2569_vm6, %v2564_v31, -inf  ;;  %v2712_v61 = vsel %vm2662_vm7, %v2564_v31, -inf  ;;  %v2668_v0 = vrot.slane %v2667_v28, 1  ;;  %v2595_v35 = vmax.f32 %v2593_v60, %v2594_v24  ;;  %v3330_v60 = vpop.f32.mrf.mxu0 }
 0x33f   : > { %v2707_v30 = vmax.f32 %v2705_v29, %v2706_v50  ;;  %v2300_v32 = vadd.f32 %v2299_v45, %v2211_v2  ;;  %v3290_v49 = vadd.f32 %v5504_v21, %v5497_v47  ;;  %v2688_v25 = vmax.f32 %v2686_v57, %v2687_v44 }
 0x340   : > { %v2615_v18 = vrot.slane %v2614_v46, 2  ;;  %v2298_v6 = vadd.f32 %v2297_v43, %v2209_v63  ;;  %v5542_v22 = vmax.f32 %v2581_v15, %v2582_v14  ;;  %v5544_v56 = vmax.f32 %v2674_v38, %v2675_v27 }
 0x341   : > { %v2620_v17 = vrot.slane %v2619_v53, 4  ;;  %v2713_v51 = vrot.slane %v2712_v61, 4  ;;  %v5546_v39 = vmax.f32 %v2574_v62, %v2575_v48  ;;  %v2603_v58 = vrot.slane %v2602_v8, 1 }
 0x342   : > { %v2696_v41 = vrot.slane %v2695_v7, 1  ;;  %v3325_v59 = vadd.f32 %v3324_v13, %v5509_v42  ;;  %v5549_v5 = vmax.f32 %v2667_v28, %v2668_v0  ;;  %v2596_v36 = vrot.slane %v2595_v35, 1  ;;  %v3332_v28 = vpop.f32.mrf.mxu0 }
 0x343   : > { %v2708_v47 = vrot.slane %v2707_v30, 2  ;;  %v2567_v21 = vmax.f32 %v2300_v32, 0.0  ;;  %v5552_v4 = vadd.f32 %v3290_v49, %v5516_v16  ;;  %v2689_v37 = vrot.slane %v2688_v25, 1 }
 0x344   : > { %v2616_v54 = vmax.f32 %v2614_v46, %v2615_v18  ;;  %v2566_v33 = vmax.f32 %v2298_v6, 0.0  ;;  %v2654_v52 = vmax.f32 %v5546_v39, %v5542_v22  ;;  %v2747_v57 = vmax.f32 %v5549_v5, %v5544_v56  ;;  %v3333_v32 = vpop.f32.mrf.mxu0  ;;  %v2939_v56 = vld [vmem:[%s5676_s7 + $0x90] sm:$0xff]  ;;  %v2938_v5 = vld [vmem:[%s5676_s7 + $0x88] sm:$0xff] }
 0x345   : > { %v2621_v42 = vmax.f32 %v2619_v53, %v2620_v17  ;;  %v2714_v13 = vmax.f32 %v2712_v61, %v2713_v51  ;;  %v5558_v10 = vmax.f32 %v2602_v8, %v2603_v58  ;;  %v5560_v29 = vmax.f32 %v2695_v7, %v2696_v41  ;;  %v2923_v39 = vld [vmem:[%s5676_s7 + $0x10] sm:$0xff]  ;;  %3405 = vmatprep.subr.mxu1 %v2939_v56 }
 0x346   : > { %v2454_v43 = vadd.f32 %v3325_v59, %v2369_v20  ;;  %v3328_v16 = vadd.f32 %v3327_v26, %v3326_v40  ;;  %v5562_v62 = vmax.f32 %v2595_v35, %v2596_v36  ;;  %v2709_v15 = vmax.f32 %v2707_v30, %v2708_v47  ;;  %3406 = vmatpush3.msra.mxu1 %v2923_v39 }
 0x347   : > { %v2640_v38 = vsel %vm2569_vm6, %v2567_v21, -inf  ;;  %v5565_v9 = vmax.f32 %v2688_v25, %v2689_v37  ;;  %v2617_v23 = vrot.slane %v2616_v54, 1  ;;  %v2633_v31 = vsel %vm2569_vm6, %v2566_v33, -inf  ;;  %3407 = vmatprep.subr.mxu1 %v2938_v5 }
 0x348   : > { %v2726_v2 = vsel %vm2662_vm7, %v2566_v33, -inf  ;;  %v2622_v50 = vrot.slane %v2621_v42, 2  ;;  %v2715_v44 = vrot.slane %v2714_v13, 2  ;;  %v2733_v40 = vsel %vm2662_vm7, %v2567_v21, -inf }
 0x349   : > { %v2655_v46 = vmax.f32 %v5562_v62, %v5558_v10  ;;  %v2748_v26 = vmax.f32 %v5565_v9, %v5560_v29  ;;  %v2459_v45 = vadd.f32 %v3328_v16, %v5533_v11  ;;  %v2641_v48 = vrot.slane %v2640_v38, 4 }
 0x34a   : > { %v2710_v27 = vrot.slane %v2709_v15, 1  ;;  %v3331_v8 = vadd.f32 %v3330_v60, %v3329_v55  ;;  %v5575_v61 = vmax.f32 %v2616_v54, %v2617_v23  ;;  %v2634_v0 = vrot.slane %v2633_v31, 4 }
 0x34b   : > { %v2727_v35 = vrot.slane %v2726_v2, 4  ;;  %v2734_v30 = vrot.slane %v2733_v40, 4  ;;  %v5577_v25 = vmax.f32 %v2621_v42, %v2622_v50  ;;  %v5579_v18 = vmax.f32 %v2714_v13, %v2715_v44 }
 0x34c   : > { %v3367_v34 = vpop.f32.mrf.mxu1  ;;  %v2642_v17 = vmax.f32 %v2640_v38, %v2641_v48  ;;  %v5583_v59 = vmax.f32 %v2709_v15, %v2710_v27  ;;  %v2464_v36 = vadd.f32 %v3331_v8, %v5536_v12  ;;  %v3334_v47 = vadd.f32 %v3333_v32, %v3332_v28 }
 0x34d   : > { %v2735_v37 = vmax.f32 %v2733_v40, %v2734_v30  ;;  %v2624_v42 = vrot.slane %v5577_v25, 1  ;;  %v2635_v13 = vmax.f32 %v2633_v31, %v2634_v0 }
 0x34e   : > { %v3368_v3 = vpop.f32.mrf.mxu1  ;;  %v2643_v38 = vrot.slane %v2642_v17, 2  ;;  %v2469_v40 = vadd.f32 %v3334_v47, %v5552_v4 }
 0x34f   : > { %v3369_v63 = vadd.f32 %v3368_v3, %v3367_v34  ;;  %v2717_v3 = vrot.slane %v5579_v18, 1  ;;  %v2736_v44 = vrot.slane %v2735_v37, 2  ;;  %v2636_v27 = vrot.slane %v2635_v13, 2 }
 0x350   : > { %v3370_v24 = vpop.f32.mrf.mxu1  ;;  %v2644_v0 = vmax.f32 %v2642_v17, %v2643_v38 }
 0x351   : > { %v2539_v20 = vadd.f32 %v3369_v63, %v2454_v43  ;;  %v2728_v43 = vmax.f32 %v2726_v2, %v2727_v35 }
 0x352   : > { %v3371_v14 = vpop.f32.mrf.mxu1 }
 0x353   : > { %v2559_v7 = vmax.f32 %v2539_v20, 0.0  ;;  %v3372_v53 = vadd.f32 %v3371_v14, %v3370_v24  ;;  %v2729_v8 = vrot.slane %v2728_v43, 2 }
 0x354   : > { %v3373_v49 = vpop.f32.mrf.mxu1 }
 0x355   : > { %v2584_v6 = vsel %vm2569_vm6, %v2559_v7, -inf  ;;  %v2677_v11 = vsel %vm2662_vm7, %v2559_v7, -inf  ;;  %v2544_v58 = vadd.f32 %v3372_v53, %v2459_v45  ;;  %v2730_v47 = vmax.f32 %v2728_v43, %v2729_v8 }
 0x356   : > { %v2585_v51 = vrot.slane %v2584_v6, 4  ;;  %v2678_v55 = vrot.slane %v2677_v11, 4  ;;  %v3374_v41 = vpop.f32.mrf.mxu1 }
 0x357   : > { %v3375_v21 = vadd.f32 %v3374_v41, %v3373_v49  ;;  %v2562_v60 = vmax.f32 %v2544_v58, 0.0  ;;  %v2737_v49 = vmax.f32 %v2735_v37, %v2736_v44  ;;  %v2625_v44 = vmax.f32 %v5577_v25, %v2624_v42 }
 0x358   : > { %v2586_v54 = vmax.f32 %v2584_v6, %v2585_v51  ;;  %v2679_v33 = vmax.f32 %v2677_v11, %v2678_v55  ;;  %v3376_v34 = vpop.f32.mrf.mxu1 }
 0x359   : > { %v2549_v16 = vadd.f32 %v3375_v21, %v2464_v36  ;;  %v2605_v15 = vsel %vm2569_vm6, %v2562_v60, -inf  ;;  %v2698_v63 = vsel %vm2662_vm7, %v2562_v60, -inf  ;;  %v2637_v36 = vmax.f32 %v2635_v13, %v2636_v27 }
 0x35a   : > { %v3377_v12 = vpop.f32.mrf.mxu1  ;;  %v2606_v23 = vrot.slane %v2605_v15, 4  ;;  %v2699_v28 = vrot.slane %v2698_v63, 4  ;;  %v2587_v20 = vrot.slane %v2586_v54, 2  ;;  %v2680_v45 = vrot.slane %v2679_v33, 2 }
 0x35b   : > { %v2565_v24 = vmax.f32 %v2549_v16, 0.0  ;;  %v3378_v50 = vadd.f32 %v3377_v12, %v3376_v34  ;;  %v2645_v12 = vrot.slane %v2644_v0, 1 }
 0x35c   : > { %v2607_v31 = vmax.f32 %v2605_v15, %v2606_v23  ;;  %v2700_v2 = vmax.f32 %v2698_v63, %v2699_v28  ;;  %v2588_v6 = vmax.f32 %v2586_v54, %v2587_v20  ;;  %v2681_v51 = vmax.f32 %v2679_v33, %v2680_v45 }
 0x35d   : > { %v2626_v48 = vsel %vm2569_vm6, %v2565_v24, -inf  ;;  %v2719_v14 = vsel %vm2662_vm7, %v2565_v24, -inf  ;;  %v2554_v32 = vadd.f32 %v3378_v50, %v2469_v40  ;;  %v2738_v23 = vrot.slane %v2737_v49, 1 }
 0x35e   : > { %v2627_v7 = vrot.slane %v2626_v48, 4  ;;  %v2720_v53 = vrot.slane %v2719_v14, 4  ;;  %v2608_v35 = vrot.slane %v2607_v31, 2  ;;  %v2701_v30 = vrot.slane %v2700_v2, 2 }
 0x35f   : > { %v2568_v41 = vmax.f32 %v2554_v32, 0.0  ;;  %v2589_v33 = vrot.slane %v2588_v6, 1  ;;  %v2682_v28 = vrot.slane %v2681_v51, 1  ;;  %v2718_v40 = vmax.f32 %v5579_v18, %v2717_v3 }
 0x360   : > { %v2628_v11 = vmax.f32 %v2626_v48, %v2627_v7  ;;  %v2721_v4 = vmax.f32 %v2719_v14, %v2720_v53  ;;  %v2609_v55 = vmax.f32 %v2607_v31, %v2608_v35  ;;  %v2702_v58 = vmax.f32 %v2700_v2, %v2701_v30 }
 0x361   : > { %v2647_v15 = vsel %vm2569_vm6, %v2568_v41, -inf  ;;  %v2740_v17 = vsel %vm2662_vm7, %v2568_v41, -inf  ;;  %v2638_v20 = vrot.slane %v2637_v36, 1  ;;  %v2731_v45 = vrot.slane %v2730_v47, 1 }
 0x362   : > { %v2629_v21 = vrot.slane %v2628_v11, 2  ;;  %v2722_v60 = vrot.slane %v2721_v4, 2  ;;  %v2610_v34 = vrot.slane %v2609_v55, 1  ;;  %v2703_v16 = vrot.slane %v2702_v58, 1 }
 0x363   : > { %v2648_v37 = vrot.slane %v2647_v15, 4  ;;  %v2741_v54 = vrot.slane %v2740_v17, 4  ;;  %v2646_v27 = vmax.f32 %v2644_v0, %v2645_v12  ;;  %v2739_v8 = vmax.f32 %v2737_v49, %v2738_v23  ;;  %v3242_v12 = vld [vmem:[#allocation11] ss:$0 sm:$0xff] }
 0x364   : > { %v2630_v38 = vmax.f32 %v2628_v11, %v2629_v21  ;;  %v2723_v63 = vmax.f32 %v2721_v4, %v2722_v60  ;;  %v2611_v31 = vmax.f32 %v2609_v55, %v2610_v34  ;;  %v2704_v2 = vmax.f32 %v2702_v58, %v2703_v16  ;;  %v2921_v60 = vld [vmem:[%s5676_s7] sm:$0xff]  ;;  %v2838_v34 = vld [vmem:[#allocation9] sm:$0x3] }
 0x365   : > { %v2649_v43 = vmax.f32 %v2647_v15, %v2648_v37  ;;  %v2742_v50 = vmax.f32 %v2740_v17, %v2741_v54  ;;  %v2590_v35 = vmax.f32 %v2588_v6, %v2589_v33  ;;  %v2683_v30 = vmax.f32 %v2681_v51, %v2682_v28 }
 0x366   : > { %v2631_v24 = vrot.slane %v2630_v38, 1  ;;  %v2724_v13 = vrot.slane %v2723_v63, 1  ;;  %v2656_v4 = vmax.f32 %v5575_v61, %v2625_v44  ;;  %v2749_v25 = vmax.f32 %v5583_v59, %v2718_v40 }
 0x367   : > { %v2650_v48 = vrot.slane %v2649_v43, 2  ;;  %v2743_v14 = vrot.slane %v2742_v50, 2  ;;  %v2639_v42 = vmax.f32 %v2637_v36, %v2638_v20  ;;  %v2732_v18 = vmax.f32 %v2730_v47, %v2731_v45 }
 0x368   : > { %v2632_v7 = vmax.f32 %v2630_v38, %v2631_v24  ;;  %v2725_v53 = vmax.f32 %v2723_v63, %v2724_v13  ;;  %v2659_v3 = vmax.f32 %v2655_v46, %v2611_v31  ;;  %v2752_v0 = vmax.f32 %v2748_v26, %v2704_v2 }
 0x369   : > { %v2651_v32 = vmax.f32 %v2649_v43, %v2650_v48  ;;  %v2744_v11 = vmax.f32 %v2742_v50, %v2743_v14  ;;  %v2657_v49 = vmax.f32 %v2639_v42, %v2646_v27  ;;  %v2750_v51 = vmax.f32 %v2732_v18, %v2739_v8 }
 0x36a   : > { %v2660_v6 = vmax.f32 %v2656_v4, %v2632_v7  ;;  %v2753_v41 = vmax.f32 %v2749_v25, %v2725_v53  ;;  %v2658_v61 = vmax.f32 %v2654_v52, %v2590_v35  ;;  %v2751_v10 = vmax.f32 %v2747_v57, %v2683_v30  ;;  %v2922_v52 = vld [vmem:[%s5676_s7 + $0x8] sm:$0xff]  ;;  %v2937_v57 = vld [vmem:[%s5676_s7 + $0x80] sm:$0xff] }
 0x36b   : > { %v2652_v55 = vrot.slane %v2651_v32, 1  ;;  %v2745_v58 = vrot.slane %v2744_v11, 1  ;;  %3408 = vmatpush3.msra.mxu1 %v2922_v52  ;;  %v2847_v16 = vrot.slane %v2838_v34, %v5818_v1  ;;  %v2843_v15 = vrot.slane %v2838_v34, %v5817_v19 }
 0x36c   : > { %v2770_v46 = vsel %vm2759_vm8, %v2752_v0, %v2751_v10  ;;  %v2760_v9 = vsel %vm2759_vm8, %v2659_v3, %v2658_v61  ;;  %3409 = vmatprep.subr.mxu1 %v2937_v57 }
 0x36d   : > { %v2653_v59 = vmax.f32 %v2651_v32, %v2652_v55  ;;  %v2746_v36 = vmax.f32 %v2744_v11, %v2745_v58  ;;  %v2771_v26 = vsel %vm2761_vm9, %v2753_v41, %v2770_v46  ;;  %v2762_v47 = vsel %vm2761_vm9, %v2660_v6, %v2760_v9  ;;  %3410 = vmatpush3.msra.mxu1 %v2921_v60 }
 0x36f   : > { %v2754_v62 = vmax.f32 %v2750_v51, %v2746_v36  ;;  %v2661_v29 = vmax.f32 %v2657_v49, %v2653_v59 }
 0x371   : > { %v2772_v21 = vsel %vm2763_vm10, %v2754_v62, %v2771_v26  ;;  %v2764_v22 = vsel %vm2763_vm10, %v2661_v29, %v2762_v47 }
 0x372   : > { %2914 = vmatprep.mubr.f32.mxu0 %v2772_v21 }
 0x373   : > { %2915 = vmatmul.mubr.f32.vlgmr.msra.gmra.mxu0 %v2764_v22 }
 0x433   : > { %v2916_v17 = vpop.f32.mrf.mxu0 }
 0x434   : > { %v2917_v37 = vadd.f32 %v2916_v17, %v2843_v15 }
 0x435   : > { %v2918_v38 = vpop.f32.mrf.mxu0 }
 0x436   : > { %v2919_v63 = vadd.f32 %v2918_v38, %v2847_v16 }
 0x438   : > { %3024 = vmatprep.mubr.f32.mxu1 %v2919_v63 }
 0x439   : > { %3025 = vmatmul.mubr.f32.vlgmr.msra.gmra.mxu1 %v2917_v37 }
 0x4f9   : > { %v3411_v54 = vpop.f32.mrf.mxu1 }
 0x4fb   : > { %v3412_v23 = vpop.f32.mrf.mxu1 }
 0x4fc   : > { %v3413_v33 = vadd.f32 %v3412_v23, %v3411_v54 }
 0x4fe   : > { %v3027_v1 = vadd.f32 %v3413_v33, %v3242_v12 }
 0x500   : > { %3031 = vst.msk [vmem:[%s393_s22] sm:$0xf] %vm3030_vm11, %v3027_v1 }
 0x501   : > { %3653 = shalt.err (!%p3650_p1)
}
 0x502   : > { %s3654_s14 = scalar_lea.hbm %s3044_s21, 64  ;;  %s3658_s25 = scalar_lea.hbm %s5678_s9, 128 }
 0x503   : > { %p3655_p13 = scmp.ne.s32.totalorder %s3044_s21, %s3654_s14  ;;  %p3659_p2 = scmp.lt.s32.totalorder %s3044_s21, %s5678_s9 }
 0x504   : > { %p3660_p12 = scmp.lt.s32.totalorder %s3658_s25, %s3654_s14 }
 0x505   : > { %p3656_p10 = pnand %p3655_p13, %p5821_p8 }
 0x506   : > { %p3661_p4 = por %p3660_p12, %p3659_p2 }
 0x507   : > { %p3657_p3 = pneg %p3656_p10 }
 0x509   : > { %p3662_p7 = pnand %p3661_p4, %p3657_p3 }
 0x50b   : > { %3665 = shalt.err (!%p3662_p7)
}
 0x50c   : > { %3435 = dma.vmem_to_hbm [thread:$0]  (%p5821_p8), %s3047_s28, 64, %s3044_s21, %s3033_s24  }
 0x50d PF: > { %p3467_p9 = scmp.ge.s32.totalorder %s3712_s12, 2  ;;  %s3058_s16 = sand.u32 1, %s3700_s30  }
 0x50e   : > { %p5822_p11 = scmp.ne.s32.totalorder %s5728_s20, 0  ;;  %s3059_s29 = scalar_lea.sflag [#allocation5], %s3058_s16 }
 0x510   : > { %p3454_p5 = pnand %p3467_p9, %p5822_p11 }
 0x512   : > { %p3455_p6 = pneg %p3454_p5 }
 0x514   : > { %3695 = dma.done.wait (%p3455_p6), %s3059_s29, 64  }
 0x515   : > { %3697 = vsyncadd (%p3455_p6), %s3059_s29, 4294967232  ;;  %s5823_s26 = sld [smem:[#allocation17_spill]]  ;;  %p22_p0 = scmp.ge.s32.totalorder %s3800_s15, 4  }
 0x516   : > { %s5824_s30 = smov %s3704_s10  ;;  %s5825_s10 = smov %s3708_s11 }
 0x517   : > { %s5827_s12 = smov %s3800_s15  ;;  %24 = sbr.rel (!%p22_p0) target bundleno = 6 (0x6), region = 116 }
 0x51b   : > { %s5826_s11 = smov %s5823_s26 }
 0x51c   :  { %3064 = vsyncpa [#allocation4], 1 }
 0x51d   :  { %3066 = vsyncpa [#allocation4 + $0x1], 1 }
 0x51e   :  { %3067 = vsyncpa [#allocation7], 1 }
 0x51f   :  { %3068 = vsyncpa [#allocation10], 1 }
 0x520   :  { %3069 = vsyncpa [#allocation5], 1 }
 0x521   :  { %3071 = vsyncpa [#allocation5 + $0x1], 1 }

</bundles_post_ra>
